<compile_context>
chip_gen: v5e
topology: v5e:2x2
jax: 0.10.0
libtpu: 0.0.40
codegen_flags: <defaults>
</compile_context>

<pallas_src>
import math
from functools import partial

import numpy as np
import jax
import jax.numpy as jnp
from jax import lax
from jax.experimental import pallas as pl
from jax.experimental.pallas import tpu as pltpu

_VMEM = pl.BlockSpec(memory_space=pltpu.MemorySpace.VMEM)


# ----------------------------------------------------------------------------
# Kernel A: geometric gate for all heads of both relation modules (one MXU pass).
#   deltas : (4, N*N)        flat pair deltas [dx, dy, dw, dh]
#   S      : (dim_g/2, 4)    S[c*nf+f, c] = 100 / wave_len**(f/nf)
#   wg     : (2H, dim_g)     WG weights of both modules stacked
#   gb     : (2H, 1)         WG biases
#   out    : (2H, N*N)       log(clamp(relu(WG(pe)), 1e-6)), PyTorch dim_g ordering
# ----------------------------------------------------------------------------
def _gate_kernel(d_ref, s_ref, wg_ref, gb_ref, o_ref):
    # mul[c*nf+f, p] = 100 * freq_f * delta_c[p]   (tiny MXU matmul, pe stays lane-dense)
    mul = jnp.dot(s_ref[...], d_ref[...], preferred_element_type=jnp.float32)
    pe = jnp.concatenate([jnp.sin(mul), jnp.cos(mul)], axis=0)        # (dim_g, N*N)
    gate = (jnp.dot(wg_ref[...], pe, preferred_element_type=jnp.float32)
            + gb_ref[...])                                            # (2H, N*N)
    # relu then clamp(min=1e-6) == clamp(min=1e-6): single VPU max.
    o_ref[...] = jnp.log(jnp.maximum(gate, 1e-6))


# ----------------------------------------------------------------------------
# Kernel B: the whole neck,  fc1 -> rel1 -> fc2 -> rel2  in one pallas_call.
#   xf        : (N, Fin_pad)  bf16, zero-padded ROI features
#   lg1 / lg2 : (N, H*N)      f32 log-gates, lg[i, h*N + j]
#   mask      : (H*N, F)      f32, 1 where row-block h matches column head h
#   sel       : (H*N, H)      f32, 1 where row-block h == column h
#   fc*_w     : bf16 (Fin_pad/F, F);  fc*_b: f32 (1, F)
#   wkqv*     : bf16 (F, 3F)  [WK | WQ/sqrt(dk) | WV];  bkqv*: f32 (1, 3F)
#   out       : (N, F) f32
# ----------------------------------------------------------------------------
def _neck_kernel(xf_ref, lg1_ref, lg2_ref, mask_ref, sel_ref,
                 fc1_w_ref, fc1_b_ref, wkqv1_ref, bkqv1_ref,
                 fc2_w_ref, fc2_b_ref, wkqv2_ref, bkqv2_ref,
                 o_ref, *, feat):
    f = feat
    mask = mask_ref[...]                     # (H*N, F)
    sel = sel_ref[...]                       # (H*N, H)
    n_heads = sel.shape[1]

    def relation_module(fa, lg, wkqv_ref, bkqv_ref):
        # fused K/Q/V projection: one lane-dense bf16 (N,F)x(F,3F) MXU matmul, f32 acc.
        kqv = (jnp.dot(fa.astype(jnp.bfloat16), wkqv_ref[...],
                       preferred_element_type=jnp.float32) + bkqv_ref[...])
        k = kqv[:, :f]                       # 256-lane-aligned slices (no masking)
        q = kqv[:, f:2 * f]
        v = kqv[:, 2 * f:]
        # head-blocked stacks: row-block h of Qblk/Vblk holds Q/V masked to head-h cols.
        q_rep = jnp.concatenate([q] * n_heads, axis=0)               # (H*N, F) sublane concat
        v_rep = jnp.concatenate([v] * n_heads, axis=0)
        q_blk = (q_rep * mask).astype(jnp.bfloat16)
        v_blk = (v_rep * mask).astype(jnp.bfloat16)
        # scores[i, h*N + j] = <K_i, Q_j> restricted to head h (1/sqrt(dk) folded in WQ).
        scores = lax.dot_general(k.astype(jnp.bfloat16), q_blk,
                                 (((1,), (1,)), ((), ())),
                                 preferred_element_type=jnp.float32)  # (N, H*N)
        logits = lg + scores
        # per-row max over ALL heads is constant within each head segment -> valid shift.
        logits = logits - jnp.max(logits, axis=1, keepdims=True)
        e = jnp.exp(logits)
        # per-head softmax denominator via two tiny selector matmuls (block sums).
        denom = jnp.dot(e, sel, preferred_element_type=jnp.float32)   # (N, H)
        denom = lax.dot_general(denom, sel, (((1,), (1,)), ((), ())),
                                preferred_element_type=jnp.float32)   # (N, H*N)
        p = e * pl.reciprocal(denom, approx=True)
        # each head's output lands in its own 16-wide column block of the (N,F) result:
        # a single full-width lane-dense store (+ residual), no masked 16-lane stores.
        out = jnp.dot(p.astype(jnp.bfloat16), v_blk,
                      preferred_element_type=jnp.float32)             # (N, F)
        return out + fa

    fa1 = jnp.maximum(
        jnp.dot(xf_ref[...], fc1_w_ref[...], preferred_element_type=jnp.float32)
        + fc1_b_ref[...], 0.0)
    r1 = relation_module(fa1, lg1_ref[...], wkqv1_ref, bkqv1_ref)

    fa2 = jnp.maximum(
        jnp.dot(r1.astype(jnp.bfloat16), fc2_w_ref[...],
                preferred_element_type=jnp.float32) + fc2_b_ref[...], 0.0)
    o_ref[...] = relation_module(fa2, lg2_ref[...], wkqv2_ref, bkqv2_ref)


# ----------------------------------------------------------------------------
# Parameter init (deterministic, synthetic) + glue
# ----------------------------------------------------------------------------
def init_relation_module_params(key, fc_features, n_relations, dim_g):
    keys = jax.random.split(key, 8)
    s = 0.05
    f = fc_features
    return {
        "wk": s * jax.random.normal(keys[0], (f, f), jnp.float32),
        "bk": s * jax.random.normal(keys[1], (f,), jnp.float32),
        "wq": s * jax.random.normal(keys[2], (f, f), jnp.float32),
        "bq": s * jax.random.normal(keys[3], (f,), jnp.float32),
        "wv": s * jax.random.normal(keys[4], (f, f), jnp.float32),
        "bv": s * jax.random.normal(keys[5], (f,), jnp.float32),
        "wg_w": s * jax.random.normal(keys[6], (n_relations, dim_g), jnp.float32),
        "wg_b": s * jax.random.normal(keys[7], (n_relations,), jnp.float32),
    }


def init_relation_neck_params(key, in_channels, fc_features, n_relations):
    k1, k2, k3, k4, k5, k6 = jax.random.split(key, 6)
    s = 0.02
    dim_g = fc_features // n_relations
    return {
        "fc1_w": s * jax.random.normal(k1, (7 * 7 * in_channels, fc_features), jnp.float32),
        "fc1_b": s * jax.random.normal(k2, (fc_features,), jnp.float32),
        "fc2_w": s * jax.random.normal(k3, (fc_features, fc_features), jnp.float32),
        "fc2_b": s * jax.random.normal(k4, (fc_features,), jnp.float32),
        "rel1": init_relation_module_params(k5, fc_features, n_relations, dim_g),
        "rel2": init_relation_module_params(k6, fc_features, n_relations, dim_g),
    }


def _pack_relation_params(p, f, dim_k):
    # Fold 1/sqrt(dim_k) into WQ / bq (one-time weight scale, not a hot-path multiply);
    # weights go to bf16 at the HBM boundary, biases stay f32 (tiny).
    scale = 1.0 / math.sqrt(dim_k)
    wkqv = jnp.concatenate([p["wk"], p["wq"] * scale, p["wv"]], axis=1)      # (F, 3F)
    bkqv = jnp.concatenate([p["bk"], p["bq"] * scale, p["bv"]],
                           axis=0).reshape(1, 3 * f)
    return wkqv.astype(jnp.bfloat16), bkqv


def relation_neck_forward(x, rois, params, wave_len=1000.0):
    """x: (N, C, 7, 7) NCHW ROI features; rois: (N, 5) = [img_idx, x0, y0, x1, y1]."""
    n = x.shape[0]
    f = params["fc1_w"].shape[1]
    n_heads, dim_g = params["rel1"]["wg_w"].shape
    dim_k = f // n_heads
    nf = dim_g // 8
    hn = n_heads * n

    # ---- pair deltas (XLA glue; the (N,N)->(N*N) flatten is a free reshape here) ----
    b = rois[:, 1:5]
    cx = (b[:, 0] + b[:, 2]) * 0.5
    cy = (b[:, 1] + b[:, 3]) * 0.5
    bw = b[:, 2] - b[:, 0] + 1.0
    bh = b[:, 3] - b[:, 1] + 1.0
    dx = jnp.log(jnp.maximum(jnp.abs((cx[:, None] - cx[None, :]) / bw[:, None]), 1e-3))
    dy = jnp.log(jnp.maximum(jnp.abs((cy[:, None] - cy[None, :]) / bh[:, None]), 1e-3))
    dw = jnp.log(bw[:, None] / bw[None, :])
    dh = jnp.log(bh[:, None] / bh[None, :])
    deltas = jnp.stack([dx, dy, dw, dh], axis=0).reshape(4, n * n)           # (4, N*N)

    # compile-time frequency/selection matrix: mul rows ordered c*nf + i (PyTorch order)
    s_np = np.zeros((4 * nf, 4), np.float32)
    for c in range(4):
        for i in range(nf):
            s_np[c * nf + i, c] = 100.0 / (wave_len ** (float(i) / float(nf)))
    s_mat = jnp.asarray(s_np)

    wg_both = jnp.concatenate([params["rel1"]["wg_w"], params["rel2"]["wg_w"]], axis=0)
    gb = jnp.concatenate([params["rel1"]["wg_b"], params["rel2"]["wg_b"]],
                         axis=0).reshape(2 * n_heads, 1)

    gate_cost = pl.CostEstimate(
        flops=int(2 * (4 * nf) * 4 * n * n + 2 * (2 * n_heads) * dim_g * n * n),
        transcendentals=int((2 * 4 * nf + 2 * n_heads) * n * n),
        bytes_accessed=int(4 * (4 * n * n + 4 * nf * 4 + 2 * n_heads * (dim_g + 1)
                                + 2 * n_heads * n * n)))
    log_gate = pl.pallas_call(
        _gate_kernel,
        out_shape=jax.ShapeDtypeStruct((2 * n_heads, n * n), jnp.float32),
        in_specs=[_VMEM] * 4,
        out_specs=_VMEM,
        cost_estimate=gate_cost,
    )(deltas, s_mat, wg_both, gb)

    # Per-module gate relaid out to (N, H*N): lg[i, h*N + j] = log_gate[h, i, j].
    # TODO(synk): for large N do not round-trip this O(H*N^2) tensor through HBM in f32.
    lg = log_gate.reshape(2, n_heads, n, n)
    lg1 = jnp.transpose(lg[0], (1, 0, 2)).reshape(n, hn)
    lg2 = jnp.transpose(lg[1], (1, 0, 2)).reshape(n, hn)

    # Static head-block mask / head selector constants (baked into the executable).
    mask_np = np.zeros((hn, f), np.float32)
    sel_np = np.zeros((hn, n_heads), np.float32)
    for h in range(n_heads):
        mask_np[h * n:(h + 1) * n, h * dim_k:(h + 1) * dim_k] = 1.0
        sel_np[h * n:(h + 1) * n, h] = 1.0
    mask = jnp.asarray(mask_np)
    sel = jnp.asarray(sel_np)

    wkqv1, bkqv1 = _pack_relation_params(params["rel1"], f, dim_k)
    wkqv2, bkqv2 = _pack_relation_params(params["rel2"], f, dim_k)

    # Zero-pad the fc1 contraction (Cin*49 = 196) up to a multiple of 128 (exact math).
    fin = x.shape[1] * x.shape[2] * x.shape[3]
    fin_pad = ((fin + 127) // 128) * 128
    xf = jnp.pad(x.reshape(n, fin), ((0, 0), (0, fin_pad - fin))).astype(jnp.bfloat16)
    fc1_w = jnp.pad(params["fc1_w"], ((0, fin_pad - fin), (0, 0))).astype(jnp.bfloat16)
    fc1_b = params["fc1_b"].reshape(1, f)
    fc2_w = params["fc2_w"].astype(jnp.bfloat16)
    fc2_b = params["fc2_b"].reshape(1, f)

    flops = (2 * n * fin_pad * f + 2 * n * f * f               # fc1, fc2
             + 2 * (2 * n * f * 3 * f)                          # fused KQV x2
             + 2 * (2 * n * hn * f) * 2                         # scores + attn-out x2
             + 2 * (2 * n * hn * n_heads) * 2                   # softmax denominators x2
             + 2 * (2 * hn * n * f) * 2)                        # Q/V block stacking x2
    bytes_accessed = (xf.size * 2 + (lg1.size + lg2.size) * 4
                      + mask.size * 4 + sel.size * 4
                      + fc1_w.size * 2 + fc2_w.size * 2
                      + wkqv1.size * 2 + wkqv2.size * 2
                      + (bkqv1.size + bkqv2.size + 2 * f) * 4
                      + n * f * 4)
    neck_cost = pl.CostEstimate(flops=int(flops),
                                transcendentals=int(2 * n * hn),
                                bytes_accessed=int(bytes_accessed))

    kernel = partial(_neck_kernel, feat=f)
    return pl.pallas_call(
        kernel,
        out_shape=jax.ShapeDtypeStruct((n, f), jnp.float32),
        in_specs=[_VMEM] * 13,
        out_specs=_VMEM,
        cost_estimate=neck_cost,
    )(xf, lg1, lg2, mask, sel,
      fc1_w, fc1_b, wkqv1, bkqv1,
      fc2_w, fc2_b, wkqv2, bkqv2)


# ----------------------------------------------------------------------------
# Pure-JAX reference (no Pallas, f32) for a numerical self-check
# ----------------------------------------------------------------------------
def _reference_forward(x, rois, params, wave_len=1000.0):
    n = x.shape[0]
    f = params["fc1_w"].shape[1]
    n_heads, dim_g = params["rel1"]["wg_w"].shape
    dim_k = f // n_heads
    nf = dim_g // 8

    b = rois[:, 1:5]
    cx = (b[:, 0] + b[:, 2]) * 0.5
    cy = (b[:, 1] + b[:, 3]) * 0.5
    bw = b[:, 2] - b[:, 0] + 1.0
    bh = b[:, 3] - b[:, 1] + 1.0
    dx = jnp.log(jnp.maximum(jnp.abs((cx[:, None] - cx[None, :]) / bw[:, None]), 1e-3))
    dy = jnp.log(jnp.maximum(jnp.abs((cy[:, None] - cy[None, :]) / bh[:, None]), 1e-3))
    dw = jnp.log(bw[:, None] / bw[None, :])
    dh = jnp.log(bh[:, None] / bh[None, :])
    dim_mat = jnp.asarray([1.0 / (wave_len ** (float(i) / float(nf))) for i in range(nf)],
                          jnp.float32)
    comps = jnp.stack([dx, dy, dw, dh], axis=0)                           # (4, N, N)
    mul = (100.0 * comps[:, None] * dim_mat[None, :, None, None]).reshape(4 * nf, n, n)
    pe = jnp.concatenate([jnp.sin(mul), jnp.cos(mul)], axis=0)            # (dim_g, N, N)

    def relation(fa, p):
        k = fa @ p["wk"] + p["bk"]
        q = fa @ p["wq"] + p["bq"]
        v = fa @ p["wv"] + p["bv"]
        outs = []
        for hh in range(n_heads):
            sl = slice(hh * dim_k, (hh + 1) * dim_k)
            scaled = (k[:, sl] @ q[:, sl].T) / math.sqrt(dim_k)
            wg = jnp.maximum(jnp.einsum("g,gij->ij", p["wg_w"][hh], pe) + p["wg_b"][hh], 0.0)
            logits = jnp.log(jnp.maximum(wg, 1e-6)) + scaled
            pmn = jax.nn.softmax(logits, axis=1)
            outs.append(pmn @ v[:, sl])
        return jnp.concatenate(outs, axis=1) + fa

    xf = x.reshape(n, -1)
    fa1 = jnp.maximum(xf @ params["fc1_w"] + params["fc1_b"], 0.0)
    r1 = relation(fa1, params["rel1"])
    fa2 = jnp.maximum(r1 @ params["fc2_w"] + params["fc2_b"], 0.0)
    return relation(fa2, params["rel2"])


if __name__ == "__main__":
    # Small shapes consistent with the module: N rois, in_channels=4, 7x7 ROI pool,
    # fc_features=256, n_relations=16 -> dim_g = dim_k = 16, H*N = 128.
    N, C = 8, 4
    FC_FEATURES, N_RELATIONS = 256, 16

    key = jax.random.PRNGKey(0)
    k_params, k_x, k_xy, k_wh = jax.random.split(key, 4)

    params = init_relation_neck_params(k_params, C, FC_FEATURES, N_RELATIONS)

    x = jax.random.normal(k_x, (N, C, 7, 7), jnp.float32)
    xy_min = jax.random.uniform(k_xy, (N, 2), jnp.float32, 0.0, 50.0)
    wh = jax.random.uniform(k_wh, (N, 2), jnp.float32, 1.0, 30.0)
    rois = jnp.concatenate(
        [jnp.zeros((N, 1), jnp.float32), xy_min, xy_min + wh], axis=1)   # (N, 5)

    out = jax.jit(relation_neck_forward)(x, rois, params)
    out = jax.block_until_ready(out)

    assert out.shape == (N, FC_FEATURES), out.shape
    assert bool(jnp.all(jnp.isfinite(out)))

    ref = _reference_forward(x, rois, params)
    np.testing.assert_allclose(np.asarray(out), np.asarray(ref), rtol=5e-2, atol=2e-2)

    print("KERNEL_OK")
</pallas_src>

<mosaic_0001>
module attributes {stable_mosaic.version = 11 : i64} {
  func.func @_gate_kernel(%arg0: memref<4x64xf32, #tpu.memory_space<vmem>>, %arg1: memref<8x4xf32, #tpu.memory_space<vmem>>, %arg2: memref<32x16xf32, #tpu.memory_space<vmem>>, %arg3: memref<32x1xf32, #tpu.memory_space<vmem>>, %arg4: memref<32x64xf32, #tpu.memory_space<vmem>>) attributes {dimension_semantics = [], scalar_prefetch = 0 : i64, scratch_operands = 0 : i64, tpu.core_type = #tpu.core_type<tc>} {
    %c0 = arith.constant 0 : index
    %c0_0 = arith.constant 0 : index
    %0 = vector.load %arg1[%c0, %c0_0] : memref<8x4xf32, #tpu.memory_space<vmem>>, vector<8x4xf32>
    %c0_1 = arith.constant 0 : index
    %c0_2 = arith.constant 0 : index
    %1 = vector.load %arg0[%c0_1, %c0_2] : memref<4x64xf32, #tpu.memory_space<vmem>>, vector<4x64xf32>
    %cst = arith.constant dense<0.000000e+00> : vector<8x64xf32>
    %2 = tpu.matmul %0, %1, %cst {dimension_numbers = #tpu.dot_dimension_numbers<[1], [0], [0], [1], [0, 0, 1, 1], [], []>} : vector<8x4xf32>, vector<4x64xf32>, vector<8x64xf32> -> vector<8x64xf32>
    %3 = math.sin %2 : vector<8x64xf32>
    %4 = math.cos %2 : vector<8x64xf32>
    %5 = tpu.concatenate %3, %4 in 0 : vector<8x64xf32>, vector<8x64xf32> -> vector<16x64xf32>
    %c0_3 = arith.constant 0 : index
    %c0_4 = arith.constant 0 : index
    %6 = vector.load %arg2[%c0_3, %c0_4] : memref<32x16xf32, #tpu.memory_space<vmem>>, vector<32x16xf32>
    %cst_5 = arith.constant dense<0.000000e+00> : vector<32x64xf32>
    %7 = tpu.matmul %6, %5, %cst_5 {dimension_numbers = #tpu.dot_dimension_numbers<[1], [0], [0], [1], [0, 0, 1, 1], [], []>} : vector<32x16xf32>, vector<16x64xf32>, vector<32x64xf32> -> vector<32x64xf32>
    %c0_6 = arith.constant 0 : index
    %c0_7 = arith.constant 0 : index
    %8 = vector.load %arg3[%c0_6, %c0_7] : memref<32x1xf32, #tpu.memory_space<vmem>>, vector<32x1xf32>
    %9 = vector.broadcast %8 : vector<32x1xf32> to vector<32x64xf32>
    %10 = arith.addf %7, %9 : vector<32x64xf32>
    %cst_8 = arith.constant 9.99999997E-7 : f32
    %11 = vector.broadcast %cst_8 : f32 to vector<32x64xf32>
    %12 = arith.maximumf %10, %11 : vector<32x64xf32>
    %13 = math.log %12 : vector<32x64xf32>
    %c0_9 = arith.constant 0 : index
    %c0_10 = arith.constant 0 : index
    %14 = vector.load %arg4[%c0_9, %c0_10] : memref<32x64xf32, #tpu.memory_space<vmem>>, vector<32x64xf32>
    tpu.vector_store %arg4[%c0_9, %c0_10], %13 {strides = array<i32>} : memref<32x64xf32, #tpu.memory_space<vmem>>, vector<32x64xf32>,
    return
  }
}

module attributes {stable_mosaic.version = 11 : i64} {
  func.func @_neck_kernel(%arg0: memref<8x256xbf16, #tpu.memory_space<vmem>>, %arg1: memref<8x128xf32, #tpu.memory_space<vmem>>, %arg2: memref<8x128xf32, #tpu.memory_space<vmem>>, %arg3: memref<128x256xf32, #tpu.memory_space<vmem>>, %arg4: memref<128x16xf32, #tpu.memory_space<vmem>>, %arg5: memref<256x256xbf16, #tpu.memory_space<vmem>>, %arg6: memref<1x256xf32, #tpu.memory_space<vmem>>, %arg7: memref<256x768xbf16, #tpu.memory_space<vmem>>, %arg8: memref<1x768xf32, #tpu.memory_space<vmem>>, %arg9: memref<256x256xbf16, #tpu.memory_space<vmem>>, %arg10: memref<1x256xf32, #tpu.memory_space<vmem>>, %arg11: memref<256x768xbf16, #tpu.memory_space<vmem>>, %arg12: memref<1x768xf32, #tpu.memory_space<vmem>>, %arg13: memref<8x256xf32, #tpu.memory_space<vmem>>) attributes {dimension_semantics = [], scalar_prefetch = 0 : i64, scratch_operands = 0 : i64, tpu.core_type = #tpu.core_type<tc>} {
    %c0 = arith.constant 0 : index
    %c0_0 = arith.constant 0 : index
    %0 = vector.load %arg3[%c0, %c0_0] : memref<128x256xf32, #tpu.memory_space<vmem>>, vector<128x256xf32>
    %c0_1 = arith.constant 0 : index
    %c0_2 = arith.constant 0 : index
    %1 = vector.load %arg4[%c0_1, %c0_2] : memref<128x16xf32, #tpu.memory_space<vmem>>, vector<128x16xf32>
    %c0_3 = arith.constant 0 : index
    %c0_4 = arith.constant 0 : index
    %2 = vector.load %arg0[%c0_3, %c0_4] : memref<8x256xbf16, #tpu.memory_space<vmem>>, vector<8x256xbf16>
    %c0_5 = arith.constant 0 : index
    %c0_6 = arith.constant 0 : index
    %3 = vector.load %arg5[%c0_5, %c0_6] : memref<256x256xbf16, #tpu.memory_space<vmem>>, vector<256x256xbf16>
    %cst = arith.constant dense<0.000000e+00> : vector<8x256xf32>
    %4 = tpu.matmul %2, %3, %cst {dimension_numbers = #tpu.dot_dimension_numbers<[1], [0], [0], [1], [0, 0, 1, 1], [], []>} : vector<8x256xbf16>, vector<256x256xbf16>, vector<8x256xf32> -> vector<8x256xf32>
    %c0_7 = arith.constant 0 : index
    %c0_8 = arith.constant 0 : index
    %5 = vector.load %arg6[%c0_7, %c0_8] : memref<1x256xf32, #tpu.memory_space<vmem>>, vector<1x256xf32>
    %6 = vector.broadcast %5 : vector<1x256xf32> to vector<8x256xf32>
    %7 = arith.addf %4, %6 : vector<8x256xf32>
    %cst_9 = arith.constant 0.000000e+00 : f32
    %8 = vector.broadcast %cst_9 : f32 to vector<8x256xf32>
    %9 = arith.maximumf %7, %8 : vector<8x256xf32>
    %c0_10 = arith.constant 0 : index
    %c0_11 = arith.constant 0 : index
    %10 = vector.load %arg1[%c0_10, %c0_11] : memref<8x128xf32, #tpu.memory_space<vmem>>, vector<8x128xf32>
    %11 = arith.truncf %9 : vector<8x256xf32> to vector<8x256xbf16>
    %c0_12 = arith.constant 0 : index
    %c0_13 = arith.constant 0 : index
    %12 = vector.load %arg7[%c0_12, %c0_13] : memref<256x768xbf16, #tpu.memory_space<vmem>>, vector<256x768xbf16>
    %cst_14 = arith.constant dense<0.000000e+00> : vector<8x768xf32>
    %13 = tpu.matmul %11, %12, %cst_14 {dimension_numbers = #tpu.dot_dimension_numbers<[1], [0], [0], [1], [0, 0, 1, 1], [], []>} : vector<8x256xbf16>, vector<256x768xbf16>, vector<8x768xf32> -> vector<8x768xf32>
    %c0_15 = arith.constant 0 : index
    %c0_16 = arith.constant 0 : index
    %14 = vector.load %arg8[%c0_15, %c0_16] : memref<1x768xf32, #tpu.memory_space<vmem>>, vector<1x768xf32>
    %15 = vector.broadcast %14 : vector<1x768xf32> to vector<8x768xf32>
    %16 = arith.addf %13, %15 : vector<8x768xf32>
    %17 = vector.extract_strided_slice %16 {offsets = [0, 0], sizes = [8, 256], strides = [1, 1]} : vector<8x768xf32> to vector<8x256xf32>
    %18 = vector.extract_strided_slice %16 {offsets = [0, 256], sizes = [8, 256], strides = [1, 1]} : vector<8x768xf32> to vector<8x256xf32>
    %19 = vector.extract_strided_slice %16 {offsets = [0, 512], sizes = [8, 256], strides = [1, 1]} : vector<8x768xf32> to vector<8x256xf32>
    %20 = tpu.concatenate %18, %18, %18, %18, %18, %18, %18, %18, %18, %18, %18, %18, %18, %18, %18, %18 in 0 : vector<8x256xf32>, vector<8x256xf32>, vector<8x256xf32>, vector<8x256xf32>, vector<8x256xf32>, vector<8x256xf32>, vector<8x256xf32>, vector<8x256xf32>, vector<8x256xf32>, vector<8x256xf32>, vector<8x256xf32>, vector<8x256xf32>, vector<8x256xf32>, vector<8x256xf32>, vector<8x256xf32>, vector<8x256xf32> -> vector<128x256xf32>
    %21 = tpu.concatenate %19, %19, %19, %19, %19, %19, %19, %19, %19, %19, %19, %19, %19, %19, %19, %19 in 0 : vector<8x256xf32>, vector<8x256xf32>, vector<8x256xf32>, vector<8x256xf32>, vector<8x256xf32>, vector<8x256xf32>, vector<8x256xf32>, vector<8x256xf32>, vector<8x256xf32>, vector<8x256xf32>, vector<8x256xf32>, vector<8x256xf32>, vector<8x256xf32>, vector<8x256xf32>, vector<8x256xf32>, vector<8x256xf32> -> vector<128x256xf32>
    %22 = arith.mulf %20, %0 : vector<128x256xf32>
    %23 = arith.truncf %22 : vector<128x256xf32> to vector<128x256xbf16>
    %24 = arith.mulf %21, %0 : vector<128x256xf32>
    %25 = arith.truncf %24 : vector<128x256xf32> to vector<128x256xbf16>
    %26 = arith.truncf %17 : vector<8x256xf32> to vector<8x256xbf16>
    %cst_17 = arith.constant dense<0.000000e+00> : vector<8x128xf32>
    %27 = tpu.matmul %26, %23, %cst_17 {dimension_numbers = #tpu.dot_dimension_numbers<[1], [1], [0], [0], [0, 0, 1, 0], [], []>} : vector<8x256xbf16>, vector<128x256xbf16>, vector<8x128xf32> -> vector<8x128xf32>
    %28 = arith.addf %10, %27 : vector<8x128xf32>
    %cst_18 = arith.constant dense<0xFF800000> : vector<8xf32>
    %29 = vector.multi_reduction <maximumf>, %28, %cst_18 [1] : vector<8x128xf32> to vector<8xf32>
    %30 = vector.shape_cast %29 : vector<8xf32> to vector<8x1xf32>
    %31 = vector.broadcast %30 : vector<8x1xf32> to vector<8x128xf32>
    %32 = arith.subf %28, %31 : vector<8x128xf32>
    %33 = math.exp %32 : vector<8x128xf32>
    %cst_19 = arith.constant dense<0.000000e+00> : vector<8x16xf32>
    %34 = tpu.matmul %33, %1, %cst_19 {dimension_numbers = #tpu.dot_dimension_numbers<[1], [0], [0], [1], [0, 0, 1, 1], [], []>} : vector<8x128xf32>, vector<128x16xf32>, vector<8x16xf32> -> vector<8x16xf32>
    %cst_20 = arith.constant dense<0.000000e+00> : vector<8x128xf32>
    %35 = tpu.matmul %34, %1, %cst_20 {dimension_numbers = #tpu.dot_dimension_numbers<[1], [1], [0], [0], [0, 0, 1, 0], [], []>} : vector<8x16xf32>, vector<128x16xf32>, vector<8x128xf32> -> vector<8x128xf32>
    %36 = tpu.reciprocal %35 {approx = true} : vector<8x128xf32> -> vector<8x128xf32>
    %37 = arith.mulf %33, %36 : vector<8x128xf32>
    %38 = arith.truncf %37 : vector<8x128xf32> to vector<8x128xbf16>
    %cst_21 = arith.constant dense<0.000000e+00> : vector<8x256xf32>
    %39 = tpu.matmul %38, %25, %cst_21 {dimension_numbers = #tpu.dot_dimension_numbers<[1], [0], [0], [1], [0, 0, 1, 1], [], []>} : vector<8x128xbf16>, vector<128x256xbf16>, vector<8x256xf32> -> vector<8x256xf32>
    %40 = arith.addf %39, %9 : vector<8x256xf32>
    %41 = arith.truncf %40 : vector<8x256xf32> to vector<8x256xbf16>
    %c0_22 = arith.constant 0 : index
    %c0_23 = arith.constant 0 : index
    %42 = vector.load %arg9[%c0_22, %c0_23] : memref<256x256xbf16, #tpu.memory_space<vmem>>, vector<256x256xbf16>
    %cst_24 = arith.constant dense<0.000000e+00> : vector<8x256xf32>
    %43 = tpu.matmul %41, %42, %cst_24 {dimension_numbers = #tpu.dot_dimension_numbers<[1], [0], [0], [1], [0, 0, 1, 1], [], []>} : vector<8x256xbf16>, vector<256x256xbf16>, vector<8x256xf32> -> vector<8x256xf32>
    %c0_25 = arith.constant 0 : index
    %c0_26 = arith.constant 0 : index
    %44 = vector.load %arg10[%c0_25, %c0_26] : memref<1x256xf32, #tpu.memory_space<vmem>>, vector<1x256xf32>
    %45 = vector.broadcast %44 : vector<1x256xf32> to vector<8x256xf32>
    %46 = arith.addf %43, %45 : vector<8x256xf32>
    %cst_27 = arith.constant 0.000000e+00 : f32
    %47 = vector.broadcast %cst_27 : f32 to vector<8x256xf32>
    %48 = arith.maximumf %46, %47 : vector<8x256xf32>
    %c0_28 = arith.constant 0 : index
    %c0_29 = arith.constant 0 : index
    %49 = vector.load %arg2[%c0_28, %c0_29] : memref<8x128xf32, #tpu.memory_space<vmem>>, vector<8x128xf32>
    %50 = arith.truncf %48 : vector<8x256xf32> to vector<8x256xbf16>
    %c0_30 = arith.constant 0 : index
    %c0_31 = arith.constant 0 : index
    %51 = vector.load %arg11[%c0_30, %c0_31] : memref<256x768xbf16, #tpu.memory_space<vmem>>, vector<256x768xbf16>
    %cst_32 = arith.constant dense<0.000000e+00> : vector<8x768xf32>
    %52 = tpu.matmul %50, %51, %cst_32 {dimension_numbers = #tpu.dot_dimension_numbers<[1], [0], [0], [1], [0, 0, 1, 1], [], []>} : vector<8x256xbf16>, vector<256x768xbf16>, vector<8x768xf32> -> vector<8x768xf32>
    %c0_33 = arith.constant 0 : index
    %c0_34 = arith.constant 0 : index
    %53 = vector.load %arg12[%c0_33, %c0_34] : memref<1x768xf32, #tpu.memory_space<vmem>>, vector<1x768xf32>
    %54 = vector.broadcast %53 : vector<1x768xf32> to vector<8x768xf32>
    %55 = arith.addf %52, %54 : vector<8x768xf32>
    %56 = vector.extract_strided_slice %55 {offsets = [0, 0], sizes = [8, 256], strides = [1, 1]} : vector<8x768xf32> to vector<8x256xf32>
    %57 = vector.extract_strided_slice %55 {offsets = [0, 256], sizes = [8, 256], strides = [1, 1]} : vector<8x768xf32> to vector<8x256xf32>
    %58 = vector.extract_strided_slice %55 {offsets = [0, 512], sizes = [8, 256], strides = [1, 1]} : vector<8x768xf32> to vector<8x256xf32>
    %59 = tpu.concatenate %57, %57, %57, %57, %57, %57, %57, %57, %57, %57, %57, %57, %57, %57, %57, %57 in 0 : vector<8x256xf32>, vector<8x256xf32>, vector<8x256xf32>, vector<8x256xf32>, vector<8x256xf32>, vector<8x256xf32>, vector<8x256xf32>, vector<8x256xf32>, vector<8x256xf32>, vector<8x256xf32>, vector<8x256xf32>, vector<8x256xf32>, vector<8x256xf32>, vector<8x256xf32>, vector<8x256xf32>, vector<8x256xf32> -> vector<128x256xf32>
    %60 = tpu.concatenate %58, %58, %58, %58, %58, %58, %58, %58, %58, %58, %58, %58, %58, %58, %58, %58 in 0 : vector<8x256xf32>, vector<8x256xf32>, vector<8x256xf32>, vector<8x256xf32>, vector<8x256xf32>, vector<8x256xf32>, vector<8x256xf32>, vector<8x256xf32>, vector<8x256xf32>, vector<8x256xf32>, vector<8x256xf32>, vector<8x256xf32>, vector<8x256xf32>, vector<8x256xf32>, vector<8x256xf32>, vector<8x256xf32> -> vector<128x256xf32>
    %61 = arith.mulf %59, %0 : vector<128x256xf32>
    %62 = arith.truncf %61 : vector<128x256xf32> to vector<128x256xbf16>
    %63 = arith.mulf %60, %0 : vector<128x256xf32>
    %64 = arith.truncf %63 : vector<128x256xf32> to vector<128x256xbf16>
    %65 = arith.truncf %56 : vector<8x256xf32> to vector<8x256xbf16>
    %cst_35 = arith.constant dense<0.000000e+00> : vector<8x128xf32>
    %66 = tpu.matmul %65, %62, %cst_35 {dimension_numbers = #tpu.dot_dimension_numbers<[1], [1], [0], [0], [0, 0, 1, 0], [], []>} : vector<8x256xbf16>, vector<128x256xbf16>, vector<8x128xf32> -> vector<8x128xf32>
    %67 = arith.addf %49, %66 : vector<8x128xf32>
    %cst_36 = arith.constant dense<0xFF800000> : vector<8xf32>
    %68 = vector.multi_reduction <maximumf>, %67, %cst_36 [1] : vector<8x128xf32> to vector<8xf32>
    %69 = vector.shape_cast %68 : vector<8xf32> to vector<8x1xf32>
    %70 = vector.broadcast %69 : vector<8x1xf32> to vector<8x128xf32>
    %71 = arith.subf %67, %70 : vector<8x128xf32>
    %72 = math.exp %71 : vector<8x128xf32>
    %cst_37 = arith.constant dense<0.000000e+00> : vector<8x16xf32>
    %73 = tpu.matmul %72, %1, %cst_37 {dimension_numbers = #tpu.dot_dimension_numbers<[1], [0], [0], [1], [0, 0, 1, 1], [], []>} : vector<8x128xf32>, vector<128x16xf32>, vector<8x16xf32> -> vector<8x16xf32>
    %cst_38 = arith.constant dense<0.000000e+00> : vector<8x128xf32>
    %74 = tpu.matmul %73, %1, %cst_38 {dimension_numbers = #tpu.dot_dimension_numbers<[1], [1], [0], [0], [0, 0, 1, 0], [], []>} : vector<8x16xf32>, vector<128x16xf32>, vector<8x128xf32> -> vector<8x128xf32>
    %75 = tpu.reciprocal %74 {approx = true} : vector<8x128xf32> -> vector<8x128xf32>
    %76 = arith.mulf %72, %75 : vector<8x128xf32>
    %77 = arith.truncf %76 : vector<8x128xf32> to vector<8x128xbf16>
    %cst_39 = arith.constant dense<0.000000e+00> : vector<8x256xf32>
    %78 = tpu.matmul %77, %64, %cst_39 {dimension_numbers = #tpu.dot_dimension_numbers<[1], [0], [0], [1], [0, 0, 1, 1], [], []>} : vector<8x128xbf16>, vector<128x256xbf16>, vector<8x256xf32> -> vector<8x256xf32>
    %79 = arith.addf %78, %48 : vector<8x256xf32>
    %c0_40 = arith.constant 0 : index
    %c0_41 = arith.constant 0 : index
    %80 = vector.load %arg13[%c0_40, %c0_41] : memref<8x256xf32, #tpu.memory_space<vmem>>, vector<8x256xf32>
    tpu.vector_store %arg13[%c0_40, %c0_41], %79 {strides = array<i32>} : memref<8x256xf32, #tpu.memory_space<vmem>>, vector<8x256xf32>,
    return
  }
}

</mosaic_0001>

<bundles_post_ra>
// kernel: relation_neck_forward.2
= control target key start
LH: loop header
LB: loop body
LE: loop exit
PB: predicated region body
PF: predicated region fallthrough
CT: control target
= control target key end

     0   :  { %vm23_vm0 = vcmask 1043456   ;;  %vm19_vm1 = vcmask 31744   ;;  %v482_v2 = vmov 0   ;;  %v483_v15 = vmov 683565275   ;;  %s618_s0 = inlined_call_operand.vmem [shape: f32[4,64], index: 0, kind: input, shape index: {}]   ;;  %s619_s1 = inlined_call_operand.vmem [shape: f32[8,4], index: 1, kind: input, shape index: {}]   ;;  %s620_s3 = inlined_call_operand.vmem [shape: f32[32,1], index: 3, kind: input, shape index: {}]   ;;  %s621_s2 = inlined_call_operand.vmem [shape: f32[32,16], index: 2, kind: input, shape index: {}]   ;;  %s622_s4 = inlined_call_operand.vmem [shape: f32[32,64], index: 4, kind: output, shape index: {}]  }
   0x1   :  { %v18_v0 = vld [vmem:[%s618_s0] sm:$0xf]  ;;  %473 = vset.pattern.permute.xlu1 %v482_v2  ;;  %472 = vset.pattern.permute.xlu0 %v482_v2  ;;  %v484_v17 = vmov 2475754826   ;;  %v485_v20 = vmov 2131351028  }
   0x2   :  { %v17_v1 = vld [vmem:[%s619_s1] sm:$0xff]  ;;  %447 = vmatpush.msk.msra.mxu0 %vm23_vm0, %v18_v0  ;;  %v486_v23 = vmov 2102212464   ;;  %v487_v26 = vmov 920167782  }
   0x3   :  { %448 = vmatmul.msk.f32.vlgmr.msra.gmra.mxu0 %vm19_vm1, %v17_v1  ;;  %v488_v29 = vmov 1326507024  }
  0x80   :  { %v522_v3 = vpop.f32.mrf.mxu0 }
  0x81   :  { %v50_v4 = vand.u32 2139095040, %v522_v3  ;;  %v47_v7 = vand.u32 2147483647, %v522_v3  ;;  %vm49_vm14 = vcmp.lt.s32.totalorder %v522_v3, 0 }
  0x83   :  { %v51_v5 = vshrl.u32 %v50_v4, 23  ;;  %v54_v9 = vand.u32 8388607, %v47_v7  ;;  %vm48_vm15 = vcmp.le.f32.partialorder %v47_v7, 0.7853982 }
  0x85   :  { %v449_v6 = vadd.s32 4294967169, %v51_v5  ;;  %v55_v13 = vor.u32 8388608, %v54_v9 }
  0x87   :  { %v57_v8 = vadd.s32 1, %v449_v6  ;;  %v539_v36 = vshll.u32 %v55_v13, 8 }
  0x89   :  { %vm58_vm2 = vcmp.gt.s32.totalorder %v57_v8, 0  ;;  %v96_v45 = vand.u32 65535, %v539_v36  ;;  %v97_v46 = vshrl.u32 %v539_v36, 16 }
  0x8a   :  { %v59_v10 = vsel %vm58_vm2, %v57_v8, 0 }
  0x8b   :  { %v61_v11 = vand.u32 31, %v59_v10  ;;  %v530_v14 = vshrl.u32 %v59_v10, 5 }
  0x8d   :  { %v528_v12 = vsub.s32 32, %v61_v11  ;;  %v64_v16 = vshll.u32 %v483_v15, %v61_v11  ;;  %v67_v18 = vshll.u32 %v484_v17, %v61_v11  ;;  %v70_v22 = vshll.u32 %v485_v20, %v61_v11 }
  0x8e   :  { %v73_v25 = vshll.u32 %v486_v23, %v61_v11  ;;  %v76_v28 = vshll.u32 %v487_v26, %v61_v11  ;;  %vm79_vm3 = vcmp.lt.s32.totalorder %v530_v14, 1  ;;  %vm82_vm4 = vcmp.lt.s32.totalorder %v530_v14, 4 }
  0x8f   :  { %v65_v19 = vshrl.u32 %v484_v17, %v528_v12  ;;  %v68_v21 = vshrl.u32 %v485_v20, %v528_v12  ;;  %v71_v24 = vshrl.u32 %v486_v23, %v528_v12  ;;  %v74_v27 = vshrl.u32 %v487_v26, %v528_v12 }
  0x90   :  { %v77_v30 = vshrl.u32 %v488_v29, %v528_v12  ;;  %vm81_vm5 = vcmp.lt.s32.totalorder %v530_v14, 3  ;;  %vm80_vm6 = vcmp.lt.s32.totalorder %v530_v14, 2  ;;  %v63_v10 = vshrl.u32 %v483_v15, %v528_v12 }
  0x91   :  { %v66_v31 = vor.u32 %v65_v19, %v64_v16  ;;  %v69_v32 = vor.u32 %v68_v21, %v67_v18  ;;  %v72_v33 = vor.u32 %v71_v24, %v70_v22  ;;  %v75_v34 = vor.u32 %v74_v27, %v73_v25 }
  0x92   :  { %v78_v35 = vor.u32 %v77_v30, %v76_v28 }
  0x93   :  { %v87_v37 = vsel %vm79_vm3, %v66_v31, %v69_v32  ;;  %v91_v38 = vsel %vm79_vm3, %v69_v32, %v72_v33  ;;  %v88_v39 = vsel %vm82_vm4, %v75_v34, 920167782  ;;  %v84_v6 = vsel %vm82_vm4, %v72_v33, 2102212464 }
  0x94   :  { %v92_v40 = vsel %vm82_vm4, %v78_v35, 1326507024  ;;  %v89_v41 = vsel %vm81_vm5, %v72_v33, %v88_v39  ;;  %v83_v19 = vsel %vm79_vm3, %v63_v10, %v66_v31  ;;  %v85_v20 = vsel %vm81_vm5, %v69_v32, %v84_v6 }
  0x95   :  { %v93_v42 = vsel %vm81_vm5, %v75_v34, %v92_v40  ;;  %v90_v43 = vsel %vm80_vm6, %v87_v37, %v89_v41  ;;  %v86_v12 = vsel %vm80_vm6, %v83_v19, %v85_v20 }
  0x96   :  { %v94_v44 = vsel %vm80_vm6, %v91_v38, %v93_v42  ;;  %v120_v49 = vand.u32 65535, %v90_v43  ;;  %v121_v50 = vshrl.u32 %v90_v43, 16  ;;  %v140_v27 = vmul.u32 %v539_v36, %v86_v12 }
  0x97   :  { %v98_v47 = vand.u32 65535, %v94_v44  ;;  %v99_v48 = vshrl.u32 %v94_v44, 16  ;;  %vm190_vm6 = vweird.f32 %v522_v3 }
  0x98   :  { %v123_v53 = vmul.u32 %v121_v50, %v96_v45  ;;  %v124_v54 = vmul.u32 %v120_v49, %v97_v46  ;;  %v122_v58 = vmul.u32 %v120_v49, %v96_v45  ;;  %v125_v62 = vmul.u32 %v121_v50, %v97_v46  ;;  %v362_v50 = vld [vmem:[%s620_s3 + $0x10] sm:$0xff] }
  0x99   :  { %v101_v51 = vmul.u32 %v99_v48, %v96_v45  ;;  %v102_v52 = vmul.u32 %v98_v47, %v97_v46  ;;  %v100_v55 = vmul.u32 %v98_v47, %v96_v45  ;;  %v103_v57 = vmul.u32 %v99_v48, %v97_v46  ;;  %376 = vperm.xlu1 %473, %v362_v50  }
  0x9a   :  { %v126_v59 = vshll.u32 %v123_v53, 16  ;;  %v128_v0 = vshll.u32 %v124_v54, 16  ;;  %v127_v17 = vshrl.u32 %v123_v53, 16  ;;  %v129_v23 = vshrl.u32 %v124_v54, 16 }
  0x9b   :  { %v104_v56 = vshll.u32 %v101_v51, 16  ;;  %v106_v60 = vshll.u32 %v102_v52, 16  ;;  %v105_v11 = vshrl.u32 %v101_v51, 16  ;;  %v107_v21 = vshrl.u32 %v102_v52, 16  ;;  %v360_v51 = vld [vmem:[%s620_s3] sm:$0xff] }
  0x9c   :  { %vm130_vm8 = vc.u32 %v122_v58, %v126_v59  ;;  %v132_v1 = vadd.s32 %v126_v59, %v122_v58  ;;  %366 = vperm.xlu0 %472, %v360_v51   ;;  %v361_v58 = vld [vmem:[%s620_s3 + $0x8] sm:$0xff] }
  0x9d   :  { %vm108_vm7 = vc.u32 %v100_v55, %v104_v56  ;;  %v110_v61 = vadd.s32 %v104_v56, %v100_v55  ;;  %v131_v5 = vsel %vm130_vm8, 1, %v482_v2  ;;  %vm438_vm8 = vcmask 523264  }
  0x9e   :  { %v109_v63 = vsel %vm108_vm7, 1, %v482_v2  ;;  %v133_v9 = vadd.s32 %v131_v5, %v125_v62  ;;  %vm134_vm10 = vc.u32 %v132_v1, %v128_v0  ;;  %v136_v26 = vadd.s32 %v132_v1, %v128_v0 }
  0x9f   :  { %v111_v4 = vadd.s32 %v109_v63, %v103_v57  ;;  %vm112_vm9 = vc.u32 %v110_v61, %v106_v60  ;;  %v135_v16 = vsel %vm134_vm10, 1, %v482_v2  ;;  %v363_v57 = vld [vmem:[%s620_s3 + $0x18] sm:$0xff]  ;;  %vm384_vm7 = vcmask 130048  }
  0xa0   :  { %v113_v8 = vsel %vm112_vm9, 1, %v482_v2  ;;  %v137_v18 = vadd.s32 %v135_v16, %v133_v9 }
  0xa1   :  { %v115_v13 = vadd.s32 %v113_v8, %v111_v4  ;;  %381 = vperm.xlu1 %473, %v363_v57  }
  0xa2   :  { %v138_v24 = vadd.s32 %v137_v18, %v127_v17 }
  0xa3   :  { %v116_v22 = vadd.s32 %v115_v13, %v105_v11 }
  0xa4   :  { %v139_v15 = vadd.s32 %v138_v24, %v129_v23  ;;  %371 = vperm.xlu0 %472, %v361_v58  }
  0xa5   :  { %v117_v25 = vadd.s32 %v116_v22, %v107_v21 }
  0xa6   :  { %v143_v2 = vadd.s32 1, %v139_v15 }
  0xa7   :  { %vm142_vm11 = vc.u32 %v117_v25, %v136_v26  ;;  %v141_v14 = vadd.s32 %v136_v26, %v117_v25 }
  0xa8   :  { %v144_v28 = vsel %vm142_vm11, %v143_v2, %v139_v15  ;;  %v356_v15 = vld [vmem:[%s621_s2] sm:$0xff]  ;;  %v357_v2 = vld [vmem:[%s621_s2 + $0x8] sm:$0xff] }
  0xa9   :  { %v145_v29 = vadd.s32 %v144_v28, %v140_v27  ;;  %v359_v27 = vld [vmem:[%s621_s2 + $0x18] sm:$0xff] }
  0xab   :  { %v146_v30 = vadd.s32 536870912, %v145_v29 }
  0xad   :  { %v147_v31 = vshrl.u32 %v146_v30, 30 }
  0xaf   :  { %v148_v33 = vshll.u32 %v147_v31, 30  ;;  %v171_v54 = vsub.s32 4, %v147_v31 }
  0xb1   :  { %v149_v32 = vsub.s32 %v145_v29, %v148_v33  ;;  %v172_v61 = vsel %vm49_vm14, %v171_v54, %v147_v31 }
  0xb2   :  { %v174_v63 = vsel %vm48_vm15, 0, %v172_v61 }
  0xb3   :  { %vm150_vm12 = vcmp.lt.s32.totalorder %v149_v32, 0  ;;  %v151_v34 = vsub.s32 0, %v149_v32  ;;  %v191_v6 = vadd.s32 3, %v174_v63  ;;  %v346_v13 = vand.u32 3, %v174_v63 }
  0xb5   :  { %v152_v35 = vsel %vm150_vm12, %v151_v34, %v149_v32  ;;  %v192_v16 = vand.u32 3, %v191_v6  ;;  %vm347_vm0 = vcmp.lt.s32.totalorder %v346_v13, 2  ;;  %vm348_vm1 = vcmp.eq.s32.totalorder %v346_v13, 0 }
  0xb6   :  { %v153_v37 = vclz %v152_v35  ;;  %vm351_vm2 = vcmp.eq.s32.totalorder %v346_v13, 2 }
  0xb7   :  { %vm193_vm3 = vcmp.lt.s32.totalorder %v192_v16, 2  ;;  %vm194_vm4 = vcmp.eq.s32.totalorder %v192_v16, 0  ;;  %vm197_vm5 = vcmp.eq.s32.totalorder %v192_v16, 2 }
  0xb8   :  { %v450_v38 = vadd.s32 4294967294, %v153_v37 }
  0xba   :  { %vm451_vm13 = vcmp.lt.s32.totalorder %v450_v38, 0 }
  0xbb   :  { %v156_v39 = vsel %vm451_vm13, 0, %v450_v38 }
  0xbc   :  { %v157_v40 = vsub.s32 32, %v156_v39  ;;  %v161_v41 = vsub.s32 4294967266, %v156_v39  ;;  %v158_v42 = vshll.u32 %v149_v32, %v156_v39 }
  0xbe   :  { %v159_v43 = vshrl.u32 %v141_v14, %v157_v40  ;;  %v162_v44 = vadd.s32 127, %v161_v41 }
  0xc0   :  { %v160_v36 = vor.u32 %v159_v43, %v158_v42  ;;  %v163_v45 = vshll.u32 %v162_v44, 23 }
  0xc2   :  { %v164_v46 = vor.u32 4788187, %v163_v45  ;;  %v167_v48 = vcvt.s32.f32 %v160_v36 }
  0xc4   :  { %v165_v47 = vand.u32 2147483647, %v164_v46 }
  0xc6   :  { %v168_v49 = vmul.f32 %v167_v48, %v165_v47 }
  0xc8   :  { %v169_v52 = vxor.u32 2147483648, %v168_v49 }
  0xca   :  { %v170_v53 = vsel %vm49_vm14, %v169_v52, %v168_v49 }
  0xcb   :  { %v173_v55 = vsel %vm48_vm15, %v522_v3, %v170_v53  ;;  %v358_v3 = vld [vmem:[%s621_s2 + $0x10] sm:$0xff] }
  0xcc   :  { %v175_v56 = vmul.f32 %v173_v55, %v173_v55 }
  0xce   :  { %v183_v59 = vmul.f32 -0.00019511016, %v175_v56  ;;  %v176_v60 = vmul.f32 -0.001358992, %v175_v56 }
  0xd0   :  { %v184_v62 = vadd.f32 0.008332121, %v183_v59  ;;  %v177_v7 = vadd.f32 0.041655596, %v176_v60 }
  0xd2   :  { %v185_v0 = vmul.f32 %v184_v62, %v175_v56  ;;  %v178_v1 = vmul.f32 %v177_v7, %v175_v56 }
  0xd4   :  { %v186_v4 = vadd.f32 -0.16666654, %v185_v0  ;;  %v179_v5 = vadd.f32 -0.4999988, %v178_v1 }
  0xd6   :  { %v187_v8 = vmul.f32 %v186_v4, %v175_v56  ;;  %v180_v9 = vmul.f32 %v179_v5, %v175_v56 }
  0xd8   :  { %v188_v10 = vadd.f32 1.0, %v187_v8  ;;  %v181_v11 = vadd.f32 1.0, %v180_v9 }
  0xda   :  { %v189_v17 = vmul.f32 %v188_v10, %v173_v55  ;;  %v198_v18 = vxor.u32 2147483648, %v181_v11 }
  0xdc   :  { %v195_v19 = vxor.u32 2147483648, %v189_v17  ;;  %v353_v21 = vsel %vm351_vm2, %v198_v18, %v189_v17  ;;  %v199_v23 = vsel %vm197_vm5, %v198_v18, %v189_v17 }
  0xde   :  { %v350_v20 = vsel %vm348_vm1, %v181_v11, %v195_v19  ;;  %v196_v22 = vsel %vm194_vm4, %v181_v11, %v195_v19 }
  0xdf   :  { %v354_v24 = vsel %vm347_vm0, %v350_v20, %v353_v21  ;;  %v200_v25 = vsel %vm193_vm3, %v196_v22, %v199_v23 }
  0xe0   :  { %v355_v26 = vsel %vm190_vm6, nan, %v354_v24  ;;  %v201_v12 = vsel %vm190_vm6, nan, %v200_v25 }
  0xe1   :  { %411 = vmatpush.msrb.mxu0 %v355_v26  ;;  %459 = vmatpush.msra.mxu1 %v355_v26 }
  0xe2   :  { %460 = vmatpush.msra.mxu2 %v355_v26  ;;  %461 = vmatpush.msra.mxu3 %v355_v26 }
  0xe3   :  { %412 = vmatpush.msrb.mxu0 %v201_v12  ;;  %462 = vmatpush.msra.mxu1 %v201_v12 }
  0xe4   :  { %463 = vmatpush.msra.mxu2 %v201_v12  ;;  %464 = vmatpush.msra.mxu3 %v201_v12 }
  0xe5   :  { %455 = vmatmul.msk.f32.vlgmr.msrb.gmra.mxu0 %vm384_vm7, %v356_v15  ;;  %456 = vmatmul.msk.f32.vlgmr.msra.gmra.mxu1 %vm384_vm7, %v357_v2 }
  0xe6   :  { %457 = vmatmul.msk.f32.vlgmr.msra.gmra.mxu2 %vm384_vm7, %v358_v3  ;;  %458 = vmatmul.msk.f32.vlgmr.msra.gmra.mxu3 %vm384_vm7, %v359_v27 }
 0x10b   :  { %v377_v29 = vpop.permute.xlu1 %376 }
 0x10e   :  { %v367_v28 = vpop.permute.xlu0 %366 }
 0x113   :  { %v382_v38 = vpop.permute.xlu1 %381 }
 0x116   :  { %v372_v30 = vpop.permute.xlu0 %371 }
 0x162   :  { %v414_v31 = vpop.f32.mrf.mxu0  ;;  %v417_v33 = vpop.f32.mrf.mxu1 }
 0x163   :  { %v415_v32 = vadd.f32 %v414_v31, %v367_v28  ;;  %v418_v34 = vadd.f32 %v417_v33, %v372_v30 }
 0x165   :  { %v426_v35 = vmax.f32 %v415_v32, 1e-06  ;;  %v427_v37 = vmax.f32 %v418_v34, 1e-06 }
 0x167   :  { %474 = vlog2.f32 %v426_v35 }
 0x168   :  { %476 = vlog2.f32 %v427_v37 }
 0x169   :  { %v420_v39 = vpop.f32.mrf.mxu2  ;;  %v423_v14 = vpop.f32.mrf.mxu3 }
 0x16a   :  { %v421_v40 = vadd.f32 %v420_v39, %v377_v29  ;;  %v424_v41 = vadd.f32 %v423_v14, %v382_v38 }
 0x16c   :  { %v428_v42 = vmax.f32 %v421_v40, 1e-06  ;;  %v429_v43 = vmax.f32 %v424_v41, 1e-06 }
 0x16d   :  { %v475_v44 = vpop.eup %474 }
 0x16e   :  { %v477_v36 = vpop.eup %476  ;;  %v431_v45 = vmul.f32 0.6931472, %v475_v44  ;;  %478 = vlog2.f32 %v428_v42 }
 0x16f   :  { %v433_v46 = vmul.f32 0.6931472, %v477_v36  ;;  %480 = vlog2.f32 %v429_v43 }
 0x170   :  { %439 = vst.msk [vmem:[%s622_s4] sm:$0xff] %vm438_vm8, %v431_v45 }
 0x171   :  { %440 = vst.msk [vmem:[%s622_s4 + $0x8] sm:$0xff] %vm438_vm8, %v433_v46 }
 0x174   :  { %v479_v47 = vpop.eup %478 }
 0x175   :  { %v481_v48 = vpop.eup %480  ;;  %v435_v49 = vmul.f32 0.6931472, %v479_v47 }
 0x176   :  { %v437_v50 = vmul.f32 0.6931472, %v481_v48 }
 0x177   :  { %441 = vst.msk [vmem:[%s622_s4 + $0x10] sm:$0xff] %vm438_vm8, %v435_v49 }
 0x178   :  { %442 = vst.msk [vmem:[%s622_s4 + $0x18] sm:$0xff] %vm438_vm8, %v437_v50 }

// kernel: relation_neck_forward.3
= control target key start
LH: loop header
LB: loop body
LE: loop exit
PB: predicated region body
PF: predicated region fallthrough
CT: control target
= control target key end

     0   :  { %s6286_s0 = inlined_call_operand.vmem [shape: bf16[8,256], index: 0, kind: input, shape index: {}]   ;;  %s6287_s1 = inlined_call_operand.vmem [shape: f32[8,128], index: 1, kind: input, shape index: {}]   ;;  %s6288_s2 = inlined_call_operand.vmem [shape: f32[8,128], index: 2, kind: input, shape index: {}]   ;;  %s6289_s3 = inlined_call_operand.vmem [shape: f32[128,256], index: 3, kind: input, shape index: {}]   ;;  %s6290_s4 = inlined_call_operand.vmem [shape: f32[128,16], index: 4, kind: input, shape index: {}]   ;;  %s6291_s5 = inlined_call_operand.vmem [shape: bf16[256,256], index: 5, kind: input, shape index: {}]   ;;  %s6292_s6 = inlined_call_operand.vmem [shape: f32[1,256], index: 6, kind: input, shape index: {}]   ;;  %s6293_s7 = inlined_call_operand.vmem [shape: bf16[256,768], index: 7, kind: input, shape index: {}]   ;;  %s6294_s8 = inlined_call_operand.vmem [shape: f32[1,768], index: 8, kind: input, shape index: {}]   ;;  %s6295_s9 = inlined_call_operand.vmem [shape: bf16[256,256], index: 9, kind: input, shape index: {}]   ;;  %s6296_s10 = inlined_call_operand.vmem [shape: f32[1,256], index: 10, kind: input, shape index: {}]   ;;  %s6297_s11 = inlined_call_operand.vmem [shape: bf16[256,768], index: 11, kind: input, shape index: {}]   ;;  %s6298_s12 = inlined_call_operand.vmem [shape: f32[1,768], index: 12, kind: input, shape index: {}]   ;;  %s6299_s13 = inlined_call_operand.hbm [shape: f32[8,256], index: 13, kind: output, shape index: {}]  }
   0x1   :  { %v2634_v0 = vld [vmem:[%s6291_s5 + $0x70] sm:$0xf]  ;;  %v3649_v1 = vld [vmem:[%s6291_s5 + $0x74] sm:$0xf0]  ;;  %v3648_v5 = vld [vmem:[%s6291_s5 + $0x74] sm:$0xf] }
   0x2   :  { %v2698_v2 = vld [vmem:[%s6291_s5 + $0xf0] sm:$0xf]  ;;  %v2635_v3 = vor.u32 %v3649_v1, %v2634_v0  ;;  %v3665_v4 = vld [vmem:[%s6291_s5 + $0xf4] sm:$0xf0]  ;;  %v2636_v6 = vld [vmem:[%s6291_s5 + $0x78] sm:$0xf0] }
   0x3   :  { %v2699_v7 = vor.u32 %v3665_v4, %v2698_v2  ;;  %v2639_v8 = vor.u32 %v3648_v5, %v2636_v6  ;;  %v3664_v9 = vld [vmem:[%s6291_s5 + $0xf4] sm:$0xf]  ;;  %v2700_v10 = vld [vmem:[%s6291_s5 + $0xf8] sm:$0xf0]  ;;  %v2626_v11 = vld [vmem:[%s6291_s5 + $0x60] sm:$0xf] }
   0x4   :  { %299 = vmatpush.bf16.msra.mxu0 %v2635_v3  ;;  %v2703_v12 = vor.u32 %v3664_v9, %v2700_v10  ;;  %v3647_v13 = vld [vmem:[%s6291_s5 + $0x64] sm:$0xf0]  ;;  %v2690_v14 = vld [vmem:[%s6291_s5 + $0xe0] sm:$0xf]  ;;  %v3646_v18 = vld [vmem:[%s6291_s5 + $0x64] sm:$0xf] }
   0x5   :  { %v3663_v15 = vld [vmem:[%s6291_s5 + $0xe4] sm:$0xf0]  ;;  %312 = vmatpush.bf16.msra.mxu1 %v2699_v7  ;;  %325 = vmatpush.bf16.msra.mxu2 %v2639_v8  ;;  %v2627_v16 = vor.u32 %v3647_v13, %v2626_v11  ;;  %v2628_v19 = vld [vmem:[%s6291_s5 + $0x68] sm:$0xf0]  ;;  %v3662_v20 = vld [vmem:[%s6291_s5 + $0xe4] sm:$0xf] }
   0x6   :  { %v2691_v17 = vor.u32 %v3663_v15, %v2690_v14  ;;  %338 = vmatpush.bf16.msra.mxu3 %v2703_v12  ;;  %v2631_v21 = vor.u32 %v3646_v18, %v2628_v19  ;;  %v2692_v22 = vld [vmem:[%s6291_s5 + $0xe8] sm:$0xf0]  ;;  %v2618_v23 = vld [vmem:[%s6291_s5 + $0x50] sm:$0xf]  ;;  %v3645_v24 = vld [vmem:[%s6291_s5 + $0x54] sm:$0xf0] }
   0x7   :  { %v2695_v25 = vor.u32 %v3662_v20, %v2692_v22  ;;  %v2682_v26 = vld [vmem:[%s6291_s5 + $0xd0] sm:$0xf]  ;;  %v3661_v27 = vld [vmem:[%s6291_s5 + $0xd4] sm:$0xf0]  ;;  %v3644_v28 = vld [vmem:[%s6291_s5 + $0x54] sm:$0xf]  ;;  %v2619_v29 = vor.u32 %v3645_v24, %v2618_v23 }
   0x8   :  { %300 = vmatpush.bf16.msra.mxu0 %v2627_v16  ;;  %v2620_v30 = vld [vmem:[%s6291_s5 + $0x58] sm:$0xf0]  ;;  %v3660_v31 = vld [vmem:[%s6291_s5 + $0xd4] sm:$0xf]  ;;  %v2683_v33 = vor.u32 %v3661_v27, %v2682_v26  ;;  %v2610_v35 = vld [vmem:[%s6291_s5 + $0x40] sm:$0xf] }
   0x9   :  { %v2684_v32 = vld [vmem:[%s6291_s5 + $0xd8] sm:$0xf0]  ;;  %313 = vmatpush.bf16.msra.mxu1 %v2691_v17  ;;  %326 = vmatpush.bf16.msra.mxu2 %v2631_v21  ;;  %v2623_v34 = vor.u32 %v3644_v28, %v2620_v30  ;;  %v3643_v36 = vld [vmem:[%s6291_s5 + $0x44] sm:$0xf0]  ;;  %v2674_v37 = vld [vmem:[%s6291_s5 + $0xc0] sm:$0xf] }
   0xa   :  { %339 = vmatpush.bf16.msra.mxu3 %v2695_v25  ;;  %v2687_v38 = vor.u32 %v3660_v31, %v2684_v32  ;;  %v3659_v39 = vld [vmem:[%s6291_s5 + $0xc4] sm:$0xf0]  ;;  %v3642_v40 = vld [vmem:[%s6291_s5 + $0x44] sm:$0xf]  ;;  %v2612_v41 = vld [vmem:[%s6291_s5 + $0x48] sm:$0xf0]  ;;  %v2611_v44 = vor.u32 %v3643_v36, %v2610_v35 }
   0xb   :  { %v3658_v42 = vld [vmem:[%s6291_s5 + $0xc4] sm:$0xf]  ;;  %v2676_v43 = vld [vmem:[%s6291_s5 + $0xc8] sm:$0xf0]  ;;  %v2675_v45 = vor.u32 %v3659_v39, %v2674_v37  ;;  %v2615_v46 = vor.u32 %v3642_v40, %v2612_v41  ;;  %v2602_v47 = vld [vmem:[%s6291_s5 + $0x30] sm:$0xf] }
   0xc   :  { %301 = vmatpush.bf16.msra.mxu0 %v2619_v29  ;;  %v3641_v48 = vld [vmem:[%s6291_s5 + $0x34] sm:$0xf0]  ;;  %v2666_v49 = vld [vmem:[%s6291_s5 + $0xb0] sm:$0xf]  ;;  %v2679_v50 = vor.u32 %v3658_v42, %v2676_v43  ;;  %v3640_v52 = vld [vmem:[%s6291_s5 + $0x34] sm:$0xf] }
   0xd   :  { %314 = vmatpush.bf16.msra.mxu1 %v2683_v33  ;;  %327 = vmatpush.bf16.msra.mxu2 %v2623_v34  ;;  %v3657_v51 = vld [vmem:[%s6291_s5 + $0xb4] sm:$0xf0]  ;;  %v2604_v53 = vld [vmem:[%s6291_s5 + $0x38] sm:$0xf0]  ;;  %v3656_v54 = vld [vmem:[%s6291_s5 + $0xb4] sm:$0xf]  ;;  %v2603_v56 = vor.u32 %v3641_v48, %v2602_v47 }
   0xe   :  { %340 = vmatpush.bf16.msra.mxu3 %v2687_v38  ;;  %v2668_v55 = vld [vmem:[%s6291_s5 + $0xb8] sm:$0xf0]  ;;  %v2667_v57 = vor.u32 %v3657_v51, %v2666_v49  ;;  %v2607_v58 = vor.u32 %v3640_v52, %v2604_v53  ;;  %v2594_v59 = vld [vmem:[%s6291_s5 + $0x20] sm:$0xf]  ;;  %v3639_v60 = vld [vmem:[%s6291_s5 + $0x24] sm:$0xf0] }
   0xf   :  { %v2658_v61 = vld [vmem:[%s6291_s5 + $0xa0] sm:$0xf]  ;;  %v2671_v62 = vor.u32 %v3656_v54, %v2668_v55  ;;  %v3655_v63 = vld [vmem:[%s6291_s5 + $0xa4] sm:$0xf0]  ;;  %v3638_v0 = vld [vmem:[%s6291_s5 + $0x24] sm:$0xf]  ;;  %v2595_v4 = vor.u32 %v3639_v60, %v2594_v59 }
  0x10   :  { %302 = vmatpush.bf16.msra.mxu0 %v2611_v44  ;;  %v2596_v1 = vld [vmem:[%s6291_s5 + $0x28] sm:$0xf0]  ;;  %v3654_v2 = vld [vmem:[%s6291_s5 + $0xa4] sm:$0xf]  ;;  %v2659_v5 = vor.u32 %v3655_v63, %v2658_v61  ;;  %v2586_v7 = vld [vmem:[%s6291_s5 + $0x10] sm:$0xf] }
  0x11   :  { %315 = vmatpush.bf16.msra.mxu1 %v2675_v45  ;;  %328 = vmatpush.bf16.msra.mxu2 %v2615_v46  ;;  %v2660_v3 = vld [vmem:[%s6291_s5 + $0xa8] sm:$0xf0]  ;;  %v2599_v6 = vor.u32 %v3638_v0, %v2596_v1  ;;  %v3637_v8 = vld [vmem:[%s6291_s5 + $0x14] sm:$0xf0]  ;;  %v2650_v9 = vld [vmem:[%s6291_s5 + $0x90] sm:$0xf] }
  0x12   :  { %341 = vmatpush.bf16.msra.mxu3 %v2679_v50  ;;  %v2663_v10 = vor.u32 %v3654_v2, %v2660_v3  ;;  %v3653_v11 = vld [vmem:[%s6291_s5 + $0x94] sm:$0xf0]  ;;  %v3636_v12 = vld [vmem:[%s6291_s5 + $0x14] sm:$0xf]  ;;  %v2588_v13 = vld [vmem:[%s6291_s5 + $0x18] sm:$0xf0]  ;;  %v2587_v16 = vor.u32 %v3637_v8, %v2586_v7 }
  0x13   :  { %v3652_v14 = vld [vmem:[%s6291_s5 + $0x94] sm:$0xf]  ;;  %v2652_v15 = vld [vmem:[%s6291_s5 + $0x98] sm:$0xf0]  ;;  %v2578_v17 = vld [vmem:[%s6291_s5] sm:$0xf]  ;;  %v2651_v19 = vor.u32 %v3653_v11, %v2650_v9  ;;  %v2591_v20 = vor.u32 %v3636_v12, %v2588_v13 }
  0x14   :  { %303 = vmatpush.bf16.msra.mxu0 %v2603_v56  ;;  %v93_v18 = vld [vmem:[%s6286_s0] sm:$0xff]  ;;  %v3635_v21 = vld [vmem:[%s6291_s5 + $0x4] sm:$0xf0]  ;;  %v2655_v24 = vor.u32 %v3652_v14, %v2652_v15  ;;  %v2580_v26 = vld [vmem:[%s6291_s5 + $0x8] sm:$0xf0] }
  0x15   :  { %316 = vmatpush.bf16.msra.mxu1 %v2667_v57  ;;  %329 = vmatpush.bf16.msra.mxu2 %v2607_v58  ;;  %v2642_v22 = vld [vmem:[%s6291_s5 + $0x80] sm:$0xf]  ;;  %v3651_v23 = vld [vmem:[%s6291_s5 + $0x84] sm:$0xf0]  ;;  %v3634_v25 = vld [vmem:[%s6291_s5 + $0x4] sm:$0xf]  ;;  %v133_v29 = vunpack.c.l.b16 %v93_v18  ;;  %v2579_v32 = vor.u32 %v3635_v21, %v2578_v17  ;;  %v134_v33 = vunpack.c.h.b16 %v93_v18 }
  0x16   :  { %342 = vmatpush.bf16.msra.mxu3 %v2671_v62  ;;  %v3650_v27 = vld [vmem:[%s6291_s5 + $0x84] sm:$0xf]  ;;  %v2644_v28 = vld [vmem:[%s6291_s5 + $0x88] sm:$0xf0]  ;;  %v2874_v30 = vld [vmem:[%s6293_s7 + $0x150] sm:$0xf]  ;;  %v2643_v36 = vor.u32 %v3651_v23, %v2642_v22  ;;  %v2583_v37 = vor.u32 %v3634_v25, %v2580_v26 }
  0x17   :  { %v3711_v31 = vld [vmem:[%s6293_s7 + $0x164] sm:$0xf0]  ;;  %v3708_v34 = vld [vmem:[%s6293_s7 + $0x154] sm:$0xf]  ;;  %v2876_v35 = vld [vmem:[%s6293_s7 + $0x168] sm:$0xf0]  ;;  %v2647_v38 = vor.u32 %v3650_v27, %v2644_v28  ;;  %v135_v43 = vpack.c.b16 %v133_v29, %v133_v29  ;;  %v136_v48 = vpack.c.b16 %v134_v33, %v134_v33 }
  0x18   :  { %304 = vmatpush.bf16.msra.mxu0 %v2595_v4  ;;  %v2875_v39 = vor.u32 %v3711_v31, %v2874_v30  ;;  %v2850_v40 = vld [vmem:[%s6293_s7 + $0x120] sm:$0xf]  ;;  %v3066_v41 = vld [vmem:[%s6293_s7 + $0x2d0] sm:$0xf]  ;;  %v3759_v42 = vld [vmem:[%s6293_s7 + $0x2e4] sm:$0xf0]  ;;  %v2879_v44 = vor.u32 %v3708_v34, %v2876_v35 }
  0x19   :  { %317 = vmatpush.bf16.msra.mxu1 %v2659_v5  ;;  %330 = vmatpush.bf16.msra.mxu2 %v2599_v6  ;;  %v3705_v45 = vld [vmem:[%s6293_s7 + $0x134] sm:$0xf0]  ;;  %v3756_v46 = vld [vmem:[%s6293_s7 + $0x2d4] sm:$0xf]  ;;  %v3068_v47 = vld [vmem:[%s6293_s7 + $0x2e8] sm:$0xf0]  ;;  %v3067_v51 = vor.u32 %v3759_v42, %v3066_v41 }
  0x1a   :  { %343 = vmatpush.bf16.msra.mxu3 %v2663_v10  ;;  %v3702_v49 = vld [vmem:[%s6293_s7 + $0x124] sm:$0xf]  ;;  %v2852_v50 = vld [vmem:[%s6293_s7 + $0x138] sm:$0xf0]  ;;  %v2851_v52 = vor.u32 %v3705_v45, %v2850_v40  ;;  %v3071_v53 = vor.u32 %v3756_v46, %v3068_v47  ;;  %v2826_v54 = vld [vmem:[%s6293_s7 + $0xf0] sm:$0xf] }
  0x1b   :  { %v3042_v55 = vld [vmem:[%s6293_s7 + $0x2a0] sm:$0xf]  ;;  %v3753_v56 = vld [vmem:[%s6293_s7 + $0x2b4] sm:$0xf0]  ;;  %v2855_v57 = vor.u32 %v3702_v49, %v2852_v50  ;;  %v3699_v58 = vld [vmem:[%s6293_s7 + $0x104] sm:$0xf0] }
  0x1c   :  { %305 = vmatpush.bf16.msra.mxu0 %v2587_v16  ;;  %v3750_v59 = vld [vmem:[%s6293_s7 + $0x2a4] sm:$0xf]  ;;  %v3044_v60 = vld [vmem:[%s6293_s7 + $0x2b8] sm:$0xf0]  ;;  %v3696_v61 = vld [vmem:[%s6293_s7 + $0xf4] sm:$0xf]  ;;  %v3043_v63 = vor.u32 %v3753_v56, %v3042_v55  ;;  %v2827_v0 = vor.u32 %v3699_v58, %v2826_v54 }
  0x1d   :  { %318 = vmatpush.bf16.msra.mxu1 %v2651_v19  ;;  %331 = vmatpush.bf16.msra.mxu2 %v2591_v20  ;;  %v2828_v62 = vld [vmem:[%s6293_s7 + $0x108] sm:$0xf0]  ;;  %v3047_v1 = vor.u32 %v3750_v59, %v3044_v60  ;;  %v2802_v2 = vld [vmem:[%s6293_s7 + $0xc0] sm:$0xf]  ;;  %v3018_v3 = vld [vmem:[%s6293_s7 + $0x270] sm:$0xf] }
  0x1e   :  { %344 = vmatpush.bf16.msra.mxu3 %v2655_v24  ;;  %v3747_v4 = vld [vmem:[%s6293_s7 + $0x284] sm:$0xf0]  ;;  %v2831_v5 = vor.u32 %v3696_v61, %v2828_v62  ;;  %v3693_v6 = vld [vmem:[%s6293_s7 + $0xd4] sm:$0xf0]  ;;  %v3744_v7 = vld [vmem:[%s6293_s7 + $0x274] sm:$0xf] }
  0x1f   :  { %v3020_v8 = vld [vmem:[%s6293_s7 + $0x288] sm:$0xf0]  ;;  %v3690_v9 = vld [vmem:[%s6293_s7 + $0xc4] sm:$0xf]  ;;  %v2804_v10 = vld [vmem:[%s6293_s7 + $0xd8] sm:$0xf0]  ;;  %v3019_v11 = vor.u32 %v3747_v4, %v3018_v3  ;;  %v2803_v12 = vor.u32 %v3693_v6, %v2802_v2 }
  0x20   :  { %306 = vmatpush.bf16.msra.mxu0 %v2579_v32  ;;  %v3023_v13 = vor.u32 %v3744_v7, %v3020_v8  ;;  %v2778_v14 = vld [vmem:[%s6293_s7 + $0x90] sm:$0xf]  ;;  %v2994_v15 = vld [vmem:[%s6293_s7 + $0x240] sm:$0xf]  ;;  %v3741_v16 = vld [vmem:[%s6293_s7 + $0x254] sm:$0xf0]  ;;  %v2807_v17 = vor.u32 %v3690_v9, %v2804_v10 }
  0x21   :  { %319 = vmatpush.bf16.msra.mxu1 %v2643_v36  ;;  %332 = vmatpush.bf16.msra.mxu2 %v2583_v37  ;;  %v3687_v18 = vld [vmem:[%s6293_s7 + $0xa4] sm:$0xf0]  ;;  %v3738_v19 = vld [vmem:[%s6293_s7 + $0x244] sm:$0xf]  ;;  %v2996_v20 = vld [vmem:[%s6293_s7 + $0x258] sm:$0xf0]  ;;  %v2995_v23 = vor.u32 %v3741_v16, %v2994_v15 }
  0x22   :  { %345 = vmatpush.bf16.msra.mxu3 %v2647_v38  ;;  %v3684_v21 = vld [vmem:[%s6293_s7 + $0x94] sm:$0xf]  ;;  %v2780_v22 = vld [vmem:[%s6293_s7 + $0xa8] sm:$0xf0]  ;;  %v2779_v24 = vor.u32 %v3687_v18, %v2778_v14  ;;  %v2999_v25 = vor.u32 %v3738_v19, %v2996_v20  ;;  %v2754_v26 = vld [vmem:[%s6293_s7 + $0x60] sm:$0xf] }
  0x23   :  { %307 = vmatmul.bf16.vlgmr.msra.gmra.mxu0 %v135_v43  ;;  %v2970_v27 = vld [vmem:[%s6293_s7 + $0x210] sm:$0xf]  ;;  %v3735_v28 = vld [vmem:[%s6293_s7 + $0x224] sm:$0xf0]  ;;  %v2783_v29 = vor.u32 %v3684_v21, %v2780_v22  ;;  %v3681_v30 = vld [vmem:[%s6293_s7 + $0x74] sm:$0xf0] }
  0x24   :  { %946 = vmatpush.bf16.msrb.mxu0 %v2875_v39  ;;  %320 = vmatmul.bf16.vlgmr.msra.gmra.mxu1 %v136_v48  ;;  %v3732_v31 = vld [vmem:[%s6293_s7 + $0x214] sm:$0xf]  ;;  %v2972_v32 = vld [vmem:[%s6293_s7 + $0x228] sm:$0xf0]  ;;  %v3678_v33 = vld [vmem:[%s6293_s7 + $0x64] sm:$0xf]  ;;  %v2971_v35 = vor.u32 %v3735_v28, %v2970_v27  ;;  %v2755_v36 = vor.u32 %v3681_v30, %v2754_v26 }
  0x25   :  { %972 = vmatpush.bf16.msrb.mxu2 %v2879_v44  ;;  %346 = vmatmul.bf16.vlgmr.msra.gmra.mxu3 %v136_v48  ;;  %v2756_v34 = vld [vmem:[%s6293_s7 + $0x78] sm:$0xf0]  ;;  %v2975_v37 = vor.u32 %v3732_v31, %v2972_v32  ;;  %v2730_v38 = vld [vmem:[%s6293_s7 + $0x30] sm:$0xf]  ;;  %v2946_v39 = vld [vmem:[%s6293_s7 + $0x1e0] sm:$0xf] }
  0x26   :  { %333 = vmatmul.bf16.vlgmr.msra.gmra.mxu2 %v135_v43  ;;  %959 = vmatpush.bf16.msrb.mxu1 %v3067_v51  ;;  %v3729_v40 = vld [vmem:[%s6293_s7 + $0x1f4] sm:$0xf0]  ;;  %v2759_v41 = vor.u32 %v3678_v33, %v2756_v34  ;;  %v3675_v42 = vld [vmem:[%s6293_s7 + $0x44] sm:$0xf0]  ;;  %v3726_v43 = vld [vmem:[%s6293_s7 + $0x1e4] sm:$0xf] }
  0x27   :  { %985 = vmatpush.bf16.msrb.mxu3 %v3071_v53  ;;  %v2948_v44 = vld [vmem:[%s6293_s7 + $0x1f8] sm:$0xf0]  ;;  %v3672_v45 = vld [vmem:[%s6293_s7 + $0x34] sm:$0xf]  ;;  %v2732_v46 = vld [vmem:[%s6293_s7 + $0x48] sm:$0xf0]  ;;  %v2947_v47 = vor.u32 %v3729_v40, %v2946_v39  ;;  %v2731_v50 = vor.u32 %v3675_v42, %v2730_v38 }
  0x28   :  { %947 = vmatpush.bf16.msrb.mxu0 %v2851_v52  ;;  %v2706_v48 = vld [vmem:[%s6293_s7] sm:$0xf]  ;;  %v3669_v49 = vld [vmem:[%s6293_s7 + $0x14] sm:$0xf0]  ;;  %v2951_v51 = vor.u32 %v3726_v43, %v2948_v44  ;;  %v3666_v52 = vld [vmem:[%s6293_s7 + $0x4] sm:$0xf]  ;;  %v2735_v55 = vor.u32 %v3672_v45, %v2732_v46 }
  0x29   :  { %973 = vmatpush.bf16.msrb.mxu2 %v2855_v57  ;;  %v2922_v53 = vld [vmem:[%s6293_s7 + $0x1b0] sm:$0xf]  ;;  %v3723_v54 = vld [vmem:[%s6293_s7 + $0x1c4] sm:$0xf0]  ;;  %v2708_v56 = vld [vmem:[%s6293_s7 + $0x18] sm:$0xf0] }
  0x2a   :  { %960 = vmatpush.bf16.msrb.mxu1 %v3043_v63  ;;  %v3720_v57 = vld [vmem:[%s6293_s7 + $0x1b4] sm:$0xf]  ;;  %v2924_v58 = vld [vmem:[%s6293_s7 + $0x1c8] sm:$0xf0]  ;;  %v2882_v59 = vld [vmem:[%s6293_s7 + $0x158] sm:$0xf] }
  0x2b   :  { %986 = vmatpush.bf16.msrb.mxu3 %v3047_v1  ;;  %v3712_v60 = vld [vmem:[%s6293_s7 + $0x16c] sm:$0xf0] }
  0x2c   :  { %948 = vmatpush.bf16.msrb.mxu0 %v2827_v0 }
  0x2d   :  { %974 = vmatpush.bf16.msrb.mxu2 %v2831_v5 }
  0x2e   :  { %961 = vmatpush.bf16.msrb.mxu1 %v3019_v11 }
  0x2f   :  { %987 = vmatpush.bf16.msrb.mxu3 %v3023_v13 }
  0x30   :  { %949 = vmatpush.bf16.msrb.mxu0 %v2803_v12 }
  0x31   :  { %975 = vmatpush.bf16.msrb.mxu2 %v2807_v17 }
  0x32   :  { %962 = vmatpush.bf16.msrb.mxu1 %v2995_v23 }
  0x33   :  { %988 = vmatpush.bf16.msrb.mxu3 %v2999_v25 }
  0x34   :  { %950 = vmatpush.bf16.msrb.mxu0 %v2779_v24 }
  0x35   :  { %976 = vmatpush.bf16.msrb.mxu2 %v2783_v29 }
  0x36   :  { %963 = vmatpush.bf16.msrb.mxu1 %v2971_v35 }
  0x37   :  { %989 = vmatpush.bf16.msrb.mxu3 %v2975_v37 }
  0x38   :  { %951 = vmatpush.bf16.msrb.mxu0 %v2755_v36 }
  0x39   :  { %977 = vmatpush.bf16.msrb.mxu2 %v2759_v41 }
  0x3a   :  { %18 = vsyncpa [#allocation3], 0  ;;  %964 = vmatpush.bf16.msrb.mxu1 %v2947_v47  ;;  %v3709_v61 = vld [vmem:[%s6293_s7 + $0x15c] sm:$0xf]  ;;  %v2884_v62 = vld [vmem:[%s6293_s7 + $0x170] sm:$0xf0]  ;;  %v2923_v63 = vor.u32 %v3723_v54, %v2922_v53  ;;  %v2707_v0 = vor.u32 %v3669_v49, %v2706_v48  ;;  %v2927_v1 = vor.u32 %v3720_v57, %v2924_v58  ;;  %v2711_v6 = vor.u32 %v3666_v52, %v2708_v56 }
  0x3b   :  { %990 = vmatpush.bf16.msrb.mxu3 %v2951_v51  ;;  %v2858_v2 = vld [vmem:[%s6293_s7 + $0x128] sm:$0xf]  ;;  %v2898_v3 = vld [vmem:[%s6293_s7 + $0x180] sm:$0xf]  ;;  %v3717_v4 = vld [vmem:[%s6293_s7 + $0x194] sm:$0xf0]  ;;  %v2883_v7 = vor.u32 %v3712_v60, %v2882_v59  ;;  %v2887_v11 = vor.u32 %v3709_v61, %v2884_v62 }
  0x3c   :  { %952 = vmatpush.bf16.msrb.mxu0 %v2731_v50  ;;  %v3714_v5 = vld [vmem:[%s6293_s7 + $0x184] sm:$0xf]  ;;  %v2900_v8 = vld [vmem:[%s6293_s7 + $0x198] sm:$0xf0]  ;;  %v3074_v9 = vld [vmem:[%s6293_s7 + $0x2d8] sm:$0xf]  ;;  %v2899_v17 = vor.u32 %v3717_v4, %v2898_v3 }
  0x3d   :  { %978 = vmatpush.bf16.msrb.mxu2 %v2735_v55  ;;  %v3760_v10 = vld [vmem:[%s6293_s7 + $0x2ec] sm:$0xf0]  ;;  %v3706_v12 = vld [vmem:[%s6293_s7 + $0x13c] sm:$0xf0]  ;;  %v3757_v13 = vld [vmem:[%s6293_s7 + $0x2dc] sm:$0xf]  ;;  %v2903_v18 = vor.u32 %v3714_v5, %v2900_v8 }
  0x3e   :  { %v3076_v14 = vld [vmem:[%s6293_s7 + $0x2f0] sm:$0xf0]  ;;  %965 = vmatpush.bf16.msrb.mxu1 %v2923_v63  ;;  %v3703_v15 = vld [vmem:[%s6293_s7 + $0x12c] sm:$0xf]  ;;  %v2860_v16 = vld [vmem:[%s6293_s7 + $0x140] sm:$0xf0]  ;;  %v3075_v19 = vor.u32 %v3760_v10, %v3074_v9  ;;  %v2859_v20 = vor.u32 %v3706_v12, %v2858_v2 }
  0x3f   :  { %991 = vmatpush.bf16.msrb.mxu3 %v2927_v1  ;;  %v3079_v21 = vor.u32 %v3757_v13, %v3076_v14  ;;  %v2834_v22 = vld [vmem:[%s6293_s7 + $0xf8] sm:$0xf]  ;;  %v3050_v23 = vld [vmem:[%s6293_s7 + $0x2a8] sm:$0xf]  ;;  %v3754_v24 = vld [vmem:[%s6293_s7 + $0x2bc] sm:$0xf0]  ;;  %v2863_v25 = vor.u32 %v3703_v15, %v2860_v16 }
  0x40   :  { %953 = vmatpush.bf16.msrb.mxu0 %v2707_v0  ;;  %v3700_v26 = vld [vmem:[%s6293_s7 + $0x10c] sm:$0xf0]  ;;  %v3751_v27 = vld [vmem:[%s6293_s7 + $0x2ac] sm:$0xf]  ;;  %v3052_v28 = vld [vmem:[%s6293_s7 + $0x2c0] sm:$0xf0]  ;;  %v3051_v31 = vor.u32 %v3754_v24, %v3050_v23 }
  0x41   :  { %979 = vmatpush.bf16.msrb.mxu2 %v2711_v6  ;;  %v3697_v29 = vld [vmem:[%s6293_s7 + $0xfc] sm:$0xf]  ;;  %v2836_v30 = vld [vmem:[%s6293_s7 + $0x110] sm:$0xf0]  ;;  %v2835_v32 = vor.u32 %v3700_v26, %v2834_v22  ;;  %v3055_v33 = vor.u32 %v3751_v27, %v3052_v28  ;;  %v2810_v34 = vld [vmem:[%s6293_s7 + $0xc8] sm:$0xf] }
  0x42   :  { %966 = vmatpush.bf16.msrb.mxu1 %v2899_v17  ;;  %v3026_v35 = vld [vmem:[%s6293_s7 + $0x278] sm:$0xf]  ;;  %v3748_v36 = vld [vmem:[%s6293_s7 + $0x28c] sm:$0xf0]  ;;  %v2839_v37 = vor.u32 %v3697_v29, %v2836_v30  ;;  %v3694_v38 = vld [vmem:[%s6293_s7 + $0xdc] sm:$0xf0] }
  0x43   :  { %992 = vmatpush.bf16.msrb.mxu3 %v2903_v18  ;;  %v3745_v39 = vld [vmem:[%s6293_s7 + $0x27c] sm:$0xf]  ;;  %v3028_v40 = vld [vmem:[%s6293_s7 + $0x290] sm:$0xf0]  ;;  %v3691_v41 = vld [vmem:[%s6293_s7 + $0xcc] sm:$0xf]  ;;  %v3027_v43 = vor.u32 %v3748_v36, %v3026_v35  ;;  %v2811_v44 = vor.u32 %v3694_v38, %v2810_v34 }
  0x44   :  { %998 = vmatpush.bf16.msra.mxu0 %v2883_v7  ;;  %v2812_v42 = vld [vmem:[%s6293_s7 + $0xe0] sm:$0xf0]  ;;  %v3031_v45 = vor.u32 %v3745_v39, %v3028_v40  ;;  %v2786_v46 = vld [vmem:[%s6293_s7 + $0x98] sm:$0xf]  ;;  %v3002_v47 = vld [vmem:[%s6293_s7 + $0x248] sm:$0xf] }
  0x45   :  { %1024 = vmatpush.bf16.msra.mxu2 %v2887_v11  ;;  %v3742_v48 = vld [vmem:[%s6293_s7 + $0x25c] sm:$0xf0]  ;;  %v2815_v49 = vor.u32 %v3691_v41, %v2812_v42  ;;  %v3688_v50 = vld [vmem:[%s6293_s7 + $0xac] sm:$0xf0]  ;;  %v3739_v51 = vld [vmem:[%s6293_s7 + $0x24c] sm:$0xf] }
  0x46   :  { %1011 = vmatpush.bf16.msra.mxu1 %v3075_v19  ;;  %v3004_v52 = vld [vmem:[%s6293_s7 + $0x260] sm:$0xf0]  ;;  %v3685_v53 = vld [vmem:[%s6293_s7 + $0x9c] sm:$0xf]  ;;  %v2788_v54 = vld [vmem:[%s6293_s7 + $0xb0] sm:$0xf0]  ;;  %v3003_v55 = vor.u32 %v3742_v48, %v3002_v47  ;;  %v2787_v56 = vor.u32 %v3688_v50, %v2786_v46 }
  0x47   :  { %1037 = vmatpush.bf16.msra.mxu3 %v3079_v21  ;;  %v3007_v57 = vor.u32 %v3739_v51, %v3004_v52  ;;  %v2791_v58 = vor.u32 %v3685_v53, %v2788_v54  ;;  %v2762_v59 = vld [vmem:[%s6293_s7 + $0x68] sm:$0xf]  ;;  %v3682_v60 = vld [vmem:[%s6293_s7 + $0x7c] sm:$0xf0]  ;;  %v3679_v61 = vld [vmem:[%s6293_s7 + $0x6c] sm:$0xf] }
  0x48   :  { %999 = vmatpush.bf16.msra.mxu0 %v2859_v20  ;;  %v2763_v62 = vor.u32 %v3682_v60, %v2762_v59  ;;  %v2764_v63 = vld [vmem:[%s6293_s7 + $0x80] sm:$0xf0]  ;;  %v2978_v1 = vld [vmem:[%s6293_s7 + $0x218] sm:$0xf]  ;;  %v3736_v2 = vld [vmem:[%s6293_s7 + $0x22c] sm:$0xf0] }
  0x49   :  { %1025 = vmatpush.bf16.msra.mxu2 %v2863_v25  ;;  %v2767_v0 = vor.u32 %v3679_v61, %v2764_v63  ;;  %v3733_v3 = vld [vmem:[%s6293_s7 + $0x21c] sm:$0xf]  ;;  %v2979_v4 = vor.u32 %v3736_v2, %v2978_v1  ;;  %v2980_v5 = vld [vmem:[%s6293_s7 + $0x230] sm:$0xf0]  ;;  %v2738_v7 = vld [vmem:[%s6293_s7 + $0x38] sm:$0xf] }
  0x4a   :  { %1012 = vmatpush.bf16.msra.mxu1 %v3051_v31  ;;  %v2983_v6 = vor.u32 %v3733_v3, %v2980_v5  ;;  %v3676_v8 = vld [vmem:[%s6293_s7 + $0x4c] sm:$0xf0]  ;;  %v3673_v9 = vld [vmem:[%s6293_s7 + $0x3c] sm:$0xf]  ;;  %v2740_v11 = vld [vmem:[%s6293_s7 + $0x50] sm:$0xf0] }
  0x4b   :  { %1038 = vmatpush.bf16.msra.mxu3 %v3055_v33  ;;  %v2739_v10 = vor.u32 %v3676_v8, %v2738_v7  ;;  %v2743_v12 = vor.u32 %v3673_v9, %v2740_v11  ;;  %v2954_v13 = vld [vmem:[%s6293_s7 + $0x1e8] sm:$0xf]  ;;  %v3730_v14 = vld [vmem:[%s6293_s7 + $0x1fc] sm:$0xf0]  ;;  %v3727_v15 = vld [vmem:[%s6293_s7 + $0x1ec] sm:$0xf] }
  0x4c   :  { %1000 = vmatpush.bf16.msra.mxu0 %v2835_v32  ;;  %v2955_v16 = vor.u32 %v3730_v14, %v2954_v13  ;;  %v2956_v17 = vld [vmem:[%s6293_s7 + $0x200] sm:$0xf0]  ;;  %v2714_v19 = vld [vmem:[%s6293_s7 + $0x8] sm:$0xf]  ;;  %v3670_v20 = vld [vmem:[%s6293_s7 + $0x1c] sm:$0xf0] }
  0x4d   :  { %1026 = vmatpush.bf16.msra.mxu2 %v2839_v37  ;;  %v2959_v18 = vor.u32 %v3727_v15, %v2956_v17  ;;  %v3667_v21 = vld [vmem:[%s6293_s7 + $0xc] sm:$0xf]  ;;  %v2715_v22 = vor.u32 %v3670_v20, %v2714_v19  ;;  %v2716_v23 = vld [vmem:[%s6293_s7 + $0x20] sm:$0xf0]  ;;  %v2930_v25 = vld [vmem:[%s6293_s7 + $0x1b8] sm:$0xf] }
  0x4e   :  { %1013 = vmatpush.bf16.msra.mxu1 %v3027_v43  ;;  %v2719_v24 = vor.u32 %v3667_v21, %v2716_v23  ;;  %v3724_v26 = vld [vmem:[%s6293_s7 + $0x1cc] sm:$0xf0]  ;;  %v3721_v27 = vld [vmem:[%s6293_s7 + $0x1bc] sm:$0xf]  ;;  %v2932_v28 = vld [vmem:[%s6293_s7 + $0x1d0] sm:$0xf0] }
  0x4f   :  { %1039 = vmatpush.bf16.msra.mxu3 %v3031_v45  ;;  %v2931_v29 = vor.u32 %v3724_v26, %v2930_v25  ;;  %v2935_v30 = vor.u32 %v3721_v27, %v2932_v28  ;;  %v2906_v31 = vld [vmem:[%s6293_s7 + $0x188] sm:$0xf]  ;;  %v3718_v32 = vld [vmem:[%s6293_s7 + $0x19c] sm:$0xf0]  ;;  %v3715_v34 = vld [vmem:[%s6293_s7 + $0x18c] sm:$0xf] }
  0x50   :  { %1001 = vmatpush.bf16.msra.mxu0 %v2811_v44  ;;  %v2907_v33 = vor.u32 %v3718_v32, %v2906_v31  ;;  %v2908_v35 = vld [vmem:[%s6293_s7 + $0x1a0] sm:$0xf0]  ;;  %v126_v37 = vld [vmem:[%s6292_s6] sm:$0x3]  ;;  %v3713_v44 = vld [vmem:[%s6293_s7 + $0x174] sm:$0xf0] }
  0x51   :  { %1027 = vmatpush.bf16.msra.mxu2 %v2815_v49  ;;  %v2911_v36 = vor.u32 %v3715_v34, %v2908_v35  ;;  %v128_v38 = vperm.slane %v126_v37, 0  ;;  %v2890_v42 = vld [vmem:[%s6293_s7 + $0x160] sm:$0xf]  ;;  %v3710_v45 = vld [vmem:[%s6293_s7 + $0x164] sm:$0xf]  ;;  %v129_v47 = vperm.slane %v126_v37, 1 }
  0x52   :  { %1014 = vmatpush.bf16.msra.mxu1 %v3003_v55  ;;  %v2892_v46 = vld [vmem:[%s6293_s7 + $0x178] sm:$0xf0]  ;;  %v2891_v49 = vor.u32 %v3713_v44, %v2890_v42  ;;  %v2866_v51 = vld [vmem:[%s6293_s7 + $0x130] sm:$0xf]  ;;  %v3707_v54 = vld [vmem:[%s6293_s7 + $0x144] sm:$0xf0] }
  0x53   :  { %1040 = vmatpush.bf16.msra.mxu3 %v3007_v57  ;;  %v2895_v50 = vor.u32 %v3710_v45, %v2892_v46  ;;  %v3704_v55 = vld [vmem:[%s6293_s7 + $0x134] sm:$0xf]  ;;  %v3082_v61 = vld [vmem:[%s6293_s7 + $0x2e0] sm:$0xf]  ;;  %v3758_v2 = vld [vmem:[%s6293_s7 + $0x2e4] sm:$0xf] }
  0x54   :  { %1002 = vmatpush.bf16.msra.mxu0 %v2787_v56  ;;  %v2868_v56 = vld [vmem:[%s6293_s7 + $0x148] sm:$0xf0]  ;;  %v3084_v3 = vld [vmem:[%s6293_s7 + $0x2f8] sm:$0xf0]  ;;  %v3701_v5 = vld [vmem:[%s6293_s7 + $0x114] sm:$0xf0] }
  0x55   :  { %1028 = vmatpush.bf16.msra.mxu2 %v2791_v58  ;;  %v2871_v1 = vor.u32 %v3704_v55, %v2868_v56  ;;  %v2844_v7 = vld [vmem:[%s6293_s7 + $0x118] sm:$0xf0]  ;;  %v3058_v11 = vld [vmem:[%s6293_s7 + $0x2b0] sm:$0xf]  ;;  %v3060_v17 = vld [vmem:[%s6293_s7 + $0x2c8] sm:$0xf0] }
  0x56   :  { %1015 = vmatpush.bf16.msra.mxu1 %v2979_v4  ;;  %v2842_v4 = vld [vmem:[%s6293_s7 + $0x100] sm:$0xf]  ;;  %v3695_v20 = vld [vmem:[%s6293_s7 + $0xe4] sm:$0xf0]  ;;  %v3692_v21 = vld [vmem:[%s6293_s7 + $0xd4] sm:$0xf] }
  0x57   :  { %1041 = vmatpush.bf16.msra.mxu3 %v2983_v6  ;;  %v3698_v6 = vld [vmem:[%s6293_s7 + $0x104] sm:$0xf]  ;;  %v2843_v14 = vor.u32 %v3701_v5, %v2842_v4  ;;  %v3034_v26 = vld [vmem:[%s6293_s7 + $0x280] sm:$0xf]  ;;  %v3036_v31 = vld [vmem:[%s6293_s7 + $0x298] sm:$0xf0] }
  0x58   :  { %1003 = vmatpush.bf16.msra.mxu0 %v2763_v62  ;;  %v3761_v62 = vld [vmem:[%s6293_s7 + $0x2f4] sm:$0xf0]  ;;  %v2847_v15 = vor.u32 %v3698_v6, %v2844_v7  ;;  %v2794_v32 = vld [vmem:[%s6293_s7 + $0xa0] sm:$0xf]  ;;  %v3686_v34 = vld [vmem:[%s6293_s7 + $0xa4] sm:$0xf] }
  0x59   :  { %1029 = vmatpush.bf16.msra.mxu2 %v2767_v0  ;;  %v2867_v0 = vor.u32 %v3707_v54, %v2866_v51  ;;  %v3083_v9 = vor.u32 %v3761_v62, %v3082_v61  ;;  %v2796_v35 = vld [vmem:[%s6293_s7 + $0xb8] sm:$0xf0]  ;;  %v2770_v44 = vld [vmem:[%s6293_s7 + $0x70] sm:$0xf]  ;;  %v3683_v45 = vld [vmem:[%s6293_s7 + $0x84] sm:$0xf0] }
  0x5a   :  { %1016 = vmatpush.bf16.msra.mxu1 %v2955_v16  ;;  %v3752_v16 = vld [vmem:[%s6293_s7 + $0x2b4] sm:$0xf]  ;;  %v2986_v51 = vld [vmem:[%s6293_s7 + $0x220] sm:$0xf]  ;;  %v3734_v54 = vld [vmem:[%s6293_s7 + $0x224] sm:$0xf]  ;;  %v2771_v56 = vor.u32 %v3683_v45, %v2770_v44 }
  0x5b   :  { %1042 = vmatpush.bf16.msra.mxu3 %v2959_v18  ;;  %v2818_v18 = vld [vmem:[%s6293_s7 + $0xd0] sm:$0xf]  ;;  %v3063_v25 = vor.u32 %v3752_v16, %v3060_v17  ;;  %v3680_v46 = vld [vmem:[%s6293_s7 + $0x74] sm:$0xf]  ;;  %v2988_v55 = vld [vmem:[%s6293_s7 + $0x238] sm:$0xf0] }
  0x5c   :  { %1004 = vmatpush.bf16.msra.mxu0 %v2739_v10  ;;  %v3087_v10 = vor.u32 %v3758_v2, %v3084_v3  ;;  %v2819_v27 = vor.u32 %v3695_v20, %v2818_v18  ;;  %v2748_v61 = vld [vmem:[%s6293_s7 + $0x58] sm:$0xf0]  ;;  %v3728_v2 = vld [vmem:[%s6293_s7 + $0x1f4] sm:$0xf]  ;;  %v2964_v3 = vld [vmem:[%s6293_s7 + $0x208] sm:$0xf0] }
  0x5d   :  { %1030 = vmatpush.bf16.msra.mxu2 %v2743_v12  ;;  %v3755_v12 = vld [vmem:[%s6293_s7 + $0x2c4] sm:$0xf0]  ;;  %v2722_v6 = vld [vmem:[%s6293_s7 + $0x10] sm:$0xf]  ;;  %v3722_v16 = vld [vmem:[%s6293_s7 + $0x1c4] sm:$0xf] }
  0x5e   :  { %1017 = vmatpush.bf16.msra.mxu1 %v2931_v29  ;;  %v3749_v29 = vld [vmem:[%s6293_s7 + $0x294] sm:$0xf0]  ;;  %v3671_v7 = vld [vmem:[%s6293_s7 + $0x24] sm:$0xf0]  ;;  %v2940_v17 = vld [vmem:[%s6293_s7 + $0x1d8] sm:$0xf0] }
  0x5f   :  { %1043 = vmatpush.bf16.msra.mxu3 %v2935_v30  ;;  %v3746_v30 = vld [vmem:[%s6293_s7 + $0x284] sm:$0xf]  ;;  %v2723_v18 = vor.u32 %v3671_v7, %v2722_v6  ;;  %v4924_v45 = vld [vmem:[%s6290_s4 + $0x18] sm:$0xff]  ;;  %vm1252_vm0 = vcmask 130048   ;;  %s2567_s28 = sshll.u32 %s6299_s13, 4  ;;  %s2568_s28 = int_to_ptr.hbm [resolvable:$true] %s2567_s28 }
  0x60   :  { %1005 = vmatpush.bf16.msra.mxu0 %v2715_v22  ;;  %v2820_v22 = vld [vmem:[%s6293_s7 + $0xe8] sm:$0xf0]  ;;  %v3039_v37 = vor.u32 %v3746_v30, %v3036_v31  ;;  %v4869_v30 = vld [vmem:[%s6290_s4 + $0x58] sm:$0xff]  ;;  %v4875_v31 = vld [vmem:[%s6290_s4 + $0x50] sm:$0xff] }
  0x61   :  { %1031 = vmatpush.bf16.msra.mxu2 %v2719_v24  ;;  %v3059_v24 = vor.u32 %v3755_v12, %v3058_v11  ;;  %v2823_v28 = vor.u32 %v3692_v21, %v2820_v22  ;;  %v2967_v12 = vor.u32 %v3728_v2, %v2964_v3  ;;  %v2943_v21 = vor.u32 %v3722_v16, %v2940_v17  ;;  %v2914_v22 = vld [vmem:[%s6293_s7 + $0x190] sm:$0xf] }
  0x62   :  { %1018 = vmatpush.bf16.msra.mxu1 %v2907_v33  ;;  %v3689_v33 = vld [vmem:[%s6293_s7 + $0xb4] sm:$0xf0] }
  0x63   :  { %1044 = vmatpush.bf16.msra.mxu3 %v2911_v36  ;;  %v3035_v36 = vor.u32 %v3749_v29, %v3034_v26  ;;  %v2795_v42 = vor.u32 %v3689_v33, %v2794_v32  ;;  %v4851_v29 = vld [vmem:[%s6290_s4 + $0x70] sm:$0xff]  ;;  %v4880_v32 = vld [vmem:[%s6290_s4 + $0x48] sm:$0xff]  ;;  %v4887_v33 = vld [vmem:[%s6294_s8] sm:$0x3f] }
  0x64   :  { %v457_v3 = vperm.slane %v4887_v33, 3 }
  0xa0   :  { %v308_v39 = vpop.f32.mrf.mxu0 }
  0xa1   :  { %v309_v40 = vadd.f32 %v308_v39, %v128_v38  ;;  %v321_v41 = vpop.f32.mrf.mxu1  ;;  %v3010_v38 = vld [vmem:[%s6293_s7 + $0x250] sm:$0xf]  ;;  %v3743_v39 = vld [vmem:[%s6293_s7 + $0x264] sm:$0xf0] }
  0xa3   :  { %v322_v43 = vadd.f32 %v321_v41, %v309_v40  ;;  %v3740_v40 = vld [vmem:[%s6293_s7 + $0x254] sm:$0xf]  ;;  %v3012_v41 = vld [vmem:[%s6293_s7 + $0x268] sm:$0xf0] }
  0xa5   :  { %v4638_v48 = vmax.f32 %v322_v43, 0.0  ;;  %v2799_v43 = vor.u32 %v3686_v34, %v2796_v35  ;;  %v4892_v34 = vld [vmem:[%s6290_s4 + $0x40] sm:$0xff]  ;;  %v4898_v35 = vld [vmem:[%s6290_s4 + $0x38] sm:$0xff] }
  0xa7   :  { %v4645_v52 = vpack.c.bf16 %v4638_v48, %v4638_v48 }
  0xa8   :  { %v347_v58 = vpop.f32.mrf.mxu3  ;;  %v310_v59 = vpop.f32.mrf.mxu0 }
  0xa9   :  { %v334_v53 = vpop.f32.mrf.mxu2  ;;  %v323_v60 = vpop.f32.mrf.mxu1  ;;  %954 = vmatmul.bf16.vlgmr.msrb.gmra.mxu0 %v4645_v52  ;;  %980 = vmatmul.bf16.vlgmr.msrb.gmra.mxu2 %v4645_v52  ;;  %v3677_v59 = vld [vmem:[%s6293_s7 + $0x54] sm:$0xf0] }
  0xaa   :  { %v335_v57 = vadd.f32 %v334_v53, %v129_v47  ;;  %1050 = vmatpush.bf16.msrb.mxu0 %v2891_v49  ;;  %1076 = vmatpush.bf16.msrb.mxu2 %v2895_v50  ;;  %v2772_v47 = vld [vmem:[%s6293_s7 + $0x88] sm:$0xf0]  ;;  %v3011_v49 = vor.u32 %v3743_v39, %v3010_v38  ;;  %v3015_v50 = vor.u32 %v3740_v40, %v3012_v41  ;;  %v3737_v53 = vld [vmem:[%s6293_s7 + $0x234] sm:$0xf0]  ;;  %v3674_v60 = vld [vmem:[%s6293_s7 + $0x44] sm:$0xf] }
  0xab   :  { %v2987_v62 = vor.u32 %v3737_v53, %v2986_v51  ;;  %v2751_v5 = vor.u32 %v3674_v60, %v2748_v61  ;;  %v4905_v38 = vld [vmem:[%s6290_s4 + $0x30] sm:$0xff]  ;;  %v4911_v39 = vld [vmem:[%s6290_s4 + $0x28] sm:$0xff]  ;;  %v4917_v41 = vld [vmem:[%s6290_s4 + $0x20] sm:$0xff] }
  0xac   :  { %v348_v63 = vadd.f32 %v347_v58, %v335_v57  ;;  %v2775_v57 = vor.u32 %v3680_v46, %v2772_v47  ;;  %v2746_v58 = vld [vmem:[%s6293_s7 + $0x40] sm:$0xf] }
  0xad   :  { %v2747_v4 = vor.u32 %v3677_v59, %v2746_v58  ;;  %v456_v59 = vperm.slane %v4887_v33, 2 }
  0xae   :  { %v4682_v8 = vmax.f32 %v348_v63, 0.0  ;;  %1051 = vmatpush.bf16.msrb.mxu0 %v2867_v0  ;;  %1077 = vmatpush.bf16.msrb.mxu2 %v2871_v1  ;;  %v2991_v63 = vor.u32 %v3734_v54, %v2988_v55  ;;  %v2962_v0 = vld [vmem:[%s6293_s7 + $0x1f0] sm:$0xf]  ;;  %v3731_v1 = vld [vmem:[%s6293_s7 + $0x204] sm:$0xf0]  ;;  %v4944_v54 = vld [vmem:[%s6290_s4] sm:$0xff] }
  0xaf   :  { %v2963_v11 = vor.u32 %v3731_v1, %v2962_v0  ;;  %v73_v0 = vld [vmem:[%s6289_s3 + $0xe0] sm:$0xff]  ;;  %v75_v1 = vld [vmem:[%s6289_s3 + $0xf0] sm:$0xff] }
  0xb0   :  { %v4692_v13 = vpack.c.bf16 %v4682_v8, %v4682_v8  ;;  %v349_v23 = vpop.f32.mrf.mxu3 }
  0xb1   :  { %v336_v19 = vpop.f32.mrf.mxu2  ;;  %v3719_v23 = vld [vmem:[%s6293_s7 + $0x1a4] sm:$0xf0] }
  0xb2   :  { %967 = vmatmul.bf16.vlgmr.msrb.gmra.mxu1 %v4692_v13  ;;  %993 = vmatmul.bf16.vlgmr.msrb.gmra.mxu3 %v4692_v13  ;;  %v2915_v26 = vor.u32 %v3719_v23, %v2914_v22 }
  0xb3   :  { %1063 = vmatpush.bf16.msrb.mxu1 %v3083_v9  ;;  %1089 = vmatpush.bf16.msrb.mxu3 %v3087_v10  ;;  %v3668_v9 = vld [vmem:[%s6293_s7 + $0x14] sm:$0xf]  ;;  %v2724_v10 = vld [vmem:[%s6293_s7 + $0x28] sm:$0xf0] }
  0xb4   :  { %1052 = vmatpush.bf16.msrb.mxu0 %v2843_v14  ;;  %1078 = vmatpush.bf16.msrb.mxu2 %v2847_v15  ;;  %v2938_v14 = vld [vmem:[%s6293_s7 + $0x1c0] sm:$0xf]  ;;  %v3725_v15 = vld [vmem:[%s6293_s7 + $0x1d4] sm:$0xf0]  ;;  %v2727_v19 = vor.u32 %v3668_v9, %v2724_v10 }
  0xb5   :  { %v2939_v20 = vor.u32 %v3725_v15, %v2938_v14  ;;  %v69_v10 = vld [vmem:[%s6289_s3 + $0xc0] sm:$0xff]  ;;  %v4972_v14 = vld [vmem:[%s6289_s3 + $0xf8] sm:$0xff]  ;;  %v71_v15 = vld [vmem:[%s6289_s3 + $0xd0] sm:$0xff] }
  0xb7   :  { %1064 = vmatpush.bf16.msrb.mxu1 %v3059_v24  ;;  %1090 = vmatpush.bf16.msrb.mxu3 %v3063_v25  ;;  %v3716_v24 = vld [vmem:[%s6293_s7 + $0x194] sm:$0xf]  ;;  %v2916_v25 = vld [vmem:[%s6293_s7 + $0x1a8] sm:$0xf0] }
  0xb8   :  { %1053 = vmatpush.bf16.msrb.mxu0 %v2819_v27  ;;  %1079 = vmatpush.bf16.msrb.mxu2 %v2823_v28  ;;  %v2919_v27 = vor.u32 %v3716_v24, %v2916_v25  ;;  %v4845_v28 = vld [vmem:[%s6290_s4 + $0x78] sm:$0xff]  ;;  %v458_v24 = vperm.slane %v4887_v33, 4 }
  0xb9   :  { %1006 = vmatmul.bf16.vlgmr.msra.gmra.mxu0 %v4645_v52  ;;  %1032 = vmatmul.bf16.vlgmr.msra.gmra.mxu2 %v4645_v52 }
  0xbb   :  { %1065 = vmatpush.bf16.msrb.mxu1 %v3035_v36  ;;  %1091 = vmatpush.bf16.msrb.mxu3 %v3039_v37  ;;  %v454_v36 = vperm.slane %v4887_v33, 0 }
  0xbc   :  { %1054 = vmatpush.bf16.msrb.mxu0 %v2795_v42  ;;  %1080 = vmatpush.bf16.msrb.mxu2 %v2799_v43  ;;  %v455_v42 = vperm.slane %v4887_v33, 1 }
  0xbf   :  { %1066 = vmatpush.bf16.msrb.mxu1 %v3011_v49  ;;  %1092 = vmatpush.bf16.msrb.mxu3 %v3015_v50  ;;  %v4932_v49 = vld [vmem:[%s6290_s4 + $0x10] sm:$0xff]  ;;  %v4937_v50 = vld [vmem:[%s6290_s4 + $0x8] sm:$0xff] }
  0xc0   :  { %1055 = vmatpush.bf16.msrb.mxu0 %v2771_v56  ;;  %1081 = vmatpush.bf16.msrb.mxu2 %v2775_v57 }
  0xc2   :  { %1019 = vmatmul.bf16.vlgmr.msra.gmra.mxu1 %v4692_v13  ;;  %1045 = vmatmul.bf16.vlgmr.msra.gmra.mxu3 %v4692_v13 }
  0xc3   :  { %1067 = vmatpush.bf16.msrb.mxu1 %v2987_v62  ;;  %1093 = vmatpush.bf16.msrb.mxu3 %v2991_v63 }
  0xc4   :  { %1056 = vmatpush.bf16.msrb.mxu0 %v2747_v4  ;;  %1082 = vmatpush.bf16.msrb.mxu2 %v2751_v5 }
  0xc7   :  { %1068 = vmatpush.bf16.msrb.mxu1 %v2963_v11  ;;  %1094 = vmatpush.bf16.msrb.mxu3 %v2967_v12  ;;  %v4967_v12 = vld [vmem:[%s6289_s3 + $0xe8] sm:$0xff] }
  0xc8   :  { %1057 = vmatpush.bf16.msrb.mxu0 %v2723_v18  ;;  %1083 = vmatpush.bf16.msrb.mxu2 %v2727_v19 }
  0xcb   :  { %1069 = vmatpush.bf16.msrb.mxu1 %v2939_v20  ;;  %1095 = vmatpush.bf16.msrb.mxu3 %v2943_v21 }
  0xcc   :  { %1058 = vmatmul.bf16.vlgmr.msrb.gmra.mxu0 %v4645_v52  ;;  %1084 = vmatmul.bf16.vlgmr.msrb.gmra.mxu2 %v4645_v52  ;;  %v4857_v52 = vld [vmem:[%s6290_s4 + $0x68] sm:$0xff] }
  0xcd   :  { %1232 = vmatpush.msra.mxu2 %v4845_v28 }
  0xcf   :  { %1070 = vmatpush.bf16.msrb.mxu1 %v2915_v26  ;;  %1096 = vmatpush.bf16.msrb.mxu3 %v2919_v27  ;;  %v4989_v26 = vld [vmem:[%s6289_s3 + $0xc8] sm:$0xff]  ;;  %v4994_v27 = vld [vmem:[%s6289_s3 + $0xd8] sm:$0xff] }
  0xd0   :  { %1233 = vmatpush.msra.mxu2 %v4851_v29 }
  0xd2   :  { %1071 = vmatmul.bf16.vlgmr.msrb.gmra.mxu1 %v4692_v13  ;;  %1097 = vmatmul.bf16.vlgmr.msrb.gmra.mxu3 %v4692_v13  ;;  %v4863_v13 = vld [vmem:[%s6290_s4 + $0x60] sm:$0xff] }
  0xd3   :  { %1234 = vmatpush.msra.mxu2 %v4857_v52  ;;  %3088 = vmatpush.xpose.msk.msra.mxu3 %vm1252_vm0, %v4845_v28 }
  0xd5   :  { %1235 = vmatpush.msra.mxu2 %v4863_v13 }
  0xd7   :  { %1236 = vmatpush.msra.mxu2 %v4869_v30  ;;  %3089 = vmatpush.xpose.msk.msra.mxu3 %vm1252_vm0, %v4851_v29 }
  0xd9   :  { %1237 = vmatpush.msra.mxu2 %v4875_v31 }
  0xdb   :  { %1238 = vmatpush.msra.mxu2 %v4880_v32  ;;  %3090 = vmatpush.xpose.msk.msra.mxu3 %vm1252_vm0, %v4857_v52  ;;  %v3227_v52 = vld [vmem:[%s6295_s9 + $0xf0] sm:$0xf] }
  0xdd   :  { %1239 = vmatpush.msra.mxu2 %v4892_v34 }
  0xdf   :  { %1240 = vmatpush.msra.mxu2 %v4898_v35  ;;  %3091 = vmatpush.xpose.msk.msra.mxu3 %vm1252_vm0, %v4863_v13  ;;  %v3793_v13 = vld [vmem:[%s6295_s9 + $0xf4] sm:$0xf0] }
  0xe1   :  { %1241 = vmatpush.msra.mxu2 %v4905_v38 }
  0xe3   :  { %1242 = vmatpush.msra.mxu2 %v4911_v39  ;;  %3092 = vmatpush.xpose.msk.msra.mxu3 %vm1252_vm0, %v4869_v30  ;;  %v3792_v30 = vld [vmem:[%s6295_s9 + $0xf4] sm:$0xf] }
  0xe5   :  { %1243 = vmatpush.msra.mxu2 %v4917_v41 }
  0xe7   :  { %1244 = vmatpush.msra.mxu2 %v4924_v45  ;;  %3093 = vmatpush.xpose.msk.msra.mxu3 %vm1252_vm0, %v4875_v31  ;;  %v3228_v31 = vor.u32 %v3793_v13, %v3227_v52  ;;  %v3189_v52 = vld [vmem:[%s6295_s9 + $0xa8] sm:$0xf0] }
  0xe9   :  { %1245 = vmatpush.msra.mxu2 %v4932_v49 }
  0xeb   :  { %1246 = vmatpush.msra.mxu2 %v4937_v50  ;;  %3094 = vmatpush.xpose.msk.msra.mxu3 %vm1252_vm0, %v4880_v32  ;;  %v3229_v32 = vld [vmem:[%s6295_s9 + $0xf8] sm:$0xf0] }
  0xed   :  { %1247 = vmatpush.msra.mxu2 %v4944_v54 }
  0xef   :  { %3095 = vmatpush.xpose.msk.msra.mxu3 %vm1252_vm0, %v4892_v34  ;;  %v3219_v34 = vld [vmem:[%s6295_s9 + $0xe0] sm:$0xf] }
  0xf3   :  { %3096 = vmatpush.xpose.msk.msra.mxu3 %vm1252_vm0, %v4898_v35  ;;  %v3791_v35 = vld [vmem:[%s6295_s9 + $0xe4] sm:$0xf0] }
  0xf7   :  { %3097 = vmatpush.xpose.msk.msra.mxu3 %vm1252_vm0, %v4905_v38  ;;  %v3232_v38 = vor.u32 %v3792_v30, %v3229_v32 }
  0xfb   :  { %3098 = vmatpush.xpose.msk.msra.mxu3 %vm1252_vm0, %v4911_v39  ;;  %v3790_v39 = vld [vmem:[%s6295_s9 + $0xe4] sm:$0xf] }
  0xff   :  { %3099 = vmatpush.xpose.msk.msra.mxu3 %vm1252_vm0, %v4917_v41  ;;  %v3221_v41 = vld [vmem:[%s6295_s9 + $0xe8] sm:$0xf0] }
 0x103   :  { %3100 = vmatpush.xpose.msk.msra.mxu3 %vm1252_vm0, %v4924_v45  ;;  %v3163_v45 = vld [vmem:[%s6295_s9 + $0x70] sm:$0xf] }
 0x107   :  { %3101 = vmatpush.xpose.msk.msra.mxu3 %vm1252_vm0, %v4932_v49  ;;  %v3220_v49 = vor.u32 %v3791_v35, %v3219_v34  ;;  %v3179_v35 = vld [vmem:[%s6295_s9 + $0x90] sm:$0xf] }
 0x10b   :  { %3102 = vmatpush.xpose.msk.msra.mxu3 %vm1252_vm0, %v4937_v50  ;;  %v3777_v50 = vld [vmem:[%s6295_s9 + $0x74] sm:$0xf0] }
 0x10f   :  { %3103 = vmatpush.xpose.msk.msra.mxu3 %vm1252_vm0, %v4944_v54  ;;  %v3776_v54 = vld [vmem:[%s6295_s9 + $0x74] sm:$0xf] }
 0x126   :  { %v955_v37 = vpop.f32.mrf.mxu0 }
 0x127   :  { %v956_v40 = vadd.f32 %v955_v37, %v454_v36 }
 0x12c   :  { %v981_v43 = vpop.f32.mrf.mxu2 }
 0x12d   :  { %v982_v51 = vadd.f32 %v981_v43, %v455_v42  ;;  %v67_v42 = vld [vmem:[%s6289_s3 + $0xb0] sm:$0xff] }
 0x12e   :  { %v957_v47 = vpop.f32.mrf.mxu0 }
 0x12f   :  { %v968_v44 = vpop.f32.mrf.mxu1 }
 0x130   :  { %v4926_v46 = vadd.f32 %v968_v44, %v956_v40  ;;  %v65_v40 = vld [vmem:[%s6289_s3 + $0xa0] sm:$0xff] }
 0x134   :  { %v983_v56 = vpop.f32.mrf.mxu2 }
 0x135   :  { %v994_v53 = vpop.f32.mrf.mxu3 }
 0x136   :  { %v4946_v55 = vadd.f32 %v994_v53, %v982_v51  ;;  %v1007_v58 = vpop.f32.mrf.mxu0 }
 0x137   :  { %v970_v57 = vpop.f32.mrf.mxu1  ;;  %v1008_v61 = vadd.f32 %v1007_v58, %v456_v59 }
 0x13c   :  { %v1033_v63 = vpop.f32.mrf.mxu2 }
 0x13d   :  { %v996_v60 = vpop.f32.mrf.mxu3  ;;  %v1034_v7 = vadd.f32 %v1033_v63, %v457_v3  ;;  %v5017_v63 = vld [vmem:[%s6289_s3 + $0xa8] sm:$0xff]  ;;  %v5022_v3 = vld [vmem:[%s6289_s3 + $0xb8] sm:$0xff] }
 0x13e   :  { %v1009_v4 = vpop.f32.mrf.mxu0 }
 0x13f   :  { %v1020_v62 = vpop.f32.mrf.mxu1 }
 0x140   :  { %v4956_v2 = vadd.f32 %v1020_v62, %v1008_v61 }
 0x142   :  { %v1130_v5 = vmul.f32 %v4956_v2, %v73_v0  ;;  %v1132_v6 = vmul.f32 %v4956_v2, %v75_v1  ;;  %v1126_v21 = vmul.f32 %v4956_v2, %v69_v10  ;;  %v1128_v22 = vmul.f32 %v4956_v2, %v71_v15 }
 0x143   :  { %v1122_v57 = vmul.f32 %v4956_v2, %v65_v40  ;;  %v1124_v58 = vmul.f32 %v4956_v2, %v67_v42 }
 0x144   :  { %v1148_v9 = vpack.c.bf16 %v1132_v6, %v1130_v5  ;;  %v1035_v18 = vpop.f32.mrf.mxu2  ;;  %v1146_v36 = vpack.c.bf16 %v1128_v22, %v1126_v21 }
 0x145   :  { %v1046_v11 = vpop.f32.mrf.mxu3  ;;  %v1144_v4 = vpack.c.bf16 %v1124_v58, %v1122_v57 }
 0x146   :  { %v4977_v16 = vadd.f32 %v1046_v11, %v1034_v7  ;;  %1200 = vmatpush.bf16.xpose.msra.mxu0 %v1148_v9  ;;  %v63_v9 = vld [vmem:[%s6289_s3 + $0x90] sm:$0xff] }
 0x147   :  { %v1022_v17 = vpop.f32.mrf.mxu1 }
 0x148   :  { %v1131_v19 = vmul.f32 %v4977_v16, %v4967_v12  ;;  %v1133_v20 = vmul.f32 %v4977_v16, %v4972_v14  ;;  %v1127_v44 = vmul.f32 %v4977_v16, %v4989_v26  ;;  %v1129_v47 = vmul.f32 %v4977_v16, %v4994_v27 }
 0x149   :  { %v1059_v23 = vpop.f32.mrf.mxu0  ;;  %v1123_v11 = vmul.f32 %v4977_v16, %v5017_v63 }
 0x14a   :  { %v1149_v25 = vpack.c.bf16 %v1133_v20, %v1131_v19  ;;  %v1060_v43 = vadd.f32 %v1059_v23, %v458_v24  ;;  %v1147_v60 = vpack.c.bf16 %v1129_v47, %v1127_v44  ;;  %v1120_v20 = vmul.f32 %v4956_v2, %v63_v9  ;;  %v5045_v24 = vld [vmem:[%s6289_s3 + $0x88] sm:$0xff]  ;;  %v59_v47 = vld [vmem:[%s6289_s3 + $0x70] sm:$0xff] }
 0x14c   :  { %1213 = vmatpush.bf16.xpose.msra.mxu1 %v1149_v25  ;;  %v5050_v25 = vld [vmem:[%s6289_s3 + $0x98] sm:$0xff] }
 0x14d   :  { %v1048_v37 = vpop.f32.mrf.mxu3  ;;  %v1121_v57 = vmul.f32 %v4977_v16, %v5050_v25 }
 0x14e   :  { %1201 = vmatpush.bf16.xpose.msra.mxu0 %v1146_v36 }
 0x14f   :  { %v1072_v51 = vpop.f32.mrf.mxu1  ;;  %v5006_v53 = vpop.f32.mrf.mxu2 }
 0x150   :  { %v5008_v56 = vadd.f32 %v1072_v51, %v1060_v43  ;;  %v1119_v51 = vmul.f32 %v4977_v16, %v5045_v24 }
 0x151   :  { %v1061_v59 = vpop.f32.mrf.mxu0 }
 0x152   :  { %v1178_v61 = vmul.f32 %v5008_v56, %v73_v0  ;;  %v1180_v62 = vmul.f32 %v5008_v56, %v75_v1  ;;  %v1174_v6 = vmul.f32 %v5008_v56, %v69_v10  ;;  %v1176_v7 = vmul.f32 %v5008_v56, %v71_v15  ;;  %v61_v0 = vld [vmem:[%s6289_s3 + $0x80] sm:$0xff] }
 0x153   :  { %v1125_v10 = vmul.f32 %v4977_v16, %v5022_v3  ;;  %v1118_v18 = vmul.f32 %v4956_v2, %v61_v0  ;;  %v1170_v21 = vmul.f32 %v5008_v56, %v65_v40  ;;  %v1172_v22 = vmul.f32 %v5008_v56, %v67_v42  ;;  %v57_v42 = vld [vmem:[%s6289_s3 + $0x60] sm:$0xff] }
 0x154   :  { %1214 = vmatpush.bf16.xpose.msra.mxu1 %v1147_v60  ;;  %v1196_v5 = vpack.c.bf16 %v1180_v62, %v1178_v61  ;;  %v1194_v19 = vpack.c.bf16 %v1176_v7, %v1174_v6  ;;  %v1166_v43 = vmul.f32 %v5008_v56, %v61_v0  ;;  %v1168_v40 = vmul.f32 %v5008_v56, %v63_v9  ;;  %v55_v6 = vld [vmem:[%s6289_s3 + $0x50] sm:$0xff]  ;;  %v5077_v7 = vld [vmem:[%s6289_s3 + $0x68] sm:$0xff]  ;;  %v5082_v0 = vld [vmem:[%s6289_s3 + $0x78] sm:$0xff] }
 0x155   :  { %v5029_v1 = vpop.f32.mrf.mxu3  ;;  %v1145_v23 = vpack.c.bf16 %v1125_v10, %v1123_v11  ;;  %v1142_v36 = vpack.c.bf16 %v1120_v20, %v1118_v18  ;;  %v1192_v37 = vpack.c.bf16 %v1172_v22, %v1170_v21  ;;  %v1114_v58 = vmul.f32 %v4956_v2, %v57_v42  ;;  %v49_v20 = vld [vmem:[%s6289_s3 + $0x20] sm:$0xff]  ;;  %v51_v21 = vld [vmem:[%s6289_s3 + $0x30] sm:$0xff] }
 0x156   :  { %1202 = vmatpush.bf16.xpose.msra.mxu0 %v1144_v4  ;;  %1327 = vmatpush.bf16.msrb.mxu2 %v1196_v5  ;;  %v1190_v59 = vpack.c.bf16 %v1168_v40, %v1166_v43  ;;  %v1116_v60 = vmul.f32 %v4956_v2, %v59_v47  ;;  %v1162_v61 = vmul.f32 %v5008_v56, %v57_v42  ;;  %v53_v5 = vld [vmem:[%s6289_s3 + $0x40] sm:$0xff]  ;;  %v47_v42 = vld [vmem:[%s6289_s3 + $0x10] sm:$0xff] }
 0x157   :  { %v1074_v17 = vpop.f32.mrf.mxu1  ;;  %v1087_v15 = vpop.f32.mrf.mxu2  ;;  %v1164_v62 = vmul.f32 %v5008_v56, %v59_v47  ;;  %v1143_v4 = vpack.c.bf16 %v1121_v57, %v1119_v51  ;;  %v1158_v10 = vmul.f32 %v5008_v56, %v53_v5  ;;  %v1117_v18 = vmul.f32 %v4977_v16, %v5082_v0  ;;  %v45_v40 = vld [vmem:[%s6289_s3] sm:$0xff]  ;;  %v56_v47 = vld [vmem:[%s6289_s3 + $0x58] sm:$0xff] }
 0x158   :  { %v1140_v9 = vpack.c.bf16 %v1116_v60, %v1114_v58  ;;  %v1160_v17 = vmul.f32 %v5008_v56, %v55_v6  ;;  %v1115_v15 = vmul.f32 %v4977_v16, %v5077_v7  ;;  %v1150_v58 = vmul.f32 %v5008_v56, %v45_v40 }
 0x159   :  { %v1188_v11 = vpack.c.bf16 %v1164_v62, %v1162_v61  ;;  %v1113_v61 = vmul.f32 %v4977_v16, %v56_v47  ;;  %v459_v62 = vperm.slane %v4887_v33, 5 }
 0x15a   :  { %1328 = vmatpush.bf16.msrb.mxu2 %v1194_v19  ;;  %v1110_v19 = vmul.f32 %v4956_v2, %v53_v5  ;;  %v1186_v22 = vpack.c.bf16 %v1160_v17, %v1158_v10  ;;  %v1141_v43 = vpack.c.bf16 %v1117_v18, %v1115_v15  ;;  %v1106_v5 = vmul.f32 %v4956_v2, %v49_v20  ;;  %v52_v10 = vld [vmem:[%s6289_s3 + $0x38] sm:$0xff] }
 0x15b   :  { %v1109_v18 = vmul.f32 %v4977_v16, %v52_v10 }
 0x15c   :  { %1215 = vmatpush.bf16.xpose.msra.mxu1 %v1145_v23  ;;  %v1112_v23 = vmul.f32 %v4956_v2, %v55_v6  ;;  %v1108_v6 = vmul.f32 %v4956_v2, %v51_v21 }
 0x15d   :  { %v1100_v44 = vpop.f32.mrf.mxu3 }
 0x15e   :  { %1203 = vmatpush.bf16.xpose.msra.mxu0 %v1142_v36  ;;  %1329 = vmatpush.bf16.msrb.mxu2 %v1192_v37  ;;  %v1154_v36 = vmul.f32 %v5008_v56, %v49_v20  ;;  %v1156_v37 = vmul.f32 %v5008_v56, %v51_v21  ;;  %v54_v44 = vld [vmem:[%s6289_s3 + $0x48] sm:$0xff]  ;;  %v1138_v51 = vpack.c.bf16 %v1112_v23, %v1110_v19 }
 0x15f   :  { %v1111_v60 = vmul.f32 %v4977_v16, %v54_v44  ;;  %v1136_v17 = vpack.c.bf16 %v1108_v6, %v1106_v5  ;;  %v1102_v19 = vmul.f32 %v4956_v2, %v45_v40  ;;  %v46_v23 = vld [vmem:[%s6289_s3 + $0x8] sm:$0xff] }
 0x160   :  { %v1184_v57 = vpack.c.bf16 %v1156_v37, %v1154_v36 }
 0x162   :  { %1330 = vmatpush.bf16.msrb.mxu2 %v1190_v59  ;;  %v1152_v59 = vmul.f32 %v5008_v56, %v47_v42  ;;  %v50_v56 = vld [vmem:[%s6289_s3 + $0x28] sm:$0xff] }
 0x163   :  { %v1107_v15 = vmul.f32 %v4977_v16, %v50_v56 }
 0x164   :  { %1216 = vmatpush.bf16.xpose.msra.mxu1 %v1143_v4  ;;  %v1182_v4 = vpack.c.bf16 %v1152_v59, %v1150_v58  ;;  %v1198_v58 = vpack.c.bf16 %v4926_v46, %v4926_v46 }
 0x166   :  { %1204 = vmatpush.bf16.xpose.msra.mxu0 %v1140_v9  ;;  %1331 = vmatpush.bf16.msrb.mxu2 %v1188_v11  ;;  %v1139_v9 = vpack.c.bf16 %v1113_v61, %v1111_v60  ;;  %v1086_v11 = vadd.f32 %v5006_v53, %v459_v62  ;;  %v1104_v53 = vmul.f32 %v4956_v2, %v47_v42 }
 0x168   :  { %v1099_v33 = vadd.f32 %v5029_v1, %v1086_v11  ;;  %v48_v1 = vld [vmem:[%s6289_s3 + $0x18] sm:$0xff]  ;;  %v1134_v36 = vpack.c.bf16 %v1104_v53, %v1102_v19  ;;  %v3224_v19 = vor.u32 %v3790_v39, %v3221_v41  ;;  %v3164_v53 = vor.u32 %v3777_v50, %v3163_v45  ;;  %v3780_v39 = vld [vmem:[%s6295_s9 + $0x94] sm:$0xf] }
 0x169   :  { %v3181_v41 = vld [vmem:[%s6295_s9 + $0x98] sm:$0xf0] }
 0x16a   :  { %1332 = vmatpush.bf16.msrb.mxu2 %v1186_v22  ;;  %v1179_v20 = vmul.f32 %v1099_v33, %v4967_v12  ;;  %v1181_v21 = vmul.f32 %v1099_v33, %v4972_v14  ;;  %v1137_v22 = vpack.c.bf16 %v1109_v18, %v1107_v15  ;;  %v1177_v2 = vmul.f32 %v1099_v33, %v4994_v27  ;;  %v3165_v18 = vld [vmem:[%s6295_s9 + $0x78] sm:$0xf0] }
 0x16b   :  { %v1103_v12 = vmul.f32 %v4977_v16, %v46_v23  ;;  %v1105_v14 = vmul.f32 %v4977_v16, %v48_v1  ;;  %v1171_v42 = vmul.f32 %v1099_v33, %v5017_v63  ;;  %v1167_v27 = vmul.f32 %v1099_v33, %v5045_v24 }
 0x16c   :  { %1217 = vmatpush.bf16.xpose.msra.mxu1 %v1141_v43  ;;  %v1197_v37 = vpack.c.bf16 %v1181_v21, %v1179_v20  ;;  %v1175_v43 = vmul.f32 %v1099_v33, %v4989_v26  ;;  %v1169_v59 = vmul.f32 %v1099_v33, %v5050_v25  ;;  %v1199_v16 = vpack.c.bf16 %v4946_v55, %v4946_v55  ;;  %v3211_v21 = vld [vmem:[%s6295_s9 + $0xd0] sm:$0xf] }
 0x16d   :  { %v1163_v63 = vmul.f32 %v1099_v33, %v5077_v7  ;;  %v1159_v61 = vmul.f32 %v1099_v33, %v54_v44  ;;  %v1161_v62 = vmul.f32 %v1099_v33, %v56_v47  ;;  %v1155_v5 = vmul.f32 %v1099_v33, %v50_v56 }
 0x16e   :  { %1205 = vmatpush.bf16.xpose.msra.mxu0 %v1138_v51  ;;  %1333 = vmatpush.bf16.msrb.mxu2 %v1184_v57  ;;  %v1195_v40 = vpack.c.bf16 %v1177_v2, %v1175_v43  ;;  %v1173_v51 = vmul.f32 %v1099_v33, %v5022_v3  ;;  %v1135_v57 = vpack.c.bf16 %v1105_v14, %v1103_v12  ;;  %v3774_v2 = vld [vmem:[%s6295_s9 + $0x64] sm:$0xf]  ;;  %v3157_v12 = vld [vmem:[%s6295_s9 + $0x68] sm:$0xf0] }
 0x16f   :  { %v1191_v60 = vpack.c.bf16 %v1169_v59, %v1167_v27  ;;  %v1165_v3 = vmul.f32 %v1099_v33, %v5082_v0  ;;  %v1157_v24 = vmul.f32 %v1099_v33, %v52_v10  ;;  %v1151_v6 = vmul.f32 %v1099_v33, %v46_v23  ;;  %v353_v0 = vld [vmem:[%s6287_s1] sm:$0xff]  ;;  %v3788_v23 = vld [vmem:[%s6295_s9 + $0xd4] sm:$0xf] }
 0x170   :  { %v1193_v26 = vpack.c.bf16 %v1173_v51, %v1171_v42  ;;  %v3168_v20 = vor.u32 %v3776_v54, %v3165_v18  ;;  %v3203_v42 = vld [vmem:[%s6295_s9 + $0xc0] sm:$0xf]  ;;  %v3787_v51 = vld [vmem:[%s6295_s9 + $0xc4] sm:$0xf0]  ;;  %v3772_v27 = vld [vmem:[%s6295_s9 + $0x54] sm:$0xf] }
 0x171   :  { %v1189_v46 = vpack.c.bf16 %v1165_v3, %v1163_v63  ;;  %v1185_v25 = vpack.c.bf16 %v1157_v24, %v1155_v5  ;;  %v3786_v59 = vld [vmem:[%s6295_s9 + $0xc4] sm:$0xf]  ;;  %v3141_v5 = vld [vmem:[%s6295_s9 + $0x48] sm:$0xf0] }
 0x172   :  { %1334 = vmatpush.bf16.msrb.mxu2 %v1182_v4  ;;  %v1187_v4 = vpack.c.bf16 %v1161_v62, %v1159_v61  ;;  %1579 = vmatpush.bf16.msrb.mxu3 %v3168_v20  ;;  %v3204_v61 = vor.u32 %v3787_v51, %v3203_v42  ;;  %v3771_v62 = vld [vmem:[%s6295_s9 + $0x44] sm:$0xf0]  ;;  %v3766_v20 = vld [vmem:[%s6295_s9 + $0x24] sm:$0xf]  ;;  %v3117_v42 = vld [vmem:[%s6295_s9 + $0x18] sm:$0xf0] }
 0x174   :  { %1218 = vmatpush.bf16.xpose.msra.mxu1 %v1139_v9  ;;  %v1153_v9 = vmul.f32 %v1099_v33, %v48_v1  ;;  %v3213_v1 = vld [vmem:[%s6295_s9 + $0xd8] sm:$0xf0] }
 0x176   :  { %1206 = vmatpush.bf16.xpose.msra.mxu0 %v1136_v17  ;;  %v1183_v55 = vpack.c.bf16 %v1153_v9, %v1151_v6  ;;  %v3785_v6 = vld [vmem:[%s6295_s9 + $0xb4] sm:$0xf0]  ;;  %v3784_v9 = vld [vmem:[%s6295_s9 + $0xb4] sm:$0xf] }
 0x17c   :  { %1219 = vmatpush.bf16.xpose.msra.mxu1 %v1137_v22  ;;  %v3789_v22 = vld [vmem:[%s6295_s9 + $0xd4] sm:$0xf0] }
 0x17d   :  { %v3212_v14 = vor.u32 %v3789_v22, %v3211_v21  ;;  %v3171_v22 = vld [vmem:[%s6295_s9 + $0x80] sm:$0xf] }
 0x17e   :  { %1207 = vmatpush.bf16.xpose.msra.mxu0 %v1134_v36  ;;  %v3155_v36 = vld [vmem:[%s6295_s9 + $0x60] sm:$0xf] }
 0x184   :  { %1220 = vmatpush.bf16.xpose.msra.mxu1 %v1135_v57  ;;  %v3216_v57 = vor.u32 %v3788_v23, %v3213_v1  ;;  %v3779_v23 = vld [vmem:[%s6295_s9 + $0x84] sm:$0xf0] }
 0x185   :  { %1208 = vmatmul.bf16.vlgmr.msra.gmra.mxu0 %v1198_v58  ;;  %v3147_v58 = vld [vmem:[%s6295_s9 + $0x50] sm:$0xf] }
 0x186   :  { %1340 = vmatpush.bf16.msrb.mxu0 %v1197_v37  ;;  %v3775_v37 = vld [vmem:[%s6295_s9 + $0x64] sm:$0xf0] }
 0x187   :  { %v3156_v43 = vor.u32 %v3775_v37, %v3155_v36  ;;  %v3172_v36 = vor.u32 %v3779_v23, %v3171_v22  ;;  %v3778_v37 = vld [vmem:[%s6295_s9 + $0x84] sm:$0xf]  ;;  %v3525_v23 = vld [vmem:[%s6297_s11 + $0x258] sm:$0xf0] }
 0x188   :  { %v3866_v22 = vld [vmem:[%s6297_s11 + $0x244] sm:$0xf] }
 0x18a   :  { %1341 = vmatpush.bf16.msrb.mxu0 %v1195_v40  ;;  %v3160_v40 = vor.u32 %v3774_v2, %v3157_v12  ;;  %v3115_v2 = vld [vmem:[%s6295_s9 + $0x10] sm:$0xf] }
 0x18b   :  { %1221 = vmatmul.bf16.vlgmr.msra.gmra.mxu1 %v1199_v16  ;;  %v3205_v16 = vld [vmem:[%s6295_s9 + $0xc8] sm:$0xf0] }
 0x18c   :  { %1553 = vmatpush.bf16.msrb.mxu1 %v3164_v53  ;;  %1580 = vmatpush.bf16.msrb.mxu3 %v3160_v40  ;;  %v3208_v24 = vor.u32 %v3786_v59, %v3205_v16  ;;  %v3767_v53 = vld [vmem:[%s6295_s9 + $0x24] sm:$0xf0]  ;;  %v3764_v40 = vld [vmem:[%s6295_s9 + $0x14] sm:$0xf]  ;;  %v3109_v16 = vld [vmem:[%s6295_s9 + $0x8] sm:$0xf0] }
 0x18e   :  { %1342 = vmatpush.bf16.msrb.mxu0 %v1193_v26  ;;  %v3773_v26 = vld [vmem:[%s6295_s9 + $0x54] sm:$0xf0] }
 0x18f   :  { %v3148_v63 = vor.u32 %v3773_v26, %v3147_v58  ;;  %v3107_v58 = vld [vmem:[%s6295_s9] sm:$0xf]  ;;  %v3763_v26 = vld [vmem:[%s6295_s9 + $0x4] sm:$0xf0] }
 0x190   :  { %1554 = vmatpush.bf16.msrb.mxu1 %v3156_v43  ;;  %v3173_v43 = vld [vmem:[%s6295_s9 + $0x88] sm:$0xf0]  ;;  %v3108_v59 = vor.u32 %v3763_v26, %v3107_v58 }
 0x191   :  { %v3176_v12 = vor.u32 %v3778_v37, %v3173_v43  ;;  %v3815_v37 = vld [vmem:[%s6297_s11 + $0xa4] sm:$0xf0]  ;;  %v3812_v43 = vld [vmem:[%s6297_s11 + $0x94] sm:$0xf]  ;;  %v3501_v58 = vld [vmem:[%s6297_s11 + $0x228] sm:$0xf0] }
 0x192   :  { %1343 = vmatpush.bf16.msrb.mxu0 %v1191_v60  ;;  %v3149_v60 = vld [vmem:[%s6295_s9 + $0x58] sm:$0xf0] }
 0x193   :  { %v3152_v3 = vor.u32 %v3772_v27, %v3149_v60  ;;  %v3762_v27 = vld [vmem:[%s6295_s9 + $0x4] sm:$0xf] }
 0x194   :  { %1555 = vmatpush.bf16.msrb.mxu1 %v3148_v63  ;;  %v3112_v60 = vor.u32 %v3762_v27, %v3109_v16  ;;  %v3403_v63 = vld [vmem:[%s6297_s11 + $0x150] sm:$0xf]  ;;  %v3283_v27 = vld [vmem:[%s6297_s11 + $0x60] sm:$0xf]  ;;  %v3806_v16 = vld [vmem:[%s6297_s11 + $0x64] sm:$0xf] }
 0x195   :  { %1581 = vmatpush.bf16.msrb.mxu3 %v3152_v3  ;;  %v3839_v3 = vld [vmem:[%s6297_s11 + $0x164] sm:$0xf0] }
 0x196   :  { %1344 = vmatpush.bf16.msrb.mxu0 %v1189_v46  ;;  %v3139_v46 = vld [vmem:[%s6295_s9 + $0x40] sm:$0xf] }
 0x19a   :  { %1345 = vmatpush.bf16.msrb.mxu0 %v1187_v4  ;;  %v3770_v4 = vld [vmem:[%s6295_s9 + $0x44] sm:$0xf] }
 0x19e   :  { %1346 = vmatpush.bf16.msrb.mxu0 %v1185_v25  ;;  %v3195_v25 = vld [vmem:[%s6295_s9 + $0xb0] sm:$0xf] }
 0x1a2   :  { %1347 = vmatpush.bf16.msrb.mxu0 %v1183_v55  ;;  %v3197_v55 = vld [vmem:[%s6295_s9 + $0xb8] sm:$0xf0] }
 0x1a6   :  { %1592 = vmatpush.bf16.msra.mxu0 %v3232_v38  ;;  %v3781_v38 = vld [vmem:[%s6295_s9 + $0x94] sm:$0xf0] }
 0x1a7   :  { %v3180_v45 = vor.u32 %v3781_v38, %v3179_v35  ;;  %v3331_v35 = vld [vmem:[%s6297_s11 + $0xc0] sm:$0xf]  ;;  %v3821_v38 = vld [vmem:[%s6297_s11 + $0xd4] sm:$0xf0] }
 0x1aa   :  { %1593 = vmatpush.bf16.msra.mxu0 %v3224_v19  ;;  %v3123_v19 = vld [vmem:[%s6295_s9 + $0x20] sm:$0xf] }
 0x1ab   :  { %v3124_v21 = vor.u32 %v3767_v53, %v3123_v19 }
 0x1ae   :  { %1594 = vmatpush.bf16.msra.mxu0 %v3216_v57  ;;  %v3120_v57 = vor.u32 %v3764_v40, %v3117_v42  ;;  %v3499_v40 = vld [vmem:[%s6297_s11 + $0x210] sm:$0xf] }
 0x1b2   :  { %1595 = vmatpush.bf16.msra.mxu0 %v3208_v24 }
 0x202   :  { %v1209_v11 = vpop.f32.mrf.mxu0 }
 0x208   :  { %v1222_v7 = vpop.f32.mrf.mxu1 }
 0x209   :  { %v1223_v17 = vadd.f32 %v1222_v7, %v1209_v11  ;;  %v3140_v11 = vor.u32 %v3771_v62, %v3139_v46  ;;  %v3144_v7 = vor.u32 %v3770_v4, %v3141_v5  ;;  %v3836_v46 = vld [vmem:[%s6297_s11 + $0x154] sm:$0xf]  ;;  %v3405_v62 = vld [vmem:[%s6297_s11 + $0x168] sm:$0xf0]  ;;  %v3379_v4 = vld [vmem:[%s6297_s11 + $0x120] sm:$0xf] }
 0x20a   :  { %v1211_v44 = vpop.f32.mrf.mxu0  ;;  %v3833_v5 = vld [vmem:[%s6297_s11 + $0x134] sm:$0xf0]  ;;  %v3408_v24 = vor.u32 %v3836_v46, %v3405_v62 }
 0x20b   :  { %v1226_v47 = vadd.f32 %v1223_v17, %v353_v0  ;;  %v3131_v0 = vld [vmem:[%s6295_s9 + $0x30] sm:$0xf]  ;;  %v3196_v17 = vor.u32 %v3785_v6, %v3195_v25  ;;  %v3769_v44 = vld [vmem:[%s6295_s9 + $0x34] sm:$0xf0]  ;;  %1556 = vmatpush.bf16.msrb.mxu1 %v3140_v11  ;;  %1582 = vmatpush.bf16.msrb.mxu3 %v3144_v7  ;;  %v3830_v25 = vld [vmem:[%s6297_s11 + $0x124] sm:$0xf] }
 0x20c   :  { %v3132_v13 = vor.u32 %v3769_v44, %v3131_v0  ;;  %v3381_v6 = vld [vmem:[%s6297_s11 + $0x138] sm:$0xf0]  ;;  %v3887_v11 = vld [vmem:[%s6297_s11 + $0x2e4] sm:$0xf0]  ;;  %v3884_v7 = vld [vmem:[%s6297_s11 + $0x2d4] sm:$0xf] }
 0x20d   :  { %1227 = vmax.xlane.f32.xlu0 %v1226_v47  ;;  %v3597_v0 = vld [vmem:[%s6297_s11 + $0x2e8] sm:$0xf0] }
 0x20f   :  { %1557 = vmatpush.bf16.msrb.mxu1 %v3132_v13 }
 0x210   :  { %v1224_v15 = vpop.f32.mrf.mxu1 }
 0x211   :  { %v3133_v15 = vld [vmem:[%s6295_s9 + $0x38] sm:$0xf0] }
 0x213   :  { %1558 = vmatpush.bf16.msrb.mxu1 %v3124_v21  ;;  %v3332_v21 = vor.u32 %v3821_v38, %v3331_v35  ;;  %v3840_v35 = vld [vmem:[%s6297_s11 + $0x16c] sm:$0xf0]  ;;  %v3837_v38 = vld [vmem:[%s6297_s11 + $0x15c] sm:$0xf] }
 0x280   :  { %v1228_v56 = vpop.xlane.xlu0 %1227 }
 0x281   :  { %v1229_v10 = vsub.f32 %v1226_v47, %v1228_v56  ;;  %v3768_v47 = vld [vmem:[%s6295_s9 + $0x34] sm:$0xf]  ;;  %v3200_v56 = vor.u32 %v3784_v9, %v3197_v55  ;;  %v3595_v9 = vld [vmem:[%s6297_s11 + $0x2d0] sm:$0xf]  ;;  %v3380_v55 = vor.u32 %v3833_v5, %v3379_v4  ;;  %v3857_v4 = vld [vmem:[%s6297_s11 + $0x1f4] sm:$0xf0] }
 0x282   :  { %v3136_v30 = vor.u32 %v3768_v47, %v3133_v15  ;;  %v3596_v44 = vor.u32 %v3887_v11, %v3595_v9  ;;  %v3600_v47 = vor.u32 %v3884_v7, %v3597_v0  ;;  %v3355_v15 = vld [vmem:[%s6297_s11 + $0xf0] sm:$0xf]  ;;  %v3854_v5 = vld [vmem:[%s6297_s11 + $0x1e4] sm:$0xf]  ;;  %v3800_v11 = vld [vmem:[%s6297_s11 + $0x34] sm:$0xf] }
 0x283   :  { %v1230_v33 = vmul.f32 1.442695, %v1229_v10  ;;  %v3187_v10 = vld [vmem:[%s6295_s9 + $0xa0] sm:$0xf]  ;;  %1596 = vmatpush.bf16.msra.mxu0 %v3200_v56  ;;  %v3827_v56 = vld [vmem:[%s6297_s11 + $0x104] sm:$0xf0] }
 0x284   :  { %1583 = vmatpush.bf16.msrb.mxu3 %v3136_v30  ;;  %v3878_v30 = vld [vmem:[%s6297_s11 + $0x2a4] sm:$0xf]  ;;  %v3261_v7 = vld [vmem:[%s6297_s11 + $0x48] sm:$0xf0] }
 0x285   :  { %3891 = vpow2.f32 %v1230_v33  ;;  %v3783_v33 = vld [vmem:[%s6295_s9 + $0xa4] sm:$0xf0] }
 0x28b   :  { %v5172_v28 = vpop.eup %3891 }
 0x28c   :  { %1248 = vmatmul.f32.vlgmr.msra.gmra.mxu2 %v5172_v28 }
 0x28d   :  { %1566 = vmatpush.bf16.msra.mxu2 %v3228_v31  ;;  %v3188_v31 = vor.u32 %v3783_v33, %v3187_v10  ;;  %v3824_v10 = vld [vmem:[%s6297_s11 + $0xf4] sm:$0xf]  ;;  %v3357_v33 = vld [vmem:[%s6297_s11 + $0x108] sm:$0xf0] }
 0x291   :  { %1567 = vmatpush.bf16.msra.mxu2 %v3220_v49  ;;  %v3184_v49 = vor.u32 %v3780_v39, %v3181_v41  ;;  %v3360_v39 = vor.u32 %v3824_v10, %v3357_v33  ;;  %v3547_v41 = vld [vmem:[%s6297_s11 + $0x270] sm:$0xf]  ;;  %v3453_v10 = vld [vmem:[%s6297_s11 + $0x1c8] sm:$0xf0] }
 0x295   :  { %1568 = vmatpush.bf16.msra.mxu2 %v3212_v14  ;;  %v3765_v14 = vld [vmem:[%s6295_s9 + $0x14] sm:$0xf0] }
 0x296   :  { %v3116_v51 = vor.u32 %v3765_v14, %v3115_v2  ;;  %v3309_v2 = vld [vmem:[%s6297_s11 + $0xa8] sm:$0xf0]  ;;  %v3528_v14 = vor.u32 %v3866_v22, %v3525_v23  ;;  %v3885_v22 = vld [vmem:[%s6297_s11 + $0x2dc] sm:$0xf]  ;;  %v3605_v23 = vld [vmem:[%s6297_s11 + $0x2f0] sm:$0xf0] }
 0x297   :  { %v3312_v26 = vor.u32 %v3812_v43, %v3309_v2  ;;  %v3834_v43 = vld [vmem:[%s6297_s11 + $0x13c] sm:$0xf0]  ;;  %v3831_v2 = vld [vmem:[%s6297_s11 + $0x12c] sm:$0xf] }
 0x298   :  { %1559 = vmatpush.bf16.msrb.mxu1 %v3116_v51  ;;  %v3863_v51 = vld [vmem:[%s6297_s11 + $0x224] sm:$0xf0] }
 0x299   :  { %1569 = vmatpush.bf16.msra.mxu2 %v3204_v61  ;;  %v3404_v61 = vor.u32 %v3839_v3, %v3403_v63  ;;  %v3500_v3 = vor.u32 %v3863_v51, %v3499_v40  ;;  %v3608_v51 = vor.u32 %v3885_v22, %v3605_v23  ;;  %v3804_v22 = vld [vmem:[%s6297_s11 + $0x4c] sm:$0xf0]  ;;  %v3801_v23 = vld [vmem:[%s6297_s11 + $0x3c] sm:$0xf] }
 0x29c   :  { %1560 = vmatpush.bf16.msrb.mxu1 %v3108_v59  ;;  %v3809_v59 = vld [vmem:[%s6297_s11 + $0x74] sm:$0xf0] }
 0x29d   :  { %1570 = vmatpush.bf16.msra.mxu2 %v3196_v17  ;;  %v3384_v17 = vor.u32 %v3830_v25, %v3381_v6  ;;  %v3284_v25 = vor.u32 %v3809_v59, %v3283_v27  ;;  %v3879_v27 = vld [vmem:[%s6297_s11 + $0x2ac] sm:$0xf]  ;;  %v3581_v59 = vld [vmem:[%s6297_s11 + $0x2c0] sm:$0xf0] }
 0x2a0   :  { %2200 = vmatpush.bf16.msra.mxu1 %v3404_v61  ;;  %v3475_v61 = vld [vmem:[%s6297_s11 + $0x1e0] sm:$0xf] }
 0x2a1   :  { %1571 = vmatpush.bf16.msra.mxu2 %v3188_v31  ;;  %v3573_v31 = vld [vmem:[%s6297_s11 + $0x2b8] sm:$0xf0]  ;;  %v3476_v0 = vor.u32 %v3857_v4, %v3475_v61  ;;  %v3365_v61 = vld [vmem:[%s6297_s11 + $0x110] sm:$0xf0]  ;;  %v3584_v4 = vor.u32 %v3879_v27, %v3581_v59  ;;  %v3245_v27 = vld [vmem:[%s6297_s11 + $0x20] sm:$0xf0] }
 0x2a4   :  { %2201 = vmatpush.bf16.msra.mxu1 %v3380_v55  ;;  %v3803_v55 = vld [vmem:[%s6297_s11 + $0x44] sm:$0xf0] }
 0x2a5   :  { %1572 = vmatpush.bf16.msra.mxu2 %v3180_v45  ;;  %v3875_v45 = vld [vmem:[%s6297_s11 + $0x284] sm:$0xf0] }
 0x2a6   :  { %v3548_v19 = vor.u32 %v3875_v45, %v3547_v41  ;;  %v3413_v41 = vld [vmem:[%s6297_s11 + $0x170] sm:$0xf0] }
 0x2a9   :  { %1573 = vmatpush.bf16.msra.mxu2 %v3172_v36  ;;  %v3307_v36 = vld [vmem:[%s6297_s11 + $0x90] sm:$0xf] }
 0x2aa   :  { %v3308_v42 = vor.u32 %v3815_v37, %v3307_v36  ;;  %v3416_v36 = vor.u32 %v3837_v38, %v3413_v41  ;;  %v3387_v37 = vld [vmem:[%s6297_s11 + $0x128] sm:$0xf]  ;;  %v3810_v41 = vld [vmem:[%s6297_s11 + $0x7c] sm:$0xf0] }
 0x30f   :  { %v1249_v29 = vpop.f32.mrf.mxu2 }
 0x310   :  { %3104 = vmatmul.msk.f32.vlgmr.msra.gmra.mxu3 %vm1252_vm0, %v1249_v29  ;;  %v3782_v29 = vld [vmem:[%s6295_s9 + $0xa4] sm:$0xf] }
 0x311   :  { %v3192_v34 = vor.u32 %v3782_v29, %v3189_v52  ;;  %v3571_v29 = vld [vmem:[%s6297_s11 + $0x2a0] sm:$0xf]  ;;  %v3881_v52 = vld [vmem:[%s6297_s11 + $0x2b4] sm:$0xf0] }
 0x312   :  { %v3572_v13 = vor.u32 %v3881_v52, %v3571_v29  ;;  %v3264_v52 = vor.u32 %v3800_v11, %v3261_v7  ;;  %v3555_v7 = vld [vmem:[%s6297_s11 + $0x278] sm:$0xf] }
 0x313   :  { %1597 = vmatpush.bf16.msra.mxu0 %v3192_v34  ;;  %v3576_v34 = vor.u32 %v3878_v30, %v3573_v31  ;;  %v3794_v30 = vld [vmem:[%s6297_s11 + $0x4] sm:$0xf]  ;;  %v3237_v31 = vld [vmem:[%s6297_s11 + $0x18] sm:$0xf0] }
 0x317   :  { %1598 = vmatpush.bf16.msra.mxu0 %v3184_v49  ;;  %v3872_v49 = vld [vmem:[%s6297_s11 + $0x274] sm:$0xf] }
 0x31b   :  { %1599 = vmatpush.bf16.msra.mxu0 %v3176_v12 }
 0x393   :  { %v1321_v32 = vpop.f32.mrf.mxu3 }
 0x394   :  { %3893 = vrcp.f32 %v1321_v32  ;;  %v3356_v32 = vor.u32 %v3827_v56, %v3355_v15  ;;  %v3851_v15 = vld [vmem:[%s6297_s11 + $0x1c4] sm:$0xf0]  ;;  %v3848_v56 = vld [vmem:[%s6297_s11 + $0x1b4] sm:$0xf] }
 0x395   :  { %v3456_v45 = vor.u32 %v3848_v56, %v3453_v10  ;;  %v3816_v56 = vld [vmem:[%s6297_s11 + $0xac] sm:$0xf0] }
 0x396   :  { %2202 = vmatpush.bf16.msra.mxu1 %v3356_v32 }
 0x39a   :  { %v3894_v50 = vpop.eup %3893  ;;  %2203 = vmatpush.bf16.msra.mxu1 %v3332_v21  ;;  %v3240_v21 = vor.u32 %v3794_v30, %v3237_v31  ;;  %v3870_v31 = vld [vmem:[%s6297_s11 + $0x25c] sm:$0xf0] }
 0x39b   :  { %v1325_v54 = vmul.f32 %v3894_v50, %v5172_v28  ;;  %v3125_v28 = vld [vmem:[%s6295_s9 + $0x28] sm:$0xf0]  ;;  %v3818_v50 = vld [vmem:[%s6297_s11 + $0xc4] sm:$0xf] }
 0x39c   :  { %v3128_v1 = vor.u32 %v3766_v20, %v3125_v28  ;;  %v3523_v20 = vld [vmem:[%s6297_s11 + $0x240] sm:$0xf]  ;;  %v3869_v28 = vld [vmem:[%s6297_s11 + $0x254] sm:$0xf0] }
 0x39d   :  { %v1326_v18 = vpack.c.bf16 %v1325_v54, %v1325_v54  ;;  %v3333_v54 = vld [vmem:[%s6297_s11 + $0xd8] sm:$0xf0]  ;;  %v3524_v12 = vor.u32 %v3869_v28, %v3523_v20  ;;  %v3888_v28 = vld [vmem:[%s6297_s11 + $0x2ec] sm:$0xf0] }
 0x39e   :  { %1584 = vmatpush.bf16.msrb.mxu3 %v3128_v1  ;;  %v3336_v1 = vor.u32 %v3818_v50, %v3333_v54  ;;  %2204 = vmatpush.bf16.msra.mxu1 %v3308_v42  ;;  %v3845_v50 = vld [vmem:[%s6297_s11 + $0x194] sm:$0xf0] }
 0x39f   :  { %1335 = vmatmul.bf16.vlgmr.msrb.gmra.mxu2 %v1326_v18  ;;  %1348 = vmatmul.bf16.vlgmr.msrb.gmra.mxu0 %v1326_v18  ;;  %v3549_v18 = vld [vmem:[%s6297_s11 + $0x288] sm:$0xf0] }
 0x3a0   :  { %2213 = vmatpush.bf16.msrb.mxu2 %v3596_v44  ;;  %2239 = vmatpush.bf16.msrb.mxu0 %v3600_v47  ;;  %v3552_v53 = vor.u32 %v3872_v49, %v3549_v18  ;;  %v3451_v44 = vld [vmem:[%s6297_s11 + $0x1b0] sm:$0xf]  ;;  %v3235_v47 = vld [vmem:[%s6297_s11] sm:$0xf]  ;;  %v3842_v18 = vld [vmem:[%s6297_s11 + $0x184] sm:$0xf] }
 0x3a1   :  { %v3427_v49 = vld [vmem:[%s6297_s11 + $0x180] sm:$0xf] }
 0x3a2   :  { %1585 = vmatpush.bf16.msrb.mxu3 %v3120_v57  ;;  %v3860_v57 = vld [vmem:[%s6297_s11 + $0x214] sm:$0xf]  ;;  %2205 = vmatpush.bf16.msra.mxu1 %v3284_v25  ;;  %v3339_v25 = vld [vmem:[%s6297_s11 + $0xc8] sm:$0xf] }
 0x3a3   :  { %v3504_v46 = vor.u32 %v3860_v57, %v3501_v58  ;;  %v3579_v57 = vld [vmem:[%s6297_s11 + $0x2a8] sm:$0xf] }
 0x3a4   :  { %2214 = vmatpush.bf16.msrb.mxu2 %v3572_v13  ;;  %2240 = vmatpush.bf16.msrb.mxu0 %v3576_v34  ;;  %v3797_v13 = vld [vmem:[%s6297_s11 + $0x14] sm:$0xf0] }
 0x3a5   :  { %v3411_v34 = vld [vmem:[%s6297_s11 + $0x158] sm:$0xf]  ;;  %v3236_v20 = vor.u32 %v3797_v13, %v3235_v47  ;;  %v3557_v47 = vld [vmem:[%s6297_s11 + $0x290] sm:$0xf0]  ;;  %v3531_v13 = vld [vmem:[%s6297_s11 + $0x248] sm:$0xf] }
 0x3a6   :  { %1586 = vmatpush.bf16.msrb.mxu3 %v3112_v60  ;;  %v3285_v60 = vld [vmem:[%s6297_s11 + $0x78] sm:$0xf0] }
 0x3a7   :  { %v3288_v6 = vor.u32 %v3806_v16, %v3285_v60  ;;  %v3388_v16 = vor.u32 %v3834_v43, %v3387_v37  ;;  %v3483_v43 = vld [vmem:[%s6297_s11 + $0x1e8] sm:$0xf] }
 0x3a8   :  { %2215 = vmatpush.bf16.msrb.mxu2 %v3548_v19  ;;  %2241 = vmatpush.bf16.msrb.mxu0 %v3552_v53  ;;  %v3429_v19 = vld [vmem:[%s6297_s11 + $0x198] sm:$0xf0]  ;;  %v3603_v53 = vld [vmem:[%s6297_s11 + $0x2d8] sm:$0xf] }
 0x3a9   :  { %v3432_v40 = vor.u32 %v3842_v18, %v3429_v19  ;;  %v3604_v42 = vor.u32 %v3888_v28, %v3603_v53  ;;  %v3861_v53 = vld [vmem:[%s6297_s11 + $0x21c] sm:$0xf] }
 0x3aa   :  { %2226 = vmatpush.bf16.msra.mxu3 %v3408_v24  ;;  %v3477_v24 = vld [vmem:[%s6297_s11 + $0x1f8] sm:$0xf0] }
 0x3ac   :  { %2216 = vmatpush.bf16.msrb.mxu2 %v3524_v12  ;;  %2242 = vmatpush.bf16.msrb.mxu0 %v3528_v14  ;;  %v3389_v12 = vld [vmem:[%s6297_s11 + $0x140] sm:$0xf0]  ;;  %v3428_v14 = vor.u32 %v3845_v50, %v3427_v49  ;;  %v3507_v50 = vld [vmem:[%s6297_s11 + $0x218] sm:$0xf] }
 0x3ad   :  { %v3392_v60 = vor.u32 %v3831_v2, %v3389_v12  ;;  %v3293_v49 = vld [vmem:[%s6297_s11 + $0x80] sm:$0xf0]  ;;  %v3858_v2 = vld [vmem:[%s6297_s11 + $0x1fc] sm:$0xf0]  ;;  %v3855_v12 = vld [vmem:[%s6297_s11 + $0x1ec] sm:$0xf] }
 0x3ae   :  { %2227 = vmatpush.bf16.msra.mxu3 %v3384_v17  ;;  %v3480_v17 = vor.u32 %v3854_v5, %v3477_v24 }
 0x3b0   :  { %2217 = vmatpush.bf16.msrb.mxu2 %v3500_v3  ;;  %2243 = vmatpush.bf16.msrb.mxu0 %v3504_v46  ;;  %v3828_v3 = vld [vmem:[%s6297_s11 + $0x10c] sm:$0xf0]  ;;  %v3825_v46 = vld [vmem:[%s6297_s11 + $0xfc] sm:$0xf] }
 0x3b1   :  { %v3368_v24 = vor.u32 %v3825_v46, %v3365_v61  ;;  %v3461_v46 = vld [vmem:[%s6297_s11 + $0x1d0] sm:$0xf0] }
 0x3b2   :  { %2228 = vmatpush.bf16.msra.mxu3 %v3360_v39 }
 0x3b4   :  { %2218 = vmatpush.bf16.msrb.mxu2 %v3476_v0  ;;  %2244 = vmatpush.bf16.msrb.mxu0 %v3480_v17  ;;  %v3876_v0 = vld [vmem:[%s6297_s11 + $0x28c] sm:$0xf0]  ;;  %v3873_v17 = vld [vmem:[%s6297_s11 + $0x27c] sm:$0xf] }
 0x3b5   :  { %v3560_v10 = vor.u32 %v3873_v17, %v3557_v47  ;;  %v3419_v47 = vld [vmem:[%s6297_s11 + $0x160] sm:$0xf] }
 0x3b6   :  { %2229 = vmatpush.bf16.msra.mxu3 %v3336_v1  ;;  %v3412_v1 = vor.u32 %v3840_v35, %v3411_v34  ;;  %v3533_v34 = vld [vmem:[%s6297_s11 + $0x260] sm:$0xf0]  ;;  %v3532_v35 = vor.u32 %v3870_v31, %v3531_v13  ;;  %v3395_v31 = vld [vmem:[%s6297_s11 + $0x130] sm:$0xf] }
 0x3b8   :  { %2245 = vmatpush.bf16.msrb.mxu0 %v3456_v45 }
 0x3ba   :  { %2230 = vmatpush.bf16.msra.mxu3 %v3312_v26  ;;  %v3882_v26 = vld [vmem:[%s6297_s11 + $0x2bc] sm:$0xf0] }
 0x3bc   :  { %2246 = vmatpush.bf16.msrb.mxu0 %v3432_v40  ;;  %v3485_v40 = vld [vmem:[%s6297_s11 + $0x200] sm:$0xf0] }
 0x3be   :  { %2231 = vmatpush.bf16.msra.mxu3 %v3288_v6  ;;  %v3822_v6 = vld [vmem:[%s6297_s11 + $0xdc] sm:$0xf0] }
 0x3c2   :  { %2232 = vmatpush.bf16.msra.mxu3 %v3264_v52  ;;  %v3317_v52 = vld [vmem:[%s6297_s11 + $0xb0] sm:$0xf0] }
 0x3c6   :  { %2233 = vmatpush.bf16.msra.mxu3 %v3240_v21  ;;  %v3267_v21 = vld [vmem:[%s6297_s11 + $0x38] sm:$0xf] }
 0x41c   :  { %v1349_v63 = vpop.f32.mrf.mxu0 }
 0x41d   :  { %v1350_v62 = vadd.f32 %v1349_v63, %v4682_v8  ;;  %v3259_v8 = vld [vmem:[%s6297_s11 + $0x30] sm:$0xf]  ;;  %v3363_v63 = vld [vmem:[%s6297_s11 + $0xf8] sm:$0xf] }
 0x41e   :  { %v3260_v29 = vor.u32 %v3803_v55, %v3259_v8  ;;  %v3364_v5 = vor.u32 %v3828_v3, %v3363_v63  ;;  %v3819_v8 = vld [vmem:[%s6297_s11 + $0xcc] sm:$0xf]  ;;  %v3340_v55 = vor.u32 %v3822_v6, %v3339_v25  ;;  %v3849_v63 = vld [vmem:[%s6297_s11 + $0x1bc] sm:$0xf] }
 0x41f   :  { %v1354_v9 = vpack.c.bf16 %v1350_v62, %v1350_v62  ;;  %v3580_v62 = vor.u32 %v3882_v26, %v3579_v57  ;;  %v3488_v57 = vor.u32 %v3855_v12, %v3485_v40  ;;  %v3795_v26 = vld [vmem:[%s6297_s11 + $0xc] sm:$0xf]  ;;  %v3464_v61 = vor.u32 %v3849_v63, %v3461_v46  ;;  %v3880_v12 = vld [vmem:[%s6297_s11 + $0x2b4] sm:$0xf]  ;;  %v3877_v63 = vld [vmem:[%s6297_s11 + $0x294] sm:$0xf0] }
 0x420   :  { %2206 = vmatpush.bf16.msra.mxu1 %v3260_v29  ;;  %v3813_v29 = vld [vmem:[%s6297_s11 + $0x9c] sm:$0xf]  ;;  %v3248_v59 = vor.u32 %v3795_v26, %v3245_v27  ;;  %v3820_v26 = vld [vmem:[%s6297_s11 + $0xd4] sm:$0xf]  ;;  %v3349_v27 = vld [vmem:[%s6297_s11 + $0xe8] sm:$0xf0] }
 0x421   :  { %1574 = vmatmul.bf16.vlgmr.msra.gmra.mxu2 %v1354_v9  ;;  %1600 = vmatmul.bf16.vlgmr.msra.gmra.mxu0 %v1354_v9  ;;  %v3341_v9 = vld [vmem:[%s6297_s11 + $0xe0] sm:$0xf0]  ;;  %v3320_v30 = vor.u32 %v3813_v29, %v3317_v52  ;;  %v3565_v46 = vld [vmem:[%s6297_s11 + $0x298] sm:$0xf0] }
 0x422   :  { %v1336_v33 = vpop.f32.mrf.mxu2  ;;  %2291 = vmatpush.bf16.msra.mxu0 %v3608_v51  ;;  %v3344_v11 = vor.u32 %v3819_v8, %v3341_v9  ;;  %v3798_v51 = vld [vmem:[%s6297_s11 + $0x1c] sm:$0xf0] }
 0x423   :  { %v1337_v32 = vadd.f32 %v1336_v33, %v4638_v48  ;;  %v3452_v48 = vor.u32 %v3851_v15, %v3451_v44  ;;  %v3556_v44 = vor.u32 %v3876_v0, %v3555_v7  ;;  %v3315_v15 = vld [vmem:[%s6297_s11 + $0x98] sm:$0xf]  ;;  %v1387_v9 = vld [vmem:[%s6296_s10] sm:$0x3] }
 0x424   :  { %v1351_v39 = vpop.f32.mrf.mxu0  ;;  %2207 = vmatpush.bf16.msra.mxu1 %v3236_v20  ;;  %v3316_v33 = vor.u32 %v3816_v56, %v3315_v15  ;;  %v3509_v20 = vld [vmem:[%s6297_s11 + $0x230] sm:$0xf0]  ;;  %v3841_v56 = vld [vmem:[%s6297_s11 + $0x174] sm:$0xf0] }
 0x425   :  { %v1353_v54 = vpack.c.bf16 %v1337_v32, %v1337_v32  ;;  %2219 = vmatpush.bf16.msrb.mxu2 %v3452_v48  ;;  %v3867_v32 = vld [vmem:[%s6297_s11 + $0x24c] sm:$0xf]  ;;  %v3291_v39 = vld [vmem:[%s6297_s11 + $0x68] sm:$0xf]  ;;  %v3512_v28 = vor.u32 %v3861_v53, %v3509_v20  ;;  %v3420_v13 = vor.u32 %v3841_v56, %v3419_v47  ;;  %v3371_v20 = vld [vmem:[%s6297_s11 + $0x100] sm:$0xf] }
 0x426   :  { %2292 = vmatpush.bf16.msra.mxu0 %v3584_v4  ;;  %v3536_v38 = vor.u32 %v3867_v32, %v3533_v34  ;;  %v3807_v48 = vld [vmem:[%s6297_s11 + $0x6c] sm:$0xf]  ;;  %v3292_v45 = vor.u32 %v3810_v41, %v3291_v39  ;;  %v3846_v4 = vld [vmem:[%s6297_s11 + $0x19c] sm:$0xf0]  ;;  %v3811_v47 = vld [vmem:[%s6297_s11 + $0x84] sm:$0xf0] }
 0x427   :  { %1561 = vmatmul.bf16.vlgmr.msrb.gmra.mxu1 %v1353_v54  ;;  %1587 = vmatmul.bf16.vlgmr.msrb.gmra.mxu3 %v1353_v54  ;;  %v3864_v54 = vld [vmem:[%s6297_s11 + $0x22c] sm:$0xf0]  ;;  %v3296_v18 = vor.u32 %v3807_v48, %v3293_v49  ;;  %v3397_v39 = vld [vmem:[%s6297_s11 + $0x148] sm:$0xf0] }
 0x428   :  { %2252 = vmatpush.bf16.msrb.mxu1 %v3412_v1  ;;  %2278 = vmatpush.bf16.msrb.mxu3 %v3416_v36  ;;  %v3508_v19 = vor.u32 %v3864_v54, %v3507_v50  ;;  %v3269_v1 = vld [vmem:[%s6297_s11 + $0x50] sm:$0xf0]  ;;  %v3268_v36 = vor.u32 %v3804_v22, %v3267_v21  ;;  %v3889_v50 = vld [vmem:[%s6297_s11 + $0x2f4] sm:$0xf0]  ;;  %v3886_v54 = vld [vmem:[%s6297_s11 + $0x2e4] sm:$0xf] }
 0x429   :  { %2220 = vmatpush.bf16.msrb.mxu2 %v3428_v14  ;;  %v3272_v37 = vor.u32 %v3801_v23, %v3269_v1  ;;  %v3484_v14 = vor.u32 %v3858_v2, %v3483_v43  ;;  %v3829_v21 = vld [vmem:[%s6297_s11 + $0x114] sm:$0xf0]  ;;  %v3826_v22 = vld [vmem:[%s6297_s11 + $0x104] sm:$0xf]  ;;  %v3373_v23 = vld [vmem:[%s6297_s11 + $0x118] sm:$0xf0] }
 0x42a   :  { %v1338_v58 = vpop.f32.mrf.mxu2  ;;  %2293 = vmatpush.bf16.msra.mxu0 %v3560_v10  ;;  %v3838_v10 = vld [vmem:[%s6297_s11 + $0x164] sm:$0xf]  ;;  %v3883_v2 = vld [vmem:[%s6297_s11 + $0x2c4] sm:$0xf0]  ;;  %v3301_v56 = vld [vmem:[%s6297_s11 + $0x88] sm:$0xf0] }
 0x42c   :  { %2253 = vmatpush.bf16.msrb.mxu1 %v3388_v16  ;;  %2279 = vmatpush.bf16.msrb.mxu3 %v3392_v60  ;;  %v3459_v16 = vld [vmem:[%s6297_s11 + $0x1b8] sm:$0xf]  ;;  %v3852_v60 = vld [vmem:[%s6297_s11 + $0x1cc] sm:$0xf0] }
 0x42d   :  { %2265 = vmatpush.bf16.msra.mxu2 %v3604_v42  ;;  %v3243_v42 = vld [vmem:[%s6297_s11 + $0x8] sm:$0xf]  ;;  %v3460_v3 = vor.u32 %v3852_v60, %v3459_v16  ;;  %v3563_v60 = vld [vmem:[%s6297_s11 + $0x280] sm:$0xf] }
 0x42e   :  { %2294 = vmatpush.bf16.msra.mxu0 %v3536_v38  ;;  %v3244_v58 = vor.u32 %v3798_v51, %v3243_v42  ;;  %v3832_v38 = vld [vmem:[%s6297_s11 + $0x134] sm:$0xf]  ;;  %v3372_v42 = vor.u32 %v3829_v21, %v3371_v20  ;;  %v3376_v51 = vor.u32 %v3826_v22, %v3373_v23  ;;  %v3251_v21 = vld [vmem:[%s6297_s11 + $0x10] sm:$0xf]  ;;  %v3799_v22 = vld [vmem:[%s6297_s11 + $0x24] sm:$0xf0] }
 0x42f   :  { %v3400_v53 = vor.u32 %v3832_v38, %v3397_v39  ;;  %v3275_v38 = vld [vmem:[%s6297_s11 + $0x40] sm:$0xf]  ;;  %v3805_v39 = vld [vmem:[%s6297_s11 + $0x54] sm:$0xf0]  ;;  %v3796_v23 = vld [vmem:[%s6297_s11 + $0x14] sm:$0xf] }
 0x430   :  { %2254 = vmatpush.bf16.msrb.mxu1 %v3364_v5  ;;  %2280 = vmatpush.bf16.msrb.mxu3 %v3368_v24  ;;  %v3843_v5 = vld [vmem:[%s6297_s11 + $0x18c] sm:$0xf]  ;;  %v3437_v24 = vld [vmem:[%s6297_s11 + $0x1a0] sm:$0xf0] }
 0x431   :  { %2266 = vmatpush.bf16.msra.mxu2 %v3580_v62  ;;  %v3435_v62 = vld [vmem:[%s6297_s11 + $0x188] sm:$0xf]  ;;  %v3440_v6 = vor.u32 %v3843_v5, %v3437_v24  ;;  %v3817_v5 = vld [vmem:[%s6297_s11 + $0xb4] sm:$0xf0]  ;;  %v3814_v24 = vld [vmem:[%s6297_s11 + $0xa4] sm:$0xf] }
 0x432   :  { %2295 = vmatpush.bf16.msra.mxu0 %v3512_v28  ;;  %v3436_v25 = vor.u32 %v3846_v4, %v3435_v62  ;;  %v3352_v62 = vor.u32 %v3820_v26, %v3349_v27  ;;  %v3323_v4 = vld [vmem:[%s6297_s11 + $0xa0] sm:$0xf]  ;;  %v3443_v26 = vld [vmem:[%s6297_s11 + $0x190] sm:$0xf]  ;;  %v3847_v27 = vld [vmem:[%s6297_s11 + $0x1a4] sm:$0xf0] }
 0x434   :  { %2255 = vmatpush.bf16.msrb.mxu1 %v3340_v55  ;;  %2281 = vmatpush.bf16.msrb.mxu3 %v3344_v11  ;;  %v1389_v55 = vperm.slane %v1387_v9, 0 }
 0x435   :  { %2267 = vmatpush.bf16.msra.mxu2 %v3556_v44  ;;  %v1390_v44 = vperm.slane %v1387_v9, 1  ;;  %v3539_v9 = vld [vmem:[%s6297_s11 + $0x250] sm:$0xf] }
 0x436   :  { %2296 = vmatpush.bf16.msra.mxu0 %v3488_v57  ;;  %v3347_v57 = vld [vmem:[%s6297_s11 + $0xd0] sm:$0xf] }
 0x438   :  { %2256 = vmatpush.bf16.msrb.mxu1 %v3316_v33  ;;  %2282 = vmatpush.bf16.msrb.mxu3 %v3320_v30  ;;  %v3421_v33 = vld [vmem:[%s6297_s11 + $0x178] sm:$0xf0] }
 0x439   :  { %2268 = vmatpush.bf16.msra.mxu2 %v3532_v35  ;;  %v3424_v30 = vor.u32 %v3838_v10, %v3421_v33  ;;  %v3835_v35 = vld [vmem:[%s6297_s11 + $0x144] sm:$0xf0] }
 0x43a   :  { %2297 = vmatpush.bf16.msra.mxu0 %v3464_v61 }
 0x43c   :  { %2257 = vmatpush.bf16.msrb.mxu1 %v3292_v45  ;;  %2283 = vmatpush.bf16.msrb.mxu3 %v3296_v18  ;;  %v3611_v45 = vld [vmem:[%s6297_s11 + $0x2e0] sm:$0xf]  ;;  %v3613_v18 = vld [vmem:[%s6297_s11 + $0x2f8] sm:$0xf0] }
 0x43d   :  { %2269 = vmatpush.bf16.msra.mxu2 %v3508_v19  ;;  %v3396_v19 = vor.u32 %v3835_v35, %v3395_v31  ;;  %v3612_v1 = vor.u32 %v3889_v50, %v3611_v45  ;;  %v3517_v31 = vld [vmem:[%s6297_s11 + $0x238] sm:$0xf0]  ;;  %v3491_v50 = vld [vmem:[%s6297_s11 + $0x1f0] sm:$0xf] }
 0x43e   :  { %2298 = vmatpush.bf16.msra.mxu0 %v3440_v6  ;;  %v3564_v6 = vor.u32 %v3877_v63, %v3563_v60  ;;  %v3899_v60 = vld [vmem:[%s6290_s4 + $0x78] sm:$0xff]  ;;  %v3444_v63 = vor.u32 %v3847_v27, %v3443_v26 }
 0x43f   :  { %v6103_v27 = vld [vmem:[%s6289_s3 + $0xd8] sm:$0xff] }
 0x440   :  { %2258 = vmatpush.bf16.msrb.mxu1 %v3268_v36  ;;  %2284 = vmatpush.bf16.msrb.mxu3 %v3272_v37  ;;  %v3616_v36 = vor.u32 %v3886_v54, %v3613_v18  ;;  %v3587_v37 = vld [vmem:[%s6297_s11 + $0x2b0] sm:$0xf]  ;;  %v3859_v54 = vld [vmem:[%s6297_s11 + $0x204] sm:$0xf0]  ;;  %v3856_v18 = vld [vmem:[%s6297_s11 + $0x1f4] sm:$0xf] }
 0x441   :  { %2270 = vmatpush.bf16.msra.mxu2 %v3484_v14  ;;  %v3589_v14 = vld [vmem:[%s6297_s11 + $0x2c8] sm:$0xf0] }
 0x442   :  { %v3592_v16 = vor.u32 %v3880_v12, %v3589_v14  ;;  %v3853_v12 = vld [vmem:[%s6297_s11 + $0x1d4] sm:$0xf0]  ;;  %v3850_v14 = vld [vmem:[%s6297_s11 + $0x1c4] sm:$0xf] }
 0x444   :  { %2259 = vmatpush.bf16.msrb.mxu1 %v3244_v58  ;;  %2285 = vmatpush.bf16.msrb.mxu3 %v3248_v59  ;;  %v3823_v58 = vld [vmem:[%s6297_s11 + $0xe4] sm:$0xf0]  ;;  %v3588_v59 = vor.u32 %v3883_v2, %v3587_v37  ;;  %v3467_v2 = vld [vmem:[%s6297_s11 + $0x1c0] sm:$0xf] }
 0x445   :  { %2271 = vmatpush.bf16.msra.mxu2 %v3460_v3  ;;  %v3874_v3 = vld [vmem:[%s6297_s11 + $0x284] sm:$0xf]  ;;  %v3348_v61 = vor.u32 %v3823_v58, %v3347_v57  ;;  %v3468_v57 = vor.u32 %v3853_v12, %v3467_v2 }
 0x446   :  { %v3917_v12 = vld [vmem:[%s6289_s3 + $0xe0] sm:$0xff] }
 0x449   :  { %2272 = vmatpush.bf16.msra.mxu2 %v3436_v25  ;;  %v3325_v25 = vld [vmem:[%s6297_s11 + $0xb8] sm:$0xf0] }
 0x49e   :  { %v1601_v8 = vpop.f32.mrf.mxu0 }
 0x4a4   :  { %v1562_v11 = vpop.f32.mrf.mxu1  ;;  %v1575_v7 = vpop.f32.mrf.mxu2 }
 0x4a5   :  { %v1563_v0 = vadd.f32 %v1562_v11, %v1389_v55  ;;  %v3871_v55 = vld [vmem:[%s6297_s11 + $0x264] sm:$0xf0]  ;;  %v3868_v11 = vld [vmem:[%s6297_s11 + $0x254] sm:$0xf] }
 0x4a6   :  { %v1603_v17 = vpop.f32.mrf.mxu0  ;;  %v3540_v10 = vor.u32 %v3871_v55, %v3539_v9  ;;  %v3911_v9 = vld [vmem:[%s6290_s4 + $0x18] sm:$0xff]  ;;  %v3912_v55 = vld [vmem:[%s6290_s4 + $0x10] sm:$0xff] }
 0x4a7   :  { %v1576_v15 = vadd.f32 %v1575_v7, %v1563_v0  ;;  %v3541_v7 = vld [vmem:[%s6297_s11 + $0x268] sm:$0xf0]  ;;  %v3324_v0 = vor.u32 %v3817_v5, %v3323_v4  ;;  %v3328_v17 = vor.u32 %v3814_v24, %v3325_v25  ;;  %v3904_v4 = vld [vmem:[%s6290_s4 + $0x50] sm:$0xff]  ;;  %v3906_v5 = vld [vmem:[%s6290_s4 + $0x40] sm:$0xff] }
 0x4a8   :  { %v3544_v33 = vor.u32 %v3868_v11, %v3541_v7  ;;  %v3907_v24 = vld [vmem:[%s6290_s4 + $0x38] sm:$0xff]  ;;  %v3908_v25 = vld [vmem:[%s6290_s4 + $0x30] sm:$0xff]  ;;  %v3913_v11 = vld [vmem:[%s6290_s4 + $0x8] sm:$0xff] }
 0x4a9   :  { %v5786_v29 = vmax.f32 %v1576_v15, 0.0  ;;  %v3808_v15 = vld [vmem:[%s6297_s11 + $0x74] sm:$0xf]  ;;  %v3914_v7 = vld [vmem:[%s6290_s4] sm:$0xff] }
 0x4aa   :  { %v1588_v52 = vpop.f32.mrf.mxu3  ;;  %v3304_v35 = vor.u32 %v3808_v15, %v3301_v56 }
 0x4ab   :  { %v5793_v32 = vpack.c.bf16 %v5786_v29, %v5786_v29  ;;  %v1589_v34 = vadd.f32 %v1588_v52, %v1390_v44  ;;  %v3299_v44 = vld [vmem:[%s6297_s11 + $0x70] sm:$0xf]  ;;  %v3515_v52 = vld [vmem:[%s6297_s11 + $0x220] sm:$0xf] }
 0x4ac   :  { %v1564_v41 = vpop.f32.mrf.mxu1  ;;  %v1577_v48 = vpop.f32.mrf.mxu2 }
 0x4ad   :  { %v1602_v49 = vadd.f32 %v1601_v8, %v1589_v34  ;;  %2208 = vmatmul.bf16.vlgmr.msra.gmra.mxu1 %v5793_v32  ;;  %2234 = vmatmul.bf16.vlgmr.msra.gmra.mxu3 %v5793_v32  ;;  %v3568_v8 = vor.u32 %v3874_v3, %v3565_v46  ;;  %v3300_v34 = vor.u32 %v3811_v47, %v3299_v44  ;;  %v3802_v41 = vld [vmem:[%s6297_s11 + $0x44] sm:$0xf]  ;;  %v3277_v48 = vld [vmem:[%s6297_s11 + $0x58] sm:$0xf0]  ;;  %v3900_v46 = vld [vmem:[%s6290_s4 + $0x70] sm:$0xff] }
 0x4ae   :  { %2304 = vmatpush.bf16.msra.mxu1 %v3420_v13  ;;  %2330 = vmatpush.bf16.msra.mxu3 %v3424_v30  ;;  %v3865_v13 = vld [vmem:[%s6297_s11 + $0x234] sm:$0xf0]  ;;  %v3862_v30 = vld [vmem:[%s6297_s11 + $0x224] sm:$0xf]  ;;  %v3280_v20 = vor.u32 %v3802_v41, %v3277_v48 }
 0x4af   :  { %v5824_v28 = vmax.f32 %v1602_v49, 0.0  ;;  %v3516_v45 = vor.u32 %v3865_v13, %v3515_v52  ;;  %v3520_v49 = vor.u32 %v3862_v30, %v3517_v31 }
 0x4b1   :  { %v5837_v43 = vpack.c.bf16 %v5824_v28, %v5824_v28 }
 0x4b2   :  { %v1590_v40 = vpop.f32.mrf.mxu3  ;;  %2305 = vmatpush.bf16.msra.mxu1 %v3396_v19  ;;  %2331 = vmatpush.bf16.msra.mxu3 %v3400_v53  ;;  %v3493_v19 = vld [vmem:[%s6297_s11 + $0x208] sm:$0xf0]  ;;  %v3276_v53 = vor.u32 %v3805_v39, %v3275_v38 }
 0x4b3   :  { %2221 = vmatmul.bf16.vlgmr.msrb.gmra.mxu2 %v5837_v43  ;;  %2247 = vmatmul.bf16.vlgmr.msrb.gmra.mxu0 %v5837_v43  ;;  %v3496_v37 = vor.u32 %v3856_v18, %v3493_v19  ;;  %v3469_v40 = vld [vmem:[%s6297_s11 + $0x1d8] sm:$0xf0] }
 0x4b4   :  { %2317 = vmatpush.bf16.msrb.mxu2 %v3612_v1  ;;  %2343 = vmatpush.bf16.msrb.mxu0 %v3616_v36  ;;  %v3253_v1 = vld [vmem:[%s6297_s11 + $0x28] sm:$0xf0]  ;;  %v3492_v36 = vor.u32 %v3859_v54, %v3491_v50  ;;  %v3472_v58 = vor.u32 %v3850_v14, %v3469_v40  ;;  %v3918_v40 = vld [vmem:[%s6289_s3 + $0xf0] sm:$0xff] }
 0x4b6   :  { %2306 = vmatpush.bf16.msra.mxu1 %v3372_v42  ;;  %2332 = vmatpush.bf16.msra.mxu3 %v3376_v51  ;;  %v3252_v42 = vor.u32 %v3799_v22, %v3251_v21  ;;  %v3256_v51 = vor.u32 %v3796_v23, %v3253_v1  ;;  %v6079_v21 = vld [vmem:[%s6289_s3 + $0xf8] sm:$0xff] }
 0x4b8   :  { %2318 = vmatpush.bf16.msrb.mxu2 %v3588_v59  ;;  %2344 = vmatpush.bf16.msrb.mxu0 %v3592_v16  ;;  %v3844_v59 = vld [vmem:[%s6297_s11 + $0x194] sm:$0xf]  ;;  %v3445_v16 = vld [vmem:[%s6297_s11 + $0x1a8] sm:$0xf0] }
 0x4b9   :  { %v3448_v3 = vor.u32 %v3844_v59, %v3445_v16 }
 0x4ba   :  { %2307 = vmatpush.bf16.msra.mxu1 %v3348_v61  ;;  %2333 = vmatpush.bf16.msra.mxu3 %v3352_v62  ;;  %v3901_v61 = vld [vmem:[%s6290_s4 + $0x68] sm:$0xff]  ;;  %v3903_v62 = vld [vmem:[%s6290_s4 + $0x58] sm:$0xff] }
 0x4bc   :  { %2319 = vmatpush.bf16.msrb.mxu2 %v3564_v6  ;;  %2345 = vmatpush.bf16.msrb.mxu0 %v3568_v8  ;;  %v3909_v6 = vld [vmem:[%s6290_s4 + $0x28] sm:$0xff]  ;;  %v3910_v8 = vld [vmem:[%s6290_s4 + $0x20] sm:$0xff] }
 0x4bd   :  { %2260 = vmatmul.bf16.vlgmr.msrb.gmra.mxu1 %v5793_v32  ;;  %2286 = vmatmul.bf16.vlgmr.msrb.gmra.mxu3 %v5793_v32 }
 0x4be   :  { %2308 = vmatpush.bf16.msra.mxu1 %v3324_v0  ;;  %2334 = vmatpush.bf16.msra.mxu3 %v3328_v17  ;;  %v6057_v17 = vld [vmem:[%s6298_s12] sm:$0x3f] }
 0x4bf   :  { %v1709_v44 = vperm.slane %v6057_v17, 1  ;;  %v1708_v56 = vperm.slane %v6057_v17, 0  ;;  %v1711_v39 = vperm.slane %v6057_v17, 3 }
 0x4c0   :  { %2320 = vmatpush.bf16.msrb.mxu2 %v3540_v10  ;;  %2346 = vmatpush.bf16.msrb.mxu0 %v3544_v33 }
 0x4c2   :  { %2309 = vmatpush.bf16.msra.mxu1 %v3300_v34  ;;  %2335 = vmatpush.bf16.msra.mxu3 %v3304_v35 }
 0x4c3   :  { %2273 = vmatmul.bf16.vlgmr.msra.gmra.mxu2 %v5837_v43  ;;  %2299 = vmatmul.bf16.vlgmr.msra.gmra.mxu0 %v5837_v43 }
 0x4c4   :  { %2321 = vmatpush.bf16.msrb.mxu2 %v3516_v45  ;;  %2347 = vmatpush.bf16.msrb.mxu0 %v3520_v49  ;;  %v1710_v49 = vperm.slane %v6057_v17, 2 }
 0x4c6   :  { %2310 = vmatpush.bf16.msra.mxu1 %v3276_v53  ;;  %2336 = vmatpush.bf16.msra.mxu3 %v3280_v20  ;;  %v6072_v53 = vld [vmem:[%s6289_s3 + $0xe8] sm:$0xff] }
 0x4c8   :  { %2322 = vmatpush.bf16.msrb.mxu2 %v3492_v36  ;;  %2348 = vmatpush.bf16.msrb.mxu0 %v3496_v37 }
 0x4ca   :  { %2311 = vmatpush.bf16.msra.mxu1 %v3252_v42  ;;  %2337 = vmatpush.bf16.msra.mxu3 %v3256_v51 }
 0x4cc   :  { %2323 = vmatpush.bf16.msrb.mxu2 %v3468_v57  ;;  %2349 = vmatpush.bf16.msrb.mxu0 %v3472_v58  ;;  %v6096_v58 = vld [vmem:[%s6289_s3 + $0xc8] sm:$0xff] }
 0x4cd   :  { %2312 = vmatmul.bf16.vlgmr.msra.gmra.mxu1 %v5793_v32  ;;  %2338 = vmatmul.bf16.vlgmr.msra.gmra.mxu3 %v5793_v32  ;;  %v3902_v32 = vld [vmem:[%s6290_s4 + $0x60] sm:$0xff] }
 0x4ce   :  { %2486 = vmatpush.msrb.mxu3 %v3899_v60 }
 0x4d0   :  { %2487 = vmatpush.msrb.mxu3 %v3900_v46  ;;  %2324 = vmatpush.bf16.msrb.mxu2 %v3444_v63  ;;  %v3921_v63 = vld [vmem:[%s6289_s3 + $0xc0] sm:$0xff] }
 0x4d1   :  { %2350 = vmatpush.bf16.msrb.mxu0 %v3448_v3 }
 0x4d2   :  { %2488 = vmatpush.msrb.mxu3 %v3901_v61 }
 0x4d3   :  { %2325 = vmatmul.bf16.vlgmr.msrb.gmra.mxu2 %v5837_v43 }
 0x4d4   :  { %2351 = vmatmul.bf16.vlgmr.msrb.gmra.mxu0 %v5837_v43  ;;  %2489 = vmatpush.msrb.mxu3 %v3902_v32  ;;  %v3905_v43 = vld [vmem:[%s6290_s4 + $0x48] sm:$0xff] }
 0x4d5   :  { %3617 = vmatpush.xpose.msk.msra.mxu0 %vm1252_vm0, %v3899_v60 }
 0x4d6   :  { %2490 = vmatpush.msrb.mxu3 %v3903_v62 }
 0x4d8   :  { %2491 = vmatpush.msrb.mxu3 %v3904_v4 }
 0x4d9   :  { %3618 = vmatpush.xpose.msk.msra.mxu0 %vm1252_vm0, %v3900_v46  ;;  %v3922_v46 = vld [vmem:[%s6289_s3 + $0xd0] sm:$0xff] }
 0x4da   :  { %2492 = vmatpush.msrb.mxu3 %v3905_v43 }
 0x4dc   :  { %2493 = vmatpush.msrb.mxu3 %v3906_v5 }
 0x4dd   :  { %3619 = vmatpush.xpose.msk.msra.mxu0 %vm1252_vm0, %v3901_v61 }
 0x4de   :  { %2494 = vmatpush.msrb.mxu3 %v3907_v24 }
 0x4e0   :  { %2495 = vmatpush.msrb.mxu3 %v3908_v25 }
 0x4e1   :  { %3620 = vmatpush.xpose.msk.msra.mxu0 %vm1252_vm0, %v3902_v32 }
 0x4e2   :  { %2496 = vmatpush.msrb.mxu3 %v3909_v6 }
 0x4e4   :  { %2497 = vmatpush.msrb.mxu3 %v3910_v8 }
 0x4e5   :  { %3621 = vmatpush.xpose.msk.msra.mxu0 %vm1252_vm0, %v3903_v62 }
 0x4e6   :  { %2498 = vmatpush.msrb.mxu3 %v3911_v9 }
 0x4e8   :  { %2499 = vmatpush.msrb.mxu3 %v3912_v55 }
 0x4e9   :  { %3622 = vmatpush.xpose.msk.msra.mxu0 %vm1252_vm0, %v3904_v4  ;;  %v1712_v4 = vperm.slane %v6057_v17, 4 }
 0x4ea   :  { %2500 = vmatpush.msrb.mxu3 %v3913_v11 }
 0x4ec   :  { %2501 = vmatpush.msrb.mxu3 %v3914_v7 }
 0x4ed   :  { %3623 = vmatpush.xpose.msk.msra.mxu0 %vm1252_vm0, %v3905_v43 }
 0x4f1   :  { %3624 = vmatpush.xpose.msk.msra.mxu0 %vm1252_vm0, %v3906_v5 }
 0x4f5   :  { %3625 = vmatpush.xpose.msk.msra.mxu0 %vm1252_vm0, %v3907_v24  ;;  %v6123_v24 = vld [vmem:[%s6289_s3 + $0xa8] sm:$0xff] }
 0x4f9   :  { %3626 = vmatpush.xpose.msk.msra.mxu0 %vm1252_vm0, %v3908_v25 }
 0x4fd   :  { %3627 = vmatpush.xpose.msk.msra.mxu0 %vm1252_vm0, %v3909_v6  ;;  %v6130_v6 = vld [vmem:[%s6289_s3 + $0xb8] sm:$0xff] }
 0x501   :  { %3628 = vmatpush.xpose.msk.msra.mxu0 %vm1252_vm0, %v3910_v8 }
 0x505   :  { %3629 = vmatpush.xpose.msk.msra.mxu0 %vm1252_vm0, %v3911_v9 }
 0x509   :  { %3630 = vmatpush.xpose.msk.msra.mxu0 %vm1252_vm0, %v3912_v55 }
 0x50d   :  { %3631 = vmatpush.xpose.msk.msra.mxu0 %vm1252_vm0, %v3913_v11 }
 0x511   :  { %3632 = vmatpush.xpose.msk.msra.mxu0 %vm1252_vm0, %v3914_v7 }
 0x52a   :  { %v2209_v0 = vpop.f32.mrf.mxu1 }
 0x52b   :  { %v2210_v13 = vadd.f32 %v2209_v0, %v1708_v56  ;;  %v3925_v0 = vld [vmem:[%s6289_s3 + $0xa0] sm:$0xff] }
 0x530   :  { %v2235_v47 = vpop.f32.mrf.mxu3  ;;  %v2248_v15 = vpop.f32.mrf.mxu0 }
 0x531   :  { %v2236_v10 = vadd.f32 %v2235_v47, %v1709_v44  ;;  %v3926_v47 = vld [vmem:[%s6289_s3 + $0xb0] sm:$0xff] }
 0x532   :  { %v2211_v33 = vpop.f32.mrf.mxu1 }
 0x533   :  { %v6061_v52 = vadd.f32 %v2248_v15, %v2236_v10 }
 0x536   :  { %v2222_v30 = vpop.f32.mrf.mxu2 }
 0x537   :  { %v6063_v31 = vadd.f32 %v2222_v30, %v2210_v13  ;;  %v6149_v30 = vld [vmem:[%s6289_s3 + $0x88] sm:$0xff] }
 0x538   :  { %v2237_v34 = vpop.f32.mrf.mxu3  ;;  %v2250_v35 = vpop.f32.mrf.mxu0 }
 0x539   :  { %v6156_v35 = vld [vmem:[%s6289_s3 + $0x98] sm:$0xff] }
 0x53a   :  { %v2261_v38 = vpop.f32.mrf.mxu1 }
 0x53b   :  { %v2262_v19 = vadd.f32 %v2261_v38, %v1710_v49 }
 0x53e   :  { %v2224_v41 = vpop.f32.mrf.mxu2 }
 0x540   :  { %v2287_v48 = vpop.f32.mrf.mxu3  ;;  %v2300_v45 = vpop.f32.mrf.mxu0 }
 0x541   :  { %v2288_v50 = vadd.f32 %v2287_v48, %v1711_v39 }
 0x542   :  { %v2263_v54 = vpop.f32.mrf.mxu1 }
 0x543   :  { %v6067_v18 = vadd.f32 %v2300_v45, %v2288_v50  ;;  %v3929_v54 = vld [vmem:[%s6289_s3 + $0x80] sm:$0xff] }
 0x545   :  { %v2385_v20 = vmul.f32 %v6072_v53, %v6067_v18  ;;  %v2387_v22 = vmul.f32 %v6079_v21, %v6067_v18  ;;  %v2381_v26 = vmul.f32 %v6096_v58, %v6067_v18  ;;  %v2383_v59 = vmul.f32 %v6103_v27, %v6067_v18 }
 0x546   :  { %v2274_v23 = vpop.f32.mrf.mxu2  ;;  %v2377_v25 = vmul.f32 %v6123_v24, %v6067_v18  ;;  %v2379_v8 = vmul.f32 %v6130_v6, %v6067_v18  ;;  %v2373_v34 = vmul.f32 %v6149_v30, %v6067_v18  ;;  %v2375_v38 = vmul.f32 %v6156_v35, %v6067_v18 }
 0x547   :  { %v6083_v1 = vadd.f32 %v2274_v23, %v2262_v19  ;;  %v2403_v36 = vpack.c.bf16 %v2387_v22, %v2385_v20  ;;  %v2401_v60 = vpack.c.bf16 %v2383_v59, %v2381_v26  ;;  %v3930_v22 = vld [vmem:[%s6289_s3 + $0x90] sm:$0xff] }
 0x548   :  { %v2289_v37 = vpop.f32.mrf.mxu3  ;;  %v2302_v2 = vpop.f32.mrf.mxu0  ;;  %v2399_v7 = vpack.c.bf16 %v2379_v8, %v2377_v25  ;;  %v2397_v50 = vpack.c.bf16 %v2375_v38, %v2373_v34  ;;  %v6208_v25 = vld [vmem:[%s6289_s3 + $0x58] sm:$0xff]  ;;  %v3940_v38 = vld [vmem:[%s6289_s3 + $0x30] sm:$0xff] }
 0x549   :  { %2467 = vmatpush.bf16.xpose.msra.mxu2 %v2403_v36  ;;  %v2384_v14 = vmul.f32 %v3917_v12, %v6083_v1  ;;  %v2386_v42 = vmul.f32 %v3918_v40, %v6083_v1  ;;  %v2380_v3 = vmul.f32 %v3921_v63, %v6083_v1  ;;  %v2382_v61 = vmul.f32 %v3922_v46, %v6083_v1  ;;  %v6175_v2 = vld [vmem:[%s6289_s3 + $0x68] sm:$0xff] }
 0x54a   :  { %v2313_v51 = vpop.f32.mrf.mxu1  ;;  %v2376_v44 = vmul.f32 %v3925_v0, %v6083_v1  ;;  %v2378_v15 = vmul.f32 %v3926_v47, %v6083_v1  ;;  %v2372_v19 = vmul.f32 %v3929_v54, %v6083_v1  ;;  %v2374_v23 = vmul.f32 %v3930_v22, %v6083_v1 }
 0x54b   :  { %v2402_v57 = vpack.c.bf16 %v2386_v42, %v2384_v14  ;;  %v2400_v5 = vpack.c.bf16 %v2382_v61, %v2380_v3  ;;  %v2314_v9 = vadd.f32 %v2313_v51, %v1712_v4  ;;  %v6182_v14 = vld [vmem:[%s6289_s3 + $0x78] sm:$0xff]  ;;  %v3934_v3 = vld [vmem:[%s6289_s3 + $0x70] sm:$0xff]  ;;  %v2367_v8 = vmul.f32 %v6208_v25, %v6067_v18 }
 0x54c   :  { %v2398_v39 = vpack.c.bf16 %v2378_v15, %v2376_v44  ;;  %v2396_v42 = vpack.c.bf16 %v2374_v23, %v2372_v19  ;;  %v3938_v44 = vld [vmem:[%s6289_s3 + $0x50] sm:$0xff]  ;;  %v3943_v19 = vld [vmem:[%s6289_s3] sm:$0xff] }
 0x54d   :  { %2454 = vmatpush.bf16.xpose.msrb.mxu1 %v2402_v57 }
 0x54e   :  { %v2276_v16 = vpop.f32.mrf.mxu2 }
 0x54f   :  { %v3933_v16 = vld [vmem:[%s6289_s3 + $0x60] sm:$0xff] }
 0x550   :  { %v6115_v32 = vpop.f32.mrf.mxu3 }
 0x551   :  { %v6117_v62 = vpop.f32.mrf.mxu0  ;;  %2468 = vmatpush.bf16.xpose.msra.mxu2 %v2401_v60  ;;  %v2368_v60 = vmul.f32 %v3933_v16, %v6083_v1 }
 0x552   :  { %v2315_v43 = vpop.f32.mrf.mxu1 }
 0x553   :  { %v6201_v43 = vld [vmem:[%s6289_s3 + $0x48] sm:$0xff] }
 0x555   :  { %2455 = vmatpush.bf16.xpose.msrb.mxu1 %v2400_v5  ;;  %v2365_v5 = vmul.f32 %v6201_v43, %v6067_v18 }
 0x556   :  { %v2326_v55 = vpop.f32.mrf.mxu2 }
 0x557   :  { %v6134_v11 = vadd.f32 %v2326_v55, %v2314_v9 }
 0x558   :  { %v2341_v56 = vpop.f32.mrf.mxu3 }
 0x559   :  { %v2354_v10 = vpop.f32.mrf.mxu0  ;;  %2469 = vmatpush.bf16.xpose.msra.mxu2 %v2399_v7  ;;  %v2432_v33 = vmul.f32 %v3917_v12, %v6134_v11  ;;  %v2434_v13 = vmul.f32 %v3918_v40, %v6134_v11  ;;  %v2428_v48 = vmul.f32 %v3921_v63, %v6134_v11  ;;  %v2430_v45 = vmul.f32 %v3922_v46, %v6134_v11  ;;  %v3937_v7 = vld [vmem:[%s6289_s3 + $0x40] sm:$0xff] }
 0x55a   :  { %v2424_v36 = vmul.f32 %v3925_v0, %v6134_v11  ;;  %v2426_v37 = vmul.f32 %v3926_v47, %v6134_v11  ;;  %v2369_v12 = vmul.f32 %v6175_v2, %v6067_v18  ;;  %v2371_v40 = vmul.f32 %v6182_v14, %v6067_v18 }
 0x55b   :  { %v2450_v41 = vpack.c.bf16 %v2434_v13, %v2432_v33  ;;  %v2448_v20 = vpack.c.bf16 %v2430_v45, %v2428_v48  ;;  %v2420_v57 = vmul.f32 %v3929_v54, %v6134_v11  ;;  %v2422_v26 = vmul.f32 %v3930_v22, %v6134_v11  ;;  %v3939_v13 = vld [vmem:[%s6289_s3 + $0x20] sm:$0xff]  ;;  %v3942_v45 = vld [vmem:[%s6289_s3 + $0x38] sm:$0xff]  ;;  %v3944_v22 = vld [vmem:[%s6289_s3 + $0x10] sm:$0xff] }
 0x55c   :  { %v2446_v51 = vpack.c.bf16 %v2426_v37, %v2424_v36  ;;  %v2395_v59 = vpack.c.bf16 %v2371_v40, %v2369_v12  ;;  %v2370_v46 = vmul.f32 %v3934_v3, %v6083_v1  ;;  %v2416_v61 = vmul.f32 %v3933_v16, %v6134_v11 }
 0x55d   :  { %2456 = vmatpush.bf16.xpose.msrb.mxu1 %v2398_v39  ;;  %2532 = vmatpush.bf16.msra.mxu3 %v2450_v41  ;;  %v2444_v63 = vpack.c.bf16 %v2422_v26, %v2420_v57  ;;  %v2418_v4 = vmul.f32 %v3934_v3, %v6134_v11  ;;  %v2412_v0 = vmul.f32 %v3937_v7, %v6134_v11  ;;  %v3941_v41 = vld [vmem:[%s6289_s3 + $0x28] sm:$0xff]  ;;  %v1713_v36 = vperm.slane %v6057_v17, 5  ;;  %v3946_v17 = vld [vmem:[%s6289_s3 + $0x18] sm:$0xff] }
 0x55e   :  { %v2328_v49 = vpop.f32.mrf.mxu2  ;;  %v2394_v9 = vpack.c.bf16 %v2370_v46, %v2368_v60  ;;  %v2414_v47 = vmul.f32 %v3938_v44, %v6134_v11  ;;  %v2364_v15 = vmul.f32 %v3937_v7, %v6083_v1  ;;  %v2366_v56 = vmul.f32 %v3938_v44, %v6083_v1  ;;  %v3945_v26 = vld [vmem:[%s6289_s3 + $0x8] sm:$0xff] }
 0x55f   :  { %v2442_v55 = vpack.c.bf16 %v2418_v4, %v2416_v61  ;;  %v2393_v10 = vpack.c.bf16 %v2367_v8, %v2365_v5  ;;  %v2408_v34 = vmul.f32 %v3939_v13, %v6134_v11  ;;  %v2410_v39 = vmul.f32 %v3940_v38, %v6134_v11 }
 0x560   :  { %v2440_v33 = vpack.c.bf16 %v2414_v47, %v2412_v0  ;;  %v2361_v48 = vmul.f32 %v3941_v41, %v6067_v18  ;;  %v2363_v49 = vmul.f32 %v3942_v45, %v6067_v18  ;;  %v2406_v23 = vmul.f32 %v3944_v22, %v6134_v11 }
 0x561   :  { %2470 = vmatpush.bf16.xpose.msra.mxu2 %v2397_v50  ;;  %2533 = vmatpush.bf16.msra.mxu3 %v2448_v20  ;;  %v2392_v50 = vpack.c.bf16 %v2366_v56, %v2364_v15  ;;  %v2438_v54 = vpack.c.bf16 %v2410_v39, %v2408_v34  ;;  %v2404_v20 = vmul.f32 %v3943_v19, %v6134_v11 }
 0x562   :  { %v2391_v37 = vpack.c.bf16 %v2363_v49, %v2361_v48  ;;  %v2360_v40 = vmul.f32 %v3939_v13, %v6083_v1  ;;  %v2357_v11 = vmul.f32 %v3945_v26, %v6067_v18 }
 0x563   :  { %v2436_v12 = vpack.c.bf16 %v2406_v23, %v2404_v20 }
 0x565   :  { %2457 = vmatpush.bf16.xpose.msrb.mxu1 %v2396_v42  ;;  %2534 = vmatpush.bf16.msra.mxu3 %v2446_v51  ;;  %v2362_v42 = vmul.f32 %v3940_v38, %v6083_v1  ;;  %v2340_v51 = vadd.f32 %v6115_v32, %v1713_v36  ;;  %v2356_v32 = vmul.f32 %v3943_v19, %v6083_v1 }
 0x567   :  { %v2390_v57 = vpack.c.bf16 %v2362_v42, %v2360_v40  ;;  %v2353_v16 = vadd.f32 %v6117_v62, %v2340_v51 }
 0x569   :  { %2471 = vmatpush.bf16.xpose.msra.mxu2 %v2395_v59  ;;  %2535 = vmatpush.bf16.msra.mxu3 %v2444_v63  ;;  %v2359_v59 = vmul.f32 %v3946_v17, %v6067_v18  ;;  %v2358_v63 = vmul.f32 %v3944_v22, %v6083_v1  ;;  %v2433_v3 = vmul.f32 %v6072_v53, %v2353_v16 }
 0x56a   :  { %v2435_v46 = vmul.f32 %v6079_v21, %v2353_v16  ;;  %v2429_v5 = vmul.f32 %v6096_v58, %v2353_v16  ;;  %v2431_v8 = vmul.f32 %v6103_v27, %v2353_v16  ;;  %v2453_v18 = vpack.c.bf16 %v6061_v52, %v6061_v52 }
 0x56b   :  { %v2389_v60 = vpack.c.bf16 %v2359_v59, %v2357_v11  ;;  %v2388_v61 = vpack.c.bf16 %v2358_v63, %v2356_v32  ;;  %v2425_v1 = vmul.f32 %v6123_v24, %v2353_v16  ;;  %v2427_v53 = vmul.f32 %v6130_v6, %v2353_v16 }
 0x56c   :  { %v2451_v4 = vpack.c.bf16 %v2435_v46, %v2433_v3  ;;  %v2449_v62 = vpack.c.bf16 %v2431_v8, %v2429_v5  ;;  %v2452_v21 = vpack.c.bf16 %v6063_v31, %v6063_v31  ;;  %v2421_v58 = vmul.f32 %v6149_v30, %v2353_v16 }
 0x56d   :  { %2458 = vmatpush.bf16.xpose.msrb.mxu1 %v2394_v9  ;;  %2536 = vmatpush.bf16.msra.mxu3 %v2442_v55  ;;  %v2447_v9 = vpack.c.bf16 %v2427_v53, %v2425_v1  ;;  %v2423_v27 = vmul.f32 %v6156_v35, %v2353_v16  ;;  %v2417_v52 = vmul.f32 %v6175_v2, %v2353_v16 }
 0x56e   :  { %v2419_v7 = vmul.f32 %v6182_v14, %v2353_v16  ;;  %v2413_v6 = vmul.f32 %v6201_v43, %v2353_v16  ;;  %v2415_v0 = vmul.f32 %v6208_v25, %v2353_v16  ;;  %v2409_v44 = vmul.f32 %v3941_v41, %v2353_v16  ;;  %v1607_v14 = vld [vmem:[%s6288_s2] sm:$0xff]  ;;  %s3973_s2 = smov [#allocation2]  }
 0x56f   :  { %v2445_v55 = vpack.c.bf16 %v2423_v27, %v2421_v58  ;;  %v2411_v47 = vmul.f32 %v3942_v45, %v2353_v16  ;;  %v2405_v15 = vmul.f32 %v3945_v26, %v2353_v16  ;;  %v2407_v35 = vmul.f32 %v3946_v17, %v2353_v16  ;;  %s2565_s26 = sshll.u32 %s3973_s2, 4  ;;  %s2566_s26 = int_to_ptr.vmem [resolvable:$true] %s2565_s26 }
 0x570   :  { %v2443_v24 = vpack.c.bf16 %v2419_v7, %v2417_v52  ;;  %v2441_v31 = vpack.c.bf16 %v2415_v0, %v2413_v6 }
 0x571   :  { %2472 = vmatpush.bf16.xpose.msra.mxu2 %v2393_v10  ;;  %2537 = vmatpush.bf16.msra.mxu3 %v2440_v33  ;;  %v2439_v30 = vpack.c.bf16 %v2411_v47, %v2409_v44  ;;  %v2437_v56 = vpack.c.bf16 %v2407_v35, %v2405_v15 }
 0x575   :  { %2459 = vmatpush.bf16.xpose.msrb.mxu1 %v2392_v50  ;;  %2538 = vmatpush.bf16.msra.mxu3 %v2438_v54 }
 0x579   :  { %2473 = vmatpush.bf16.xpose.msra.mxu2 %v2391_v37  ;;  %2539 = vmatpush.bf16.msra.mxu3 %v2436_v12 }
 0x57d   :  { %2460 = vmatpush.bf16.xpose.msrb.mxu1 %v2390_v57 }
 0x581   :  { %2474 = vmatpush.bf16.xpose.msra.mxu2 %v2389_v60 }
 0x585   :  { %2461 = vmatpush.bf16.xpose.msrb.mxu1 %v2388_v61 }
 0x588   :  { %2475 = vmatmul.bf16.vlgmr.msra.gmra.mxu2 %v2453_v18 }
 0x58c   :  { %2462 = vmatmul.bf16.vlgmr.msrb.gmra.mxu1 %v2452_v21 }
 0x58d   :  { %2545 = vmatpush.bf16.msra.mxu1 %v2451_v4 }
 0x591   :  { %2546 = vmatpush.bf16.msra.mxu1 %v2449_v62 }
 0x595   :  { %2547 = vmatpush.bf16.msra.mxu1 %v2447_v9 }
 0x599   :  { %2548 = vmatpush.bf16.msra.mxu1 %v2445_v55 }
 0x59d   :  { %2549 = vmatpush.bf16.msra.mxu1 %v2443_v24 }
 0x5a1   :  { %2550 = vmatpush.bf16.msra.mxu1 %v2441_v31 }
 0x5a5   :  { %2551 = vmatpush.bf16.msra.mxu1 %v2439_v30 }
 0x5a9   :  { %2552 = vmatpush.bf16.msra.mxu1 %v2437_v56 }
 0x609   :  { %v2463_v2 = vpop.f32.mrf.mxu1 }
 0x60b   :  { %v2476_v10 = vpop.f32.mrf.mxu2 }
 0x60c   :  { %v2477_v43 = vadd.f32 %v2476_v10, %v2463_v2 }
 0x60e   :  { %v2480_v33 = vadd.f32 %v2477_v43, %v1607_v14 }
 0x610   :  { %2481 = vmax.xlane.f32.xlu0 %v2480_v33 }
 0x611   :  { %v2465_v25 = vpop.f32.mrf.mxu1 }
 0x613   :  { %v2478_v13 = vpop.f32.mrf.mxu2 }
 0x683   :  { %v2482_v34 = vpop.xlane.xlu0 %2481 }
 0x684   :  { %v2483_v38 = vsub.f32 %v2480_v33, %v2482_v34 }
 0x686   :  { %v2484_v39 = vmul.f32 1.442695, %v2483_v38 }
 0x688   :  { %3895 = vpow2.f32 %v2484_v39 }
 0x68e   :  { %v3896_v41 = vpop.eup %3895 }
 0x68f   :  { %2502 = vmatmul.f32.vlgmr.msrb.gmra.mxu3 %v3896_v41 }
 0x712   :  { %v2503_v48 = vpop.f32.mrf.mxu3 }
 0x713   :  { %3633 = vmatmul.msk.f32.vlgmr.msra.gmra.mxu0 %vm1252_vm0, %v2503_v48 }
 0x790   :  { %v2526_v45 = vpop.f32.mrf.mxu0 }
 0x791   :  { %3897 = vrcp.f32 %v2526_v45 }
 0x797   :  { %v3898_v49 = vpop.eup %3897 }
 0x798   :  { %v2530_v50 = vmul.f32 %v3898_v49, %v3896_v41 }
 0x79a   :  { %v2531_v54 = vpack.c.bf16 %v2530_v50, %v2530_v50 }
 0x79c   :  { %2540 = vmatmul.bf16.vlgmr.msra.gmra.mxu3 %v2531_v54  ;;  %2553 = vmatmul.bf16.vlgmr.msra.gmra.mxu1 %v2531_v54 }
 0x819   :  { %v2554_v19 = vpop.f32.mrf.mxu1 }
 0x81a   :  { %v2555_v20 = vadd.f32 %v2554_v19, %v5824_v28 }
 0x81c   :  { %2559 = vst [vmem:[#allocation2 + $0x8] sm:$0xff] %v2555_v20 }
 0x81f   :  { %v2541_v22 = vpop.f32.mrf.mxu3 }
 0x820   :  { %v2542_v23 = vadd.f32 %v2541_v22, %v5786_v29 }
 0x821   :  { %v2556_v36 = vpop.f32.mrf.mxu1 }
 0x822   :  { %2558 = vst [vmem:[#allocation2] sm:$0xff] %v2542_v23 }
 0x823   :  { %2570 = dma.vmem_to_hbm [thread:$0]  %s2566_s26, 256, %s2568_s28, [#allocation3]  }
 0x827   :  { %v2543_v37 = vpop.f32.mrf.mxu3 }
 0x828   :  { %3971 = dma.done.wait [#allocation3], 256  }
 0x829   :  { %3972 = vsyncadd [#allocation3], 4294967040 }
 0x82a   :  { %2575 = vsyncpa [#allocation3], 1 }

</bundles_post_ra>
